<compile_context>
chip_gen: v5e
topology: v5e:2x2
jax: 0.10.0
libtpu: 0.0.40
codegen_flags: <defaults>
</compile_context>

<pallas_src>
import functools
import math

import jax
import jax.numpy as jnp
from jax.experimental import pallas as pl
from jax.experimental.pallas import tpu as pltpu


# ------------------------------ Pallas kernel -------------------------------

def _self_attention_kernel(x_ref, w_ref, b_ref, bo_ref, gamma_ref, o_ref, *,
                           c, cq_pad, softmax_bf16):
    xm = x_ref[0]                                     # (C, HW) f32, residual path
    # Fused [V'|Qpad|Kpad] projection, channels-first: one MXU matmul
    # (bf16 operands, f32 accumulation).  V' already contains the out_conv fold.
    qkv = jnp.dot(w_ref[...], xm.astype(jnp.bfloat16),
                  preferred_element_type=jnp.float32) + b_ref[...]
    v = qkv[:c]                                       # (C, HW)
    q = qkv[c:c + cq_pad]                             # (cq_pad, HW), zero rows beyond Cq
    k = qkv[c + cq_pad:]                              # (cq_pad, HW)

    # att[i, j] = <q[:, i], k[:, j]>  (1/sqrt(Cq) pre-folded into Wq).
    att = jax.lax.dot_general(
        q.astype(jnp.bfloat16), k.astype(jnp.bfloat16),
        (((0,), (0,)), ((), ())),
        preferred_element_type=jnp.float32)
    att = jnp.clip(att, -10.0, 10.0)                  # torch.clamp(att, -10, 10)

    # Softmax: att bounded in [-10, 10] -> exp() is safe without max-subtract;
    # divide runs on the EUP via approximate reciprocal.
    if softmax_bf16:                                  # v6e / v7x: bf16 EUP
        e = jnp.exp(att.astype(jnp.bfloat16))
        denom = jnp.sum(e.astype(jnp.float32), axis=-1, keepdims=True)
        p = e * pl.reciprocal(denom, approx=True).astype(jnp.bfloat16)
    else:                                             # v5e and older: f32 only
        e = jnp.exp(att)
        denom = jnp.sum(e, axis=-1, keepdims=True)
        p = (e * pl.reciprocal(denom, approx=True)).astype(jnp.bfloat16)

    # ctx[c, i] = sum_j v[c, j] * p[i, j]   (== out_conv(value @ att^T), Wo folded).
    out = jax.lax.dot_general(
        v.astype(jnp.bfloat16), p,
        (((1,), (1,)), ((), ())),
        preferred_element_type=jnp.float32) + bo_ref[...]

    g = jnp.clip(gamma_ref[0], -1.0, 1.0)             # scalar clamp (SMEM / sreg)
    res = g * out + xm

    # Collapsed NaN guard: with clipped attention, a NaN in res can only come
    # from a NaN already present in x or in the weights, in which case PyTorch
    # also ends up returning x.  Kept as a broadcast select (proven lowering).
    # TODO(synk): the intermediate NaN->zeros / NaN->uniform attention resets of
    # the PyTorch code are collapsed into this single final guard.
    has_nan = jnp.any(jnp.isnan(res)).reshape(1, 1)
    o_ref[0] = jnp.where(has_nan, xm, res)


def _use_bf16_softmax():
    try:
        kind = jax.devices()[0].device_kind.lower()
    except Exception:
        return False
    return ("v6" in kind) or ("v7" in kind) or ("7x" in kind)


def self_attention_module(x, p):
    """SelfAttentionModule.forward.  x: (N, C, H, W) float32 (PyTorch layout)."""
    n, c, h, w = x.shape
    hw = h * w
    cqkv = p['w'].shape[0]
    cq_pad = (cqkv - c) // 2
    x3 = x.reshape(n, c, hw)                          # channels-first, no copy
    kern = functools.partial(_self_attention_kernel, c=c, cq_pad=cq_pad,
                             softmax_bf16=_use_bf16_softmax())
    out = pl.pallas_call(
        kern,
        out_shape=jax.ShapeDtypeStruct((n, c, hw), jnp.float32),
        grid=(n,),
        in_specs=[
            pl.BlockSpec((1, c, hw), lambda b: (b, 0, 0)),      # x (per-batch tile)
            pl.BlockSpec((cqkv, c), lambda b: (0, 0)),          # fused [V'|Qpad|Kpad] weight (bf16)
            pl.BlockSpec((cqkv, 1), lambda b: (0, 0)),          # fused bias (channels-first)
            pl.BlockSpec((c, 1), lambda b: (0, 0)),             # out_conv bias
            pl.BlockSpec(memory_space=pltpu.MemorySpace.SMEM),  # gamma scalar
        ],
        out_specs=pl.BlockSpec((1, c, hw), lambda b: (b, 0, 0)),
        compiler_params=pltpu.CompilerParams(
            dimension_semantics=("parallel",)),                 # batch across TCs (v7x)
    )(x3, p['w'], p['b'], p['bo'], p['gamma'])
    return out.reshape(n, c, h, w)


# --------------------------- parameter construction --------------------------

def _xavier_uniform(key, cout, cin, gain=0.1):
    # nn.init.xavier_uniform_(gain=0.1) on a (Cout, Cin, 1, 1) conv weight,
    # stored as the channels-first matmul matrix (Cout, Cin).
    bound = gain * math.sqrt(6.0 / (cin + cout))
    return jax.random.uniform(key, (cout, cin), jnp.float32, -bound, bound)


def make_raw_params(key, c, reduction=8):
    """f32 per-layer parameters exactly as the PyTorch module holds them."""
    cq = c // reduction
    kq, kk, kv, ko = jax.random.split(key, 4)
    return dict(
        wq=_xavier_uniform(kq, cq, c), bq=jnp.zeros((cq,), jnp.float32),
        wk=_xavier_uniform(kk, cq, c), bk=jnp.zeros((cq,), jnp.float32),
        wv=_xavier_uniform(kv, c, c), bv=jnp.zeros((c,), jnp.float32),
        wo=_xavier_uniform(ko, c, c), bo=jnp.zeros((c,), jnp.float32),
        gamma=jnp.zeros((1,), jnp.float32),            # nn.Parameter(torch.zeros(1))
    )


def fuse_params(rp):
    """Offline weight prep for the kernel.  All folds exact, computed in f32:
       * out_conv folded into value_conv (Wv' = Wo @ Wv, bv' = Wo @ bv),
       * 1/sqrt(Cq) folded into Wq/bq,
       * Q/K channels zero-padded to a 128-multiple (MXU-native contraction)."""
    c = rp['wv'].shape[0]
    cq = rp['wq'].shape[0]
    cq_pad = max(128, -(-cq // 128) * 128)
    scale = 1.0 / math.sqrt(cq)
    wv_f = rp['wo'] @ rp['wv']
    bv_f = rp['wo'] @ rp['bv']
    wq_p = jnp.zeros((cq_pad, c), jnp.float32).at[:cq].set(rp['wq'] * scale)
    bq_p = jnp.zeros((cq_pad,), jnp.float32).at[:cq].set(rp['bq'] * scale)
    wk_p = jnp.zeros((cq_pad, c), jnp.float32).at[:cq].set(rp['wk'])
    bk_p = jnp.zeros((cq_pad,), jnp.float32).at[:cq].set(rp['bk'])
    w = jnp.concatenate([wv_f, wq_p, wk_p], axis=0)        # (C + 2*cq_pad, C)
    b = jnp.concatenate([bv_f, bq_p, bk_p])[:, None]       # (C + 2*cq_pad, 1)
    return dict(
        w=w.astype(jnp.bfloat16),                          # bf16 MXU operand
        b=b.astype(jnp.float32),
        bo=rp['bo'][:, None].astype(jnp.float32),
        gamma=rp['gamma'].astype(jnp.float32),
    )


# ------------------------- plain-JAX f32 reference ---------------------------

def self_attention_reference(x, rp):
    """Faithful f32 reference of SelfAttentionModule.forward (nominal path)."""
    n, c, h, w = x.shape
    hw = h * w
    xf = x.reshape(n, c, hw)
    q = jnp.einsum('oc,bcs->bos', rp['wq'], xf) + rp['bq'][:, None]
    k = jnp.einsum('oc,bcs->bos', rp['wk'], xf) + rp['bk'][:, None]
    v = jnp.einsum('oc,bcs->bos', rp['wv'], xf) + rp['bv'][:, None]
    att = jnp.einsum('bci,bcj->bij', q, k) / math.sqrt(q.shape[1])
    att = jax.nn.softmax(jnp.clip(att, -10.0, 10.0), axis=-1)
    ctx = jnp.einsum('bcj,bij->bci', v, att)
    out = jnp.einsum('oc,bcs->bos', rp['wo'], ctx) + rp['bo'][:, None]
    g = jnp.clip(rp['gamma'][0], -1.0, 1.0)
    return (g * out + xf).reshape(n, c, h, w)


# ----------------------------------- main -------------------------------------

if __name__ == "__main__":
    B, C, H, W = 2, 256, 16, 16                            # HW = 256, Cq = 32
    kx, kp = jax.random.split(jax.random.PRNGKey(0))
    x = jax.random.normal(kx, (B, C, H, W), jnp.float32)
    raw = make_raw_params(kp, C, reduction=8)

    fwd = jax.jit(self_attention_module)

    # 1) default init (gamma = 0): output must equal the input exactly.
    out0 = fwd(x, fuse_params(raw))
    jax.block_until_ready(out0)
    assert out0.shape == (B, C, H, W), out0.shape
    assert bool(jnp.allclose(out0, x)), "gamma=0 residual path mismatch"

    # 2) non-zero gamma exercises the full attention path; compare to f32 ref.
    raw_g = dict(raw, gamma=jnp.full((1,), 0.5, jnp.float32))
    out1 = fwd(x, fuse_params(raw_g))
    jax.block_until_ready(out1)
    ref1 = self_attention_reference(x, raw_g)
    assert bool(jnp.all(jnp.isfinite(out1)))
    max_err = float(jnp.max(jnp.abs(out1 - ref1)))
    assert max_err < 5e-2, f"max abs error {max_err}"

    print("KERNEL_OK")
</pallas_src>

<mosaic_0001>
module attributes {stable_mosaic.version = 11 : i64} {
  func.func @_self_attention_kernel(%arg0: i32, %arg1: memref<1x256x256xf32, #tpu.memory_space<vmem>>, %arg2: memref<512x256xbf16, #tpu.memory_space<vmem>>, %arg3: memref<512x1xf32, #tpu.memory_space<vmem>>, %arg4: memref<256x1xf32, #tpu.memory_space<vmem>>, %arg5: memref<1xf32, #tpu.memory_space<smem>>, %arg6: memref<1x256x256xf32, #tpu.memory_space<vmem>>) attributes {dimension_semantics = [#tpu.dimension_semantics<parallel>], iteration_bounds = array<i64: 2>, scalar_prefetch = 0 : i64, scratch_operands = 0 : i64, tpu.core_type = #tpu.core_type<tc>, window_params = [{transform_indices = @transform_0, window_bounds = array<i64: 1, 256, 256>}, {pipeline_mode = #tpu.pipeline_mode<synchronous>, transform_indices = @transform_1, window_bounds = array<i64: 512, 256>}, {pipeline_mode = #tpu.pipeline_mode<synchronous>, transform_indices = @transform_2, window_bounds = array<i64: 512, 1>}, {pipeline_mode = #tpu.pipeline_mode<synchronous>, transform_indices = @transform_3, window_bounds = array<i64: 256, 1>}, {transform_indices = @transform_4, window_bounds = array<i64: 1>}, {transform_indices = @transform_5, window_bounds = array<i64: 1, 256, 256>}]} {
    %c0 = arith.constant 0 : index
    %c0_0 = arith.constant 0 : index
    %c0_1 = arith.constant 0 : index
    %0 = vector.load %arg1[%c0, %c0_0, %c0_1] : memref<1x256x256xf32, #tpu.memory_space<vmem>>, vector<1x256x256xf32>
    %1 = vector.shape_cast %0 : vector<1x256x256xf32> to vector<256x256xf32>
    %c0_2 = arith.constant 0 : index
    %c0_3 = arith.constant 0 : index
    %2 = vector.load %arg2[%c0_2, %c0_3] : memref<512x256xbf16, #tpu.memory_space<vmem>>, vector<512x256xbf16>
    %3 = arith.truncf %1 : vector<256x256xf32> to vector<256x256xbf16>
    %cst = arith.constant dense<0.000000e+00> : vector<512x256xf32>
    %4 = tpu.matmul %2, %3, %cst {dimension_numbers = #tpu.dot_dimension_numbers<[1], [0], [0], [1], [0, 0, 1, 1], [], []>} : vector<512x256xbf16>, vector<256x256xbf16>, vector<512x256xf32> -> vector<512x256xf32>
    %c0_4 = arith.constant 0 : index
    %c0_5 = arith.constant 0 : index
    %5 = vector.load %arg3[%c0_4, %c0_5] : memref<512x1xf32, #tpu.memory_space<vmem>>, vector<512x1xf32>
    %6 = vector.broadcast %5 : vector<512x1xf32> to vector<512x256xf32>
    %7 = arith.addf %4, %6 : vector<512x256xf32>
    %8 = vector.extract_strided_slice %7 {offsets = [0, 0], sizes = [256, 256], strides = [1, 1]} : vector<512x256xf32> to vector<256x256xf32>
    %9 = vector.extract_strided_slice %7 {offsets = [256, 0], sizes = [128, 256], strides = [1, 1]} : vector<512x256xf32> to vector<128x256xf32>
    %10 = vector.extract_strided_slice %7 {offsets = [384, 0], sizes = [128, 256], strides = [1, 1]} : vector<512x256xf32> to vector<128x256xf32>
    %11 = arith.truncf %9 : vector<128x256xf32> to vector<128x256xbf16>
    %12 = arith.truncf %10 : vector<128x256xf32> to vector<128x256xbf16>
    %cst_6 = arith.constant dense<0.000000e+00> : vector<256x256xf32>
    %13 = tpu.matmul %11, %12, %cst_6 {dimension_numbers = #tpu.dot_dimension_numbers<[0], [0], [1], [1], [0, 1, 1, 1], [], []>} : vector<128x256xbf16>, vector<128x256xbf16>, vector<256x256xf32> -> vector<256x256xf32>
    %cst_7 = arith.constant -1.000000e+01 : f32
    %cst_8 = arith.constant 1.000000e+01 : f32
    %14 = vector.broadcast %cst_7 : f32 to vector<256x256xf32>
    %15 = arith.maximumf %14, %13 : vector<256x256xf32>
    %16 = vector.broadcast %cst_8 : f32 to vector<256x256xf32>
    %17 = arith.minimumf %16, %15 : vector<256x256xf32>
    %18 = math.exp %17 : vector<256x256xf32>
    %cst_9 = arith.constant dense<0.000000e+00> : vector<256xf32>
    %19 = vector.multi_reduction <add>, %18, %cst_9 [1] : vector<256x256xf32> to vector<256xf32>
    %20 = vector.shape_cast %19 : vector<256xf32> to vector<256x1xf32>
    %21 = tpu.reciprocal %20 {approx = true} : vector<256x1xf32> -> vector<256x1xf32>
    %22 = vector.broadcast %21 : vector<256x1xf32> to vector<256x256xf32>
    %23 = arith.mulf %18, %22 : vector<256x256xf32>
    %24 = arith.truncf %23 : vector<256x256xf32> to vector<256x256xbf16>
    %25 = arith.truncf %8 : vector<256x256xf32> to vector<256x256xbf16>
    %cst_10 = arith.constant dense<0.000000e+00> : vector<256x256xf32>
    %26 = tpu.matmul %25, %24, %cst_10 {dimension_numbers = #tpu.dot_dimension_numbers<[1], [1], [0], [0], [0, 0, 1, 0], [], []>} : vector<256x256xbf16>, vector<256x256xbf16>, vector<256x256xf32> -> vector<256x256xf32>
    %c0_11 = arith.constant 0 : index
    %c0_12 = arith.constant 0 : index
    %27 = vector.load %arg4[%c0_11, %c0_12] : memref<256x1xf32, #tpu.memory_space<vmem>>, vector<256x1xf32>
    %28 = vector.broadcast %27 : vector<256x1xf32> to vector<256x256xf32>
    %29 = arith.addf %26, %28 : vector<256x256xf32>
    %c0_13 = arith.constant 0 : index
    %30 = memref.load %arg5[%c0_13] : memref<1xf32, #tpu.memory_space<smem>>
    %cst_14 = arith.constant -1.000000e+00 : f32
    %cst_15 = arith.constant 1.000000e+00 : f32
    %31 = arith.maximumf %cst_14, %30 : f32
    %32 = arith.minimumf %cst_15, %31 : f32
    %33 = vector.broadcast %32 : f32 to vector<256x256xf32>
    %34 = arith.mulf %33, %29 : vector<256x256xf32>
    %35 = arith.addf %34, %1 : vector<256x256xf32>
    %36 = arith.cmpf one, %35, %35 : vector<256x256xf32>
    %cst_16 = arith.constant 1.000000e+00 : f32
    %cst_17 = arith.constant 0.000000e+00 : f32
    %37 = vector.broadcast %cst_16 : f32 to vector<256x256xf32>
    %38 = vector.broadcast %cst_17 : f32 to vector<256x256xf32>
    %39 = arith.select %36, %37, %38 : vector<256x256xi1>, vector<256x256xf32>
    %40 = vector.shape_cast %39 : vector<256x256xf32> to vector<1x256x256xf32>
    %cst_18 = arith.constant dense<0xFF800000> : vector<1xf32>
    %41 = vector.multi_reduction <maximumf>, %40, %cst_18 [1, 2] : vector<1x256x256xf32> to vector<1xf32>
    %42 = vector.shape_cast %41 : vector<1xf32> to vector<1x1x1xf32>
    %43 = vector.extract %42[0, 0, 0] : f32 from vector<1x1x1xf32>
    %cst_19 = arith.constant 0.000000e+00 : f32
    %44 = arith.cmpf ogt, %43, %cst_19 : f32
    %45 = vector.broadcast %44 : i1 to vector<1x1xi1>
    %46 = vector.shape_cast %45 : vector<1x1xi1> to vector<1x1xi1>
    %47 = vector.broadcast %46 : vector<1x1xi1> to vector<256x256xi1>
    %48 = arith.select %47, %1, %35 : vector<256x256xi1>, vector<256x256xf32>
    %c0_20 = arith.constant 0 : index
    %c0_21 = arith.constant 0 : index
    %c0_22 = arith.constant 0 : index
    %49 = vector.load %arg6[%c0_20, %c0_21, %c0_22] : memref<1x256x256xf32, #tpu.memory_space<vmem>>, vector<1x256x256xf32>
    %50 = vector.shape_cast %49 : vector<1x256x256xf32> to vector<256x256xf32>
    %51 = vector.shape_cast %48 : vector<256x256xf32> to vector<1x256x256xf32>
    tpu.vector_store %arg6[%c0_20, %c0_21, %c0_22], %51 {strides = array<i32>} : memref<1x256x256xf32, #tpu.memory_space<vmem>>, vector<1x256x256xf32>,
    return
  }
  func.func @transform_0(%arg0: i32) -> (i32, i32, i32) {
    %c0_i32 = arith.constant 0 : i32
    %c0_i32_0 = arith.constant 0 : i32
    %c0_i32_1 = arith.constant 0 : i32
    return %arg0, %c0_i32, %c0_i32_0 : i32, i32, i32
  }
  func.func @transform_1(%arg0: i32) -> (i32, i32) {
    %c0_i32 = arith.constant 0 : i32
    %c0_i32_0 = arith.constant 0 : i32
    %c0_i32_1 = arith.constant 0 : i32
    return %c0_i32, %c0_i32_0 : i32, i32
  }
  func.func @transform_2(%arg0: i32) -> (i32, i32) {
    %c0_i32 = arith.constant 0 : i32
    %c0_i32_0 = arith.constant 0 : i32
    %c0_i32_1 = arith.constant 0 : i32
    return %c0_i32, %c0_i32_0 : i32, i32
  }
  func.func @transform_3(%arg0: i32) -> (i32, i32) {
    %c0_i32 = arith.constant 0 : i32
    %c0_i32_0 = arith.constant 0 : i32
    %c0_i32_1 = arith.constant 0 : i32
    return %c0_i32, %c0_i32_0 : i32, i32
  }
  func.func @transform_4(%arg0: i32) -> i32 {
    %c0_i32 = arith.constant 0 : i32
    %c0_i32_0 = arith.constant 0 : i32
    return %c0_i32 : i32
  }
  func.func @transform_5(%arg0: i32) -> (i32, i32, i32) {
    %c0_i32 = arith.constant 0 : i32
    %c0_i32_0 = arith.constant 0 : i32
    %c0_i32_1 = arith.constant 0 : i32
    return %arg0, %c0_i32, %c0_i32_0 : i32, i32, i32
  }
}

</mosaic_0001>

<bundles_post_ra>
// kernel: self_attention_module.1
= control target key start
LH: loop header
LB: loop body
LE: loop exit
PB: predicated region body
PF: predicated region fallthrough
CT: control target
= control target key end

     0   :  { %s4310_s20 = smov 0   ;;  %s7654_s0 = inlined_call_operand.vmem [shape: f32[2,256,256], index: 0, kind: input, shape index: {}]   ;;  %s7655_s1 = inlined_call_operand.vmem [shape: bf16[512,256], index: 1, kind: input, shape index: {}]   ;;  %s7656_s2 = inlined_call_operand.vmem [shape: f32[512,1], index: 2, kind: input, shape index: {}]   ;;  %s7657_s3 = inlined_call_operand.vmem [shape: f32[256,1], index: 3, kind: input, shape index: {}]   ;;  %s7658_s4 = inlined_call_operand.<no memory space> [shape: f32[1], index: 4, kind: input, shape index: {}]   ;;  %s7659_s5 = inlined_call_operand.vmem [shape: f32[2,256,256], index: 5, kind: output, shape index: {}]  }
   0x1   :  { %10 = sst [smem:[#allocation2]] %s7658_s4 }
   0x2 LB: > { %s3579_s21 = sadd.s32 4294967295, %s4271_s20   ;;  %p3583_p0 = scmp.ge.s32.totalorder %s4271_s20, 1  ;;  %s4271_s20 = sphi %s4310_s20, %s16_s20  }
   0x3   : > { %p188_p1 = scmp.lt.s32.totalorder %s4271_s20, 3 }
   0x5   : > { %p189_p2 = pnand %p3583_p0, %p188_p1 }
   0x7   : > { %192 = sbr.rel (%p189_p2) target bundleno = 2072 (0x818), region = 40 }
   0xc   : > { %v420_v0 = vld [vmem:[%s7656_s2 + $0x110] sm:$0xff]  ;;  %v418_v1 = vld [vmem:[%s7656_s2 + $0x100] sm:$0xff]  ;;  %p216_p3 = scmp.lt.s32.totalorder %s3579_s21, 1  ;;  %v4273_v2 = vmov 0   ;;  %v421_v4 = vld [vmem:[%s7656_s2 + $0x118] sm:$0xff]  ;;  %s3060_s8 = sld [smem:[#allocation2]] }
   0xd   : > { %4007 = vset.pattern.permute.xlu1 %v4273_v2  ;;  %4006 = vset.pattern.permute.xlu0 %v4273_v2  ;;  %v422_v3 = vld [vmem:[%s7656_s2 + $0x120] sm:$0xff]  ;;  %v419_v13 = vld [vmem:[%s7656_s2 + $0x108] sm:$0xff]  ;;  %v425_v26 = vld [vmem:[%s7656_s2 + $0x138] sm:$0xff]  ;;  %s4274_s9 = smov -1.0   ;;  %s4275_s11 = smov 1.0  }
   0xe   : > { %622 = vperm.xlu1 %4007, %v420_v0   ;;  %612 = vperm.xlu0 %4006, %v418_v1   ;;  %s8319_s21 = smov (!%p216_p3, %s3579_s21), 1  ;;  %v424_v29 = vld [vmem:[%s7656_s2 + $0x130] sm:$0xff]  ;;  %v423_v34 = vld [vmem:[%s7656_s2 + $0x128] sm:$0xff]  ;;  %v426_v45 = vld [vmem:[%s7656_s2 + $0x140] sm:$0xff] }
   0xf   : > { %4008 = vset.pattern.permute.xlu2 %v4273_v2  ;;  %s3910_s27 = sshll.u32 %s8319_s21, 9  ;;  %v428_v41 = vld [vmem:[%s7656_s2 + $0x150] sm:$0xff]  ;;  %v427_v44 = vld [vmem:[%s7656_s2 + $0x148] sm:$0xff]  ;;  %v449_v56 = vld [vmem:[%s7656_s2 + $0x1f8] sm:$0xff] }
  0x10   : > { %632 = vperm.xlu2 %4008, %v422_v3   ;;  %s4335_s30 = scalar_lea.vmem %s7654_s0, %s3910_s27  ;;  %v448_v59 = vld [vmem:[%s7656_s2 + $0x1f0] sm:$0xff]  ;;  %v429_v60 = vld [vmem:[%s7656_s2 + $0x158] sm:$0xff]  ;;  %v3782_v62 = vld [vmem:[%s7655_s1 + $0x180] sm:$0xf]  ;;  %s7325_s16 = scalar_lea.vmem %s7659_s5, %s3910_s27 }
  0x11   : > { %v254_v5 = vld [vmem:[%s4335_s30 + $0xe0] sm:$0xff]  ;;  %v256_v6 = vld [vmem:[%s4335_s30 + $0xf0] sm:$0xff]  ;;  %v3961_v63 = vld [vmem:[%s7655_s1 + $0x184] sm:$0xf0] }
  0x12   : > { %v286_v7 = vld [vmem:[%s4335_s30 + $0x1e0] sm:$0xff]  ;;  %v368_v8 = vpack.c.bf16 %v256_v6, %v254_v5  ;;  %v288_v9 = vld [vmem:[%s4335_s30 + $0x1f0] sm:$0xff]  ;;  %v3784_v2 = vld [vmem:[%s7655_s1 + $0x188] sm:$0xf0]  ;;  %v4414_v3 = vor.u32 %v3961_v63, %v3782_v62  ;;  %s3061_s10 = smax.f32 %s4274_s9, %s3060_s8 }
  0x13   : > { %v250_v10 = vld [vmem:[%s4335_s30 + $0xc0] sm:$0xff]  ;;  %v252_v11 = vld [vmem:[%s4335_s30 + $0xd0] sm:$0xff]  ;;  %v384_v12 = vpack.c.bf16 %v288_v9, %v286_v7  ;;  %v431_v6 = vld [vmem:[%s7656_s2 + $0x168] sm:$0xff]  ;;  %s3062_s12 = smin.f32 %s4275_s11, %s3061_s10 }
  0x14   : > { %v282_v14 = vld [vmem:[%s4335_s30 + $0x1c0] sm:$0xff]  ;;  %v284_v15 = vld [vmem:[%s4335_s30 + $0x1d0] sm:$0xff]  ;;  %3976 = vmatpush.bf16.msra.mxu2 %v368_v8  ;;  %v366_v16 = vpack.c.bf16 %v252_v11, %v250_v10  ;;  %1090 = vmatpush.bf16.msra.mxu0 %v368_v8  ;;  %v445_v8 = vld [vmem:[%s7656_s2 + $0x1d8] sm:$0xff] }
  0x15   : > { %3984 = vmatpush.bf16.msra.mxu3 %v384_v12  ;;  %v382_v17 = vpack.c.bf16 %v284_v15, %v282_v14  ;;  %v246_v18 = vld [vmem:[%s4335_s30 + $0xa0] sm:$0xff]  ;;  %v248_v19 = vld [vmem:[%s4335_s30 + $0xb0] sm:$0xff]  ;;  %1259 = vmatpush.bf16.msra.mxu1 %v384_v12  ;;  %v447_v10 = vld [vmem:[%s7656_s2 + $0x1e8] sm:$0xff] }
  0x16   : > { %627 = vperm.xlu1 %4007, %v421_v4   ;;  %617 = vperm.xlu0 %4006, %v419_v13   ;;  %v278_v20 = vld [vmem:[%s4335_s30 + $0x1a0] sm:$0xff]  ;;  %v280_v21 = vld [vmem:[%s4335_s30 + $0x1b0] sm:$0xff]  ;;  %v364_v22 = vpack.c.bf16 %v248_v19, %v246_v18  ;;  %v3963_v12 = vld [vmem:[%s7655_s1 + $0x194] sm:$0xf0] }
  0x17   : > { %v380_v23 = vpack.c.bf16 %v280_v21, %v278_v20  ;;  %v242_v24 = vld [vmem:[%s4335_s30 + $0x80] sm:$0xff]  ;;  %v244_v25 = vld [vmem:[%s4335_s30 + $0x90] sm:$0xff]  ;;  %v3792_v14 = vld [vmem:[%s7655_s1 + $0x198] sm:$0xf0] }
  0x18   : > { %3977 = vmatpush.bf16.msra.mxu2 %v366_v16  ;;  %1091 = vmatpush.bf16.msra.mxu0 %v366_v16  ;;  %v274_v27 = vld [vmem:[%s4335_s30 + $0x180] sm:$0xff]  ;;  %v276_v28 = vld [vmem:[%s4335_s30 + $0x190] sm:$0xff]  ;;  %v362_v30 = vpack.c.bf16 %v244_v25, %v242_v24  ;;  %v433_v18 = vld [vmem:[%s7656_s2 + $0x178] sm:$0xff] }
  0x19   : > { %3985 = vmatpush.bf16.msra.mxu3 %v382_v17  ;;  %1260 = vmatpush.bf16.msra.mxu1 %v382_v17  ;;  %v378_v31 = vpack.c.bf16 %v276_v28, %v274_v27  ;;  %v238_v32 = vld [vmem:[%s4335_s30 + $0x60] sm:$0xff]  ;;  %v240_v33 = vld [vmem:[%s4335_s30 + $0x70] sm:$0xff]  ;;  %v441_v20 = vld [vmem:[%s7656_s2 + $0x1b8] sm:$0xff] }
  0x1a   : > { %v270_v35 = vld [vmem:[%s4335_s30 + $0x160] sm:$0xff]  ;;  %v272_v36 = vld [vmem:[%s4335_s30 + $0x170] sm:$0xff]  ;;  %637 = vperm.xlu2 %4008, %v423_v34   ;;  %v360_v37 = vpack.c.bf16 %v240_v33, %v238_v32  ;;  %v3965_v24 = vld [vmem:[%s7655_s1 + $0x1a4] sm:$0xf0] }
  0x1b   : > { %v376_v38 = vpack.c.bf16 %v272_v36, %v270_v35  ;;  %v234_v39 = vld [vmem:[%s4335_s30 + $0x40] sm:$0xff]  ;;  %v236_v40 = vld [vmem:[%s4335_s30 + $0x50] sm:$0xff]  ;;  %v435_v32 = vld [vmem:[%s7656_s2 + $0x188] sm:$0xff] }
  0x1c   : > { %3978 = vmatpush.bf16.msra.mxu2 %v364_v22  ;;  %1092 = vmatpush.bf16.msra.mxu0 %v364_v22  ;;  %v266_v42 = vld [vmem:[%s4335_s30 + $0x140] sm:$0xff]  ;;  %v268_v43 = vld [vmem:[%s4335_s30 + $0x150] sm:$0xff]  ;;  %v358_v46 = vpack.c.bf16 %v236_v40, %v234_v39  ;;  %v443_v22 = vld [vmem:[%s7656_s2 + $0x1c8] sm:$0xff] }
  0x1d   : > { %3986 = vmatpush.bf16.msra.mxu3 %v380_v23  ;;  %1261 = vmatpush.bf16.msra.mxu1 %v380_v23  ;;  %v374_v47 = vpack.c.bf16 %v268_v43, %v266_v42  ;;  %v230_v48 = vld [vmem:[%s4335_s30 + $0x20] sm:$0xff]  ;;  %v232_v49 = vld [vmem:[%s4335_s30 + $0x30] sm:$0xff]  ;;  %v437_v34 = vld [vmem:[%s7656_s2 + $0x198] sm:$0xff] }
  0x1e   : > { %647 = vperm.xlu1 %4007, %v425_v26   ;;  %642 = vperm.xlu0 %4006, %v424_v29   ;;  %v262_v50 = vld [vmem:[%s4335_s30 + $0x120] sm:$0xff]  ;;  %v264_v51 = vld [vmem:[%s4335_s30 + $0x130] sm:$0xff]  ;;  %v356_v52 = vpack.c.bf16 %v232_v49, %v230_v48  ;;  %v3800_v26 = vld [vmem:[%s7655_s1 + $0x1a8] sm:$0xf0] }
  0x1f   : > { %v372_v53 = vpack.c.bf16 %v264_v51, %v262_v50  ;;  %v226_v54 = vld [vmem:[%s4335_s30] sm:$0xff]  ;;  %v228_v55 = vld [vmem:[%s4335_s30 + $0x10] sm:$0xff]  ;;  %v3967_v36 = vld [vmem:[%s7655_s1 + $0x1b4] sm:$0xf0] }
  0x20   : > { %3979 = vmatpush.bf16.msra.mxu2 %v362_v30  ;;  %1093 = vmatpush.bf16.msra.mxu0 %v362_v30  ;;  %v258_v57 = vld [vmem:[%s4335_s30 + $0x100] sm:$0xff]  ;;  %v260_v58 = vld [vmem:[%s4335_s30 + $0x110] sm:$0xff]  ;;  %v354_v61 = vpack.c.bf16 %v228_v55, %v226_v54  ;;  %v439_v30 = vld [vmem:[%s7656_s2 + $0x1a8] sm:$0xff] }
  0x21   : > { %3987 = vmatpush.bf16.msra.mxu3 %v378_v31  ;;  %1262 = vmatpush.bf16.msra.mxu1 %v378_v31  ;;  %v370_v0 = vpack.c.bf16 %v260_v58, %v258_v57  ;;  %v3960_v1 = vld [vmem:[%s7655_s1 + $0x184] sm:$0xf]  ;;  %v444_v9 = vld [vmem:[%s7656_s2 + $0x1d0] sm:$0xff]  ;;  %v3798_v23 = vld [vmem:[%s7655_s1 + $0x1a0] sm:$0xf] }
  0x22   : > { %652 = vperm.xlu2 %4008, %v426_v45   ;;  %v4416_v4 = vor.u32 %v3960_v1, %v3784_v2  ;;  %v446_v5 = vld [vmem:[%s7656_s2 + $0x1e0] sm:$0xff]  ;;  %v3790_v11 = vld [vmem:[%s7655_s1 + $0x190] sm:$0xf]  ;;  %v3962_v13 = vld [vmem:[%s7655_s1 + $0x194] sm:$0xf]  ;;  %v4486_v27 = vor.u32 %v3965_v24, %v3798_v23 }
  0x23   : > { %v430_v7 = vld [vmem:[%s7656_s2 + $0x160] sm:$0xff]  ;;  %v4450_v15 = vor.u32 %v3963_v12, %v3790_v11  ;;  %v4452_v16 = vor.u32 %v3962_v13, %v3792_v14  ;;  %v432_v19 = vld [vmem:[%s7656_s2 + $0x170] sm:$0xff]  ;;  %v3969_v42 = vld [vmem:[%s7655_s1 + $0x1c4] sm:$0xf0] }
  0x24   : > { %3980 = vmatpush.bf16.msra.mxu2 %v360_v37  ;;  %1094 = vmatpush.bf16.msra.mxu0 %v360_v37  ;;  %v442_v17 = vld [vmem:[%s7656_s2 + $0x1c0] sm:$0xff]  ;;  %v440_v21 = vld [vmem:[%s7656_s2 + $0x1b0] sm:$0xff]  ;;  %v255_v48 = vld [vmem:[%s4335_s30 + $0xe8] sm:$0xff] }
  0x25   : > { %3988 = vmatpush.bf16.msra.mxu3 %v376_v38  ;;  %1263 = vmatpush.bf16.msra.mxu1 %v376_v38  ;;  %v3964_v25 = vld [vmem:[%s7655_s1 + $0x1a4] sm:$0xf]  ;;  %v436_v29 = vld [vmem:[%s7656_s2 + $0x190] sm:$0xff]  ;;  %v3808_v38 = vld [vmem:[%s7655_s1 + $0x1b8] sm:$0xf0] }
  0x26   : > { %662 = vperm.xlu1 %4007, %v428_v41   ;;  %657 = vperm.xlu0 %4006, %v427_v44   ;;  %v4488_v28 = vor.u32 %v3964_v25, %v3800_v26  ;;  %v438_v31 = vld [vmem:[%s7656_s2 + $0x1a0] sm:$0xff]  ;;  %v3806_v35 = vld [vmem:[%s7655_s1 + $0x1b0] sm:$0xf]  ;;  %v3966_v37 = vld [vmem:[%s7655_s1 + $0x1b4] sm:$0xf] }
  0x27   : > { %v434_v33 = vld [vmem:[%s7656_s2 + $0x180] sm:$0xff]  ;;  %v4522_v39 = vor.u32 %v3967_v36, %v3806_v35  ;;  %v4524_v40 = vor.u32 %v3966_v37, %v3808_v38  ;;  %v3816_v44 = vld [vmem:[%s7655_s1 + $0x1c8] sm:$0xf0]  ;;  %v257_v49 = vld [vmem:[%s4335_s30 + $0xf8] sm:$0xff] }
  0x28   : > { %3981 = vmatpush.bf16.msra.mxu2 %v358_v46  ;;  %1095 = vmatpush.bf16.msra.mxu0 %v358_v46  ;;  %v3814_v41 = vld [vmem:[%s7655_s1 + $0x1c0] sm:$0xf]  ;;  %v3968_v43 = vld [vmem:[%s7655_s1 + $0x1c4] sm:$0xf]  ;;  %v287_v50 = vld [vmem:[%s4335_s30 + $0x1e8] sm:$0xff]  ;;  %v369_v51 = vpack.c.bf16 %v257_v49, %v255_v48 }
  0x29   : > { %3989 = vmatpush.bf16.msra.mxu3 %v374_v47  ;;  %1264 = vmatpush.bf16.msra.mxu1 %v374_v47  ;;  %v4540_v45 = vor.u32 %v3969_v42, %v3814_v41  ;;  %v4542_v46 = vor.u32 %v3968_v43, %v3816_v44  ;;  %v251_v54 = vld [vmem:[%s4335_s30 + $0xc8] sm:$0xff]  ;;  %v253_v55 = vld [vmem:[%s4335_s30 + $0xd8] sm:$0xff]  ;;  %v3822_v2 = vld [vmem:[%s7655_s1 + $0x1d0] sm:$0xf] }
  0x2a   : > { %667 = vperm.xlu2 %4008, %v429_v60   ;;  %v367_v57 = vpack.c.bf16 %v253_v55, %v251_v54  ;;  %v285_v58 = vld [vmem:[%s4335_s30 + $0x1d8] sm:$0xff]  ;;  %v247_v60 = vld [vmem:[%s4335_s30 + $0xa8] sm:$0xff]  ;;  %v3590_v36 = vld [vmem:[%s7655_s1] sm:$0xf] }
  0x2b   : > { %7791 = vst [vmem:[#allocation3_spill] sm:$0xff] %v4542_v46  ;;  %v279_v62 = vld [vmem:[%s4335_s30 + $0x1a8] sm:$0xff]  ;;  %v273_v25 = vld [vmem:[%s4335_s30 + $0x178] sm:$0xff]  ;;  %v3830_v55 = vld [vmem:[%s7655_s1 + $0x1e0] sm:$0xf] }
  0x2c   : > { %3982 = vmatpush.bf16.msra.mxu2 %v356_v52  ;;  %1096 = vmatpush.bf16.msra.mxu0 %v356_v52  ;;  %v289_v52 = vld [vmem:[%s4335_s30 + $0x1f8] sm:$0xff]  ;;  %v275_v11 = vld [vmem:[%s4335_s30 + $0x188] sm:$0xff] }
  0x2d   : > { %3990 = vmatpush.bf16.msra.mxu3 %v372_v53  ;;  %1265 = vmatpush.bf16.msra.mxu1 %v372_v53  ;;  %v385_v53 = vpack.c.bf16 %v289_v52, %v287_v50  ;;  %v271_v23 = vld [vmem:[%s4335_s30 + $0x168] sm:$0xff]  ;;  %v269_v35 = vld [vmem:[%s4335_s30 + $0x158] sm:$0xff] }
  0x2e   : > { %767 = vperm.xlu1 %4007, %v449_v56   ;;  %762 = vperm.xlu0 %4006, %v448_v59   ;;  %v283_v56 = vld [vmem:[%s4335_s30 + $0x1c8] sm:$0xff]  ;;  %v377_v26 = vpack.c.bf16 %v273_v25, %v271_v23  ;;  %v233_v43 = vld [vmem:[%s4335_s30 + $0x38] sm:$0xff] }
  0x2f   : > { %v383_v59 = vpack.c.bf16 %v285_v58, %v283_v56  ;;  %v3913_v37 = vld [vmem:[%s7655_s1 + $0x4] sm:$0xf0]  ;;  %v265_v50 = vld [vmem:[%s4335_s30 + $0x138] sm:$0xff]  ;;  %v3592_v52 = vld [vmem:[%s7655_s1 + $0x8] sm:$0xf0] }
  0x30   : > { %3983 = vmatpush.bf16.msra.mxu2 %v354_v61  ;;  %1097 = vmatpush.bf16.msra.mxu0 %v354_v61  ;;  %v249_v61 = vld [vmem:[%s4335_s30 + $0xb8] sm:$0xff]  ;;  %v231_v42 = vld [vmem:[%s4335_s30 + $0x28] sm:$0xff]  ;;  %v4611_v48 = vor.u32 %v3913_v37, %v3590_v36 }
  0x31   : > { %3991 = vmatpush.bf16.msra.mxu3 %v370_v0  ;;  %1266 = vmatpush.bf16.msra.mxu1 %v370_v0  ;;  %v365_v63 = vpack.c.bf16 %v249_v61, %v247_v60  ;;  %v281_v0 = vld [vmem:[%s4335_s30 + $0x1b8] sm:$0xff]  ;;  %v263_v44 = vld [vmem:[%s4335_s30 + $0x128] sm:$0xff]  ;;  %v357_v49 = vpack.c.bf16 %v233_v43, %v231_v42 }
  0x32   : > { %672 = vperm.xlu2 %4008, %v430_v7   ;;  %v381_v1 = vpack.c.bf16 %v281_v0, %v279_v62  ;;  %v3970_v7 = vld [vmem:[%s7655_s1 + $0x1d4] sm:$0xf]  ;;  %v3973_v56 = vld [vmem:[%s7655_s1 + $0x1e4] sm:$0xf0]  ;;  %v3832_v58 = vld [vmem:[%s7655_s1 + $0x1e8] sm:$0xf0] }
  0x33   : > { %1218 = vmatmul.bf16.vlgmr.msra.gmra.mxu2 %v4414_v3  ;;  %1098 = vmatmul.bf16.vlgmr.msra.gmra.mxu0 %v4611_v48  ;;  %v229_v60 = vld [vmem:[%s4335_s30 + $0x18] sm:$0xff]  ;;  %v259_v61 = vld [vmem:[%s4335_s30 + $0x108] sm:$0xff] }
  0x34   : > { %1387 = vmatmul.bf16.vlgmr.msra.gmra.mxu3 %v4416_v4  ;;  %1428 = vmatpush.bf16.msrb.mxu2 %v369_v51  ;;  %v3912_v51 = vld [vmem:[%s7655_s1 + $0x4] sm:$0xf]  ;;  %v3975_v25 = vld [vmem:[%s7655_s1 + $0x1f4] sm:$0xf0]  ;;  %v3917_v42 = vld [vmem:[%s7655_s1 + $0x24] sm:$0xf0] }
  0x35   : > { %1597 = vmatpush.bf16.msrb.mxu3 %v385_v53  ;;  %v373_v53 = vpack.c.bf16 %v265_v50, %v263_v44  ;;  %v3595_v54 = vor.u32 %v3912_v51, %v3592_v52  ;;  %v3608_v50 = vld [vmem:[%s7655_s1 + $0x28] sm:$0xf0] }
  0x36   : > { %752 = vperm.xlu1 %4007, %v446_v5   ;;  %677 = vperm.xlu0 %4006, %v431_v6   ;;  %v3971_v5 = vld [vmem:[%s7655_s1 + $0x1d4] sm:$0xf0] }
  0x37   : > { %v4581_v14 = vor.u32 %v3971_v5, %v3822_v2  ;;  %1267 = vmatmul.bf16.vlgmr.msra.gmra.mxu1 %v3595_v54 }
  0x38   : > { %1429 = vmatpush.bf16.msrb.mxu2 %v367_v57  ;;  %v3972_v57 = vld [vmem:[%s7655_s1 + $0x1e4] sm:$0xf] }
  0x39   : > { %1598 = vmatpush.bf16.msrb.mxu3 %v383_v59  ;;  %7792 = vst [vmem:[#allocation4_spill] sm:$0xff] %v4581_v14  ;;  %v227_v59 = vld [vmem:[%s4335_s30 + $0x8] sm:$0xff]  ;;  %v4643_v5 = vor.u32 %v3972_v57, %v3832_v58 }
  0x3a   : > { %757 = vperm.xlu2 %4008, %v447_v10   ;;  %v245_v10 = vld [vmem:[%s4335_s30 + $0x98] sm:$0xff]  ;;  %v355_v0 = vpack.c.bf16 %v229_v60, %v227_v59  ;;  %v3614_v59 = vld [vmem:[%s7655_s1 + $0x30] sm:$0xf] }
  0x3b   : > { %7796 = vst [vmem:[#allocation8_spill] sm:$0xff] %v4643_v5  ;;  %v3919_v60 = vld [vmem:[%s7655_s1 + $0x34] sm:$0xf0] }
  0x3c   : > { %1430 = vmatpush.bf16.msrb.mxu2 %v365_v63  ;;  %v4638_v63 = vor.u32 %v3973_v56, %v3830_v55 }
  0x3d   : > { %1599 = vmatpush.bf16.msrb.mxu3 %v381_v1  ;;  %v261_v1 = vld [vmem:[%s4335_s30 + $0x118] sm:$0xff] }
  0x3e   : > { %747 = vperm.xlu1 %4007, %v445_v8   ;;  %742 = vperm.xlu0 %4006, %v444_v9   ;;  %v3824_v8 = vld [vmem:[%s7655_s1 + $0x1d8] sm:$0xf0]  ;;  %v243_v9 = vld [vmem:[%s4335_s30 + $0x88] sm:$0xff]  ;;  %7795 = vst [vmem:[#allocation7_spill] sm:$0xff] %v4638_v63 }
  0x42   : > { %682 = vperm.xlu2 %4008, %v432_v19   ;;  %v4584_v19 = vor.u32 %v3970_v7, %v3824_v8  ;;  %v371_v8 = vpack.c.bf16 %v261_v1, %v259_v61  ;;  %v3615_v1 = vor.u32 %v3919_v60, %v3614_v59 }
  0x43   : > { %1223 = vmatmul.bf16.gmra.mxu2 %v4450_v15 }
  0x44   : > { %1392 = vmatmul.bf16.gmra.mxu3 %v4452_v16  ;;  %7793 = vst [vmem:[#allocation5_spill] sm:$0xff] %v4584_v19 }
  0x46   : > { %732 = vperm.xlu1 %4007, %v442_v17   ;;  %687 = vperm.xlu0 %4006, %v433_v18   ;;  %v363_v17 = vpack.c.bf16 %v245_v10, %v243_v9  ;;  %v277_v18 = vld [vmem:[%s4335_s30 + $0x198] sm:$0xff]  ;;  %v3598_v10 = vld [vmem:[%s7655_s1 + $0x10] sm:$0xf] }
  0x48   : > { %1431 = vmatpush.bf16.msrb.mxu2 %v363_v17 }
  0x4a   : > { %737 = vperm.xlu2 %4008, %v443_v22   ;;  %v241_v22 = vld [vmem:[%s4335_s30 + $0x78] sm:$0xff] }
  0x4e   : > { %727 = vperm.xlu1 %4007, %v441_v20   ;;  %722 = vperm.xlu0 %4006, %v440_v21   ;;  %v379_v20 = vpack.c.bf16 %v277_v18, %v275_v11  ;;  %v239_v21 = vld [vmem:[%s4335_s30 + $0x68] sm:$0xff]  ;;  %v3915_v11 = vld [vmem:[%s7655_s1 + $0x14] sm:$0xf0] }
  0x4f   : > { %v361_v24 = vpack.c.bf16 %v241_v22, %v239_v21  ;;  %v3599_v18 = vor.u32 %v3915_v11, %v3598_v10  ;;  %v3600_v21 = vld [vmem:[%s7655_s1 + $0x18] sm:$0xf0] }
  0x50   : > { %1600 = vmatpush.bf16.msrb.mxu3 %v379_v20  ;;  %v3914_v20 = vld [vmem:[%s7655_s1 + $0x14] sm:$0xf] }
  0x51   : > { %1432 = vmatpush.bf16.msrb.mxu2 %v361_v24  ;;  %v3603_v23 = vor.u32 %v3914_v20, %v3600_v21  ;;  %1103 = vmatmul.bf16.gmra.mxu0 %v3599_v18  ;;  %v3838_v24 = vld [vmem:[%s7655_s1 + $0x1f0] sm:$0xf] }
  0x52   : > { %712 = vperm.xlu2 %4008, %v438_v31   ;;  %v237_v31 = vld [vmem:[%s4335_s30 + $0x58] sm:$0xff] }
  0x53   : > { %1228 = vmatmul.bf16.gmra.mxu2 %v4486_v27  ;;  %1272 = vmatmul.bf16.gmra.mxu1 %v3603_v23 }
  0x54   : > { %1397 = vmatmul.bf16.gmra.mxu3 %v4488_v28 }
  0x55   : > { %1601 = vmatpush.bf16.msrb.mxu3 %v377_v26  ;;  %v3974_v26 = vld [vmem:[%s7655_s1 + $0x1f4] sm:$0xf] }
  0x56   : > { %702 = vperm.xlu1 %4007, %v436_v29   ;;  %717 = vperm.xlu0 %4006, %v439_v30   ;;  %v235_v30 = vld [vmem:[%s4335_s30 + $0x48] sm:$0xff] }
  0x5a   : > { %707 = vperm.xlu2 %4008, %v437_v34   ;;  %v359_v34 = vpack.c.bf16 %v237_v31, %v235_v30  ;;  %v3840_v30 = vld [vmem:[%s7655_s1 + $0x1f8] sm:$0xf0] }
  0x5c   : > { %1433 = vmatpush.bf16.msrb.mxu2 %v359_v34 }
  0x5e   : > { %697 = vperm.xlu1 %4007, %v435_v32   ;;  %692 = vperm.xlu0 %4006, %v434_v33   ;;  %v267_v32 = vld [vmem:[%s4335_s30 + $0x148] sm:$0xff] }
  0x5f   : > { %v375_v41 = vpack.c.bf16 %v269_v35, %v267_v32  ;;  %v4681_v32 = vor.u32 %v3975_v25, %v3838_v24  ;;  %v4685_v35 = vor.u32 %v3974_v26, %v3840_v30 }
  0x60   : > { %1434 = vmatpush.bf16.msrb.mxu2 %v357_v49  ;;  %v3916_v49 = vld [vmem:[%s7655_s1 + $0x24] sm:$0xf] }
  0x61   : > { %1602 = vmatpush.bf16.msrb.mxu3 %v375_v41  ;;  %7801 = vst [vmem:[#allocation13_spill] sm:$0xff] %v4681_v32  ;;  %v3606_v41 = vld [vmem:[%s7655_s1 + $0x20] sm:$0xf]  ;;  %v3611_v51 = vor.u32 %v3916_v49, %v3608_v50 }
  0x62   : > { %7802 = vst [vmem:[#allocation14_spill] sm:$0xff] %v4685_v35  ;;  %v3607_v44 = vor.u32 %v3917_v42, %v3606_v41  ;;  %v3622_v41 = vld [vmem:[%s7655_s1 + $0x40] sm:$0xf]  ;;  %v3921_v42 = vld [vmem:[%s7655_s1 + $0x44] sm:$0xf0] }
  0x63   : > { %1233 = vmatmul.bf16.gmra.mxu2 %v4522_v39  ;;  %1277 = vmatmul.bf16.gmra.mxu1 %v3611_v51  ;;  %v3623_v59 = vor.u32 %v3921_v42, %v3622_v41 }
  0x64   : > { %1402 = vmatmul.bf16.gmra.mxu3 %v4524_v40  ;;  %1435 = vmatpush.bf16.msrb.mxu2 %v355_v0 }
  0x65   : > { %1603 = vmatpush.bf16.msrb.mxu3 %v373_v53  ;;  %1108 = vmatmul.bf16.gmra.mxu0 %v3607_v44 }
  0x69   : > { %1604 = vmatpush.bf16.msrb.mxu3 %v371_v8 }
  0x6a   : > { %v4544_v47 = vpop.permute.xlu2 %632 }
  0x73   : > { %1238 = vmatmul.bf16.gmra.mxu2 %v4540_v45 }
  0x74   : > { %1407 = vmatmul.bf16.gmra.mxu3 %v4542_v46  ;;  %v4566_v6 = vpop.permute.xlu2 %637 }
  0x75   : > { %1113 = vmatmul.bf16.gmra.mxu0 %v3615_v1 }
  0x7c   : > { %v4592_v29 = vpop.permute.xlu2 %652 }
  0x7d   : > { %7794 = vst [vmem:[#allocation6_spill] sm:$0xff] %v4592_v29 }
  0x80   : > { %v4577_v12 = vpop.permute.xlu1 %622  ;;  %v4579_v13 = vpop.permute.xlu0 %612 }
  0x83   : > { %1243 = vmatmul.bf16.gmra.mxu2 %v4581_v14 }
  0x84   : > { %1412 = vmatmul.bf16.gmra.mxu3 %v4584_v19  ;;  %v4645_v7 = vpop.permute.xlu2 %667 }
  0x85   : > { %7797 = vst [vmem:[#allocation9_spill] sm:$0xff] %v4645_v7  ;;  %1118 = vmatmul.bf16.gmra.mxu0 %v3623_v59 }
  0x88   : > { %v4597_v33 = vpop.permute.xlu1 %627  ;;  %v4606_v38 = vpop.permute.xlu0 %617 }
  0x8c   : > { %v4665_v22 = vpop.permute.xlu2 %672 }
  0x8d   : > { %7800 = vst [vmem:[#allocation12_spill] sm:$0xff] %v4665_v22 }
  0x90   : > { %v4636_v62 = vpop.permute.xlu1 %647  ;;  %v4641_v2 = vpop.permute.xlu0 %642 }
  0x93   : > { %1248 = vmatmul.bf16.gmra.mxu2 %v4638_v63 }
  0x94   : > { %1417 = vmatmul.bf16.gmra.mxu3 %v4643_v5  ;;  %v4689_v36 = vpop.permute.xlu2 %757 }
  0x98   : > { %v4649_v9 = vpop.permute.xlu1 %662  ;;  %v4657_v17 = vpop.permute.xlu0 %657 }
  0x99   : > { %7798 = vst [vmem:[#allocation10_spill] sm:$0xff] %v4649_v9 }
  0x9a   : > { %7799 = vst [vmem:[#allocation11_spill] sm:$0xff] %v4657_v17 }
  0x9c   : > { %v4707_v52 = vpop.permute.xlu2 %682 }
  0x9d   : > { %7804 = vst [vmem:[#allocation16_spill] sm:$0xff] %v4707_v52 }
  0xa0   : > { %v4679_v31 = vpop.permute.xlu1 %767  ;;  %v4683_v34 = vpop.permute.xlu0 %762 }
  0xa3   : > { %1253 = vmatmul.bf16.gmra.mxu2 %v4681_v32 }
  0xa4   : > { %1422 = vmatmul.bf16.gmra.mxu3 %v4685_v35  ;;  %v4724_v0 = vpop.permute.xlu2 %737 }
  0xa8   : > { %v4691_v37 = vpop.permute.xlu1 %752  ;;  %v4699_v43 = vpop.permute.xlu0 %677 }
  0xa9   : > { %7803 = vst [vmem:[#allocation15_spill] sm:$0xff] %v4699_v43 }
  0xac   : > { %v4736_v24 = vpop.permute.xlu2 %712 }
  0xad   : > { %7809 = vst [vmem:[#allocation21_spill] sm:$0xff] %v4736_v24 }
  0xb0   : > { %v4709_v53 = vpop.permute.xlu1 %747  ;;  %v4711_v55 = vpop.permute.xlu0 %742 }
  0xb3   : > { %1436 = vmatmul.bf16.vlgmr.msrb.gmra.mxu2 %v4611_v48  ;;  %v3918_v48 = vld [vmem:[%s7655_s1 + $0x34] sm:$0xf] }
  0xb4   : > { %1605 = vmatmul.bf16.vlgmr.msrb.gmra.mxu3 %v3595_v54  ;;  %v3616_v54 = vld [vmem:[%s7655_s1 + $0x38] sm:$0xf0] }
  0xb5   : > { %v3619_v8 = vor.u32 %v3918_v48, %v3616_v54  ;;  %v4757_v54 = vpop.permute.xlu2 %707 }
  0xb6   : > { %v1219_v56 = vpop.f32.mrf.mxu2  ;;  %7812 = vst [vmem:[#allocation24_spill] sm:$0xff] %v4757_v54 }
  0xb7   : > { %v1388_v57 = vpop.f32.mrf.mxu3  ;;  %1282 = vmatmul.bf16.gmra.mxu1 %v3619_v8 }
  0xb8   : > { %v4714_v58 = vpop.permute.xlu1 %732  ;;  %v4722_v61 = vpop.permute.xlu0 %687 }
  0xb9   : > { %7805 = vst [vmem:[#allocation17_spill] sm:$0xff] %v4714_v58 }
  0xba   : > { %7806 = vst [vmem:[#allocation18_spill] sm:$0xff] %v4722_v61 }
  0xbe   : > { %v1221_v10 = vpop.f32.mrf.mxu2 }
  0xbf   : > { %v1390_v11 = vpop.f32.mrf.mxu3 }
  0xc0   : > { %v4732_v20 = vpop.permute.xlu1 %727  ;;  %v4734_v21 = vpop.permute.xlu0 %722 }
  0xc1   : > { %7807 = vst [vmem:[#allocation19_spill] sm:$0xff] %v4732_v20 }
  0xc2   : > { %7808 = vst [vmem:[#allocation20_spill] sm:$0xff] %v4734_v21 }
  0xc3   : > { %1441 = vmatmul.bf16.gmra.mxu2 %v3599_v18  ;;  %v3920_v18 = vld [vmem:[%s7655_s1 + $0x44] sm:$0xf] }
  0xc4   : > { %1610 = vmatmul.bf16.gmra.mxu3 %v3603_v23  ;;  %v3624_v23 = vld [vmem:[%s7655_s1 + $0x48] sm:$0xf0] }
  0xc5   : > { %v3627_v60 = vor.u32 %v3920_v18, %v3624_v23 }
  0xc6   : > { %v1224_v25 = vpop.f32.mrf.mxu2 }
  0xc7   : > { %v1393_v26 = vpop.f32.mrf.mxu3  ;;  %1287 = vmatmul.bf16.gmra.mxu1 %v3627_v60 }
  0xc8   : > { %v4738_v30 = vpop.permute.xlu1 %702  ;;  %v4747_v50 = vpop.permute.xlu0 %717 }
  0xc9   : > { %7810 = vst [vmem:[#allocation22_spill] sm:$0xff] %v4738_v30  ;;  %v1225_v49 = vadd.f32 %v1224_v25, %v4738_v30 }
  0xca   : > { %7811 = vst [vmem:[#allocation23_spill] sm:$0xff] %v4747_v50 }
  0xcb   : > { %v4755_v48 = vadd.f32 %v1393_v26, %v1225_v49 }
  0xce   : > { %v1226_v61 = vpop.f32.mrf.mxu2 }
  0xcf   : > { %v1227_v25 = vadd.f32 %v1226_v61, %v4757_v54  ;;  %v1395_v30 = vpop.f32.mrf.mxu3 }
  0xd0   : > { %v4760_v41 = vpop.permute.xlu1 %697  ;;  %v4763_v52 = vpop.permute.xlu0 %692 }
  0xd1   : > { %7813 = vst [vmem:[#allocation25_spill] sm:$0xff] %v4760_v41  ;;  %v1222_v42 = vadd.f32 %v1221_v10, %v4760_v41  ;;  %v4765_v35 = vadd.f32 %v1395_v30, %v1227_v25  ;;  %v1220_v18 = vadd.f32 %v1219_v56, %v4763_v52  ;;  %v3630_v56 = vld [vmem:[%s7655_s1 + $0x50] sm:$0xf] }
  0xd2   : > { %7814 = vst [vmem:[#allocation26_spill] sm:$0xff] %v4763_v52 }
  0xd3   : > { %v4768_v23 = vadd.f32 %v1390_v11, %v1222_v42  ;;  %1446 = vmatmul.bf16.gmra.mxu2 %v3607_v44  ;;  %v4772_v49 = vadd.f32 %v1388_v57, %v1220_v18  ;;  %v3923_v44 = vld [vmem:[%s7655_s1 + $0x54] sm:$0xf0]  ;;  %v3632_v57 = vld [vmem:[%s7655_s1 + $0x58] sm:$0xf0] }
  0xd4   : > { %1615 = vmatmul.bf16.gmra.mxu3 %v3611_v51  ;;  %v3631_v11 = vor.u32 %v3923_v44, %v3630_v56  ;;  %v3922_v51 = vld [vmem:[%s7655_s1 + $0x54] sm:$0xf] }
  0xd6   : > { %v1229_v54 = vpop.f32.mrf.mxu2  ;;  %1123 = vmatmul.bf16.gmra.mxu0 %v3631_v11 }
  0xd7   : > { %v1230_v10 = vadd.f32 %v1229_v54, %v4736_v24  ;;  %v1398_v41 = vpop.f32.mrf.mxu3  ;;  %v3635_v54 = vor.u32 %v3922_v51, %v3632_v57  ;;  %v3638_v51 = vld [vmem:[%s7655_s1 + $0x60] sm:$0xf]  ;;  %v3925_v57 = vld [vmem:[%s7655_s1 + $0x64] sm:$0xf0] }
  0xd9   : > { %v4783_v30 = vadd.f32 %v1398_v41, %v1230_v10  ;;  %1292 = vmatmul.bf16.gmra.mxu1 %v3635_v54 }
  0xde   : > { %v1231_v25 = vpop.f32.mrf.mxu2 }
  0xdf   : > { %v1232_v42 = vadd.f32 %v1231_v25, %v4747_v50  ;;  %v1400_v18 = vpop.f32.mrf.mxu3  ;;  %v3639_v25 = vor.u32 %v3925_v57, %v3638_v51 }
  0xe1   : > { %v4792_v61 = vadd.f32 %v1400_v18, %v1232_v42 }
  0xe3   : > { %1451 = vmatmul.bf16.gmra.mxu2 %v3615_v1  ;;  %v3924_v1 = vld [vmem:[%s7655_s1 + $0x64] sm:$0xf] }
  0xe4   : > { %1620 = vmatmul.bf16.gmra.mxu3 %v3619_v8  ;;  %v3640_v8 = vld [vmem:[%s7655_s1 + $0x68] sm:$0xf0] }
  0xe5   : > { %v3643_v18 = vor.u32 %v3924_v1, %v3640_v8  ;;  %v3646_v1 = vld [vmem:[%s7655_s1 + $0x70] sm:$0xf]  ;;  %v3927_v8 = vld [vmem:[%s7655_s1 + $0x74] sm:$0xf0] }
  0xe6   : > { %v1234_v10 = vpop.f32.mrf.mxu2  ;;  %1128 = vmatmul.bf16.gmra.mxu0 %v3639_v25 }
  0xe7   : > { %v1235_v56 = vadd.f32 %v1234_v10, %v4734_v21  ;;  %v1403_v44 = vpop.f32.mrf.mxu3 }
  0xe9   : > { %v4803_v42 = vadd.f32 %v1403_v44, %v1235_v56  ;;  %1297 = vmatmul.bf16.gmra.mxu1 %v3643_v18 }
  0xee   : > { %v1236_v10 = vpop.f32.mrf.mxu2 }
  0xef   : > { %v1237_v26 = vadd.f32 %v1236_v10, %v4732_v20  ;;  %v1405_v41 = vpop.f32.mrf.mxu3  ;;  %v3647_v10 = vor.u32 %v3927_v8, %v3646_v1  ;;  %v3929_v8 = vld [vmem:[%s7655_s1 + $0x84] sm:$0xf0]  ;;  %v4853_v20 = vpop.f32.mrf.mxu1 }
  0xf0   : > { %7816 = vst [vmem:[#allocation28_spill] sm:$0xff] %v4853_v20 }
  0xf1   : > { %v4812_v50 = vadd.f32 %v1405_v41, %v1237_v26 }
  0xf3   : > { %1456 = vmatmul.bf16.gmra.mxu2 %v3623_v59  ;;  %v3926_v59 = vld [vmem:[%s7655_s1 + $0x74] sm:$0xf] }
  0xf4   : > { %1625 = vmatmul.bf16.gmra.mxu3 %v3627_v60  ;;  %v3648_v60 = vld [vmem:[%s7655_s1 + $0x78] sm:$0xf0] }
  0xf5   : > { %v3651_v41 = vor.u32 %v3926_v59, %v3648_v60  ;;  %v4845_v59 = vpop.f32.mrf.mxu0 }
  0xf6   : > { %v1239_v44 = vpop.f32.mrf.mxu2  ;;  %1133 = vmatmul.bf16.gmra.mxu0 %v3647_v10  ;;  %7815 = vst [vmem:[#allocation27_spill] sm:$0xff] %v4845_v59  ;;  %v3662_v59 = vld [vmem:[%s7655_s1 + $0x90] sm:$0xf] }
  0xf7   : > { %v1240_v51 = vadd.f32 %v1239_v44, %v4714_v58  ;;  %v1408_v57 = vpop.f32.mrf.mxu3  ;;  %v4857_v32 = vpop.f32.mrf.mxu1 }
  0xf8   : > { %7818 = vst [vmem:[#allocation30_spill] sm:$0xff] %v4857_v32  ;;  %v3930_v32 = vld [vmem:[%s7655_s1 + $0x94] sm:$0xf] }
  0xf9   : > { %v4823_v26 = vadd.f32 %v1408_v57, %v1240_v51  ;;  %1302 = vmatmul.bf16.gmra.mxu1 %v3651_v41  ;;  %v3654_v57 = vld [vmem:[%s7655_s1 + $0x80] sm:$0xf] }
  0xfa   : > { %v3655_v60 = vor.u32 %v3929_v8, %v3654_v57 }
  0xfd   : > { %v4855_v52 = vpop.f32.mrf.mxu0 }
  0xfe   : > { %v4831_v44 = vpop.f32.mrf.mxu2  ;;  %7817 = vst [vmem:[#allocation29_spill] sm:$0xff] %v4855_v52 }
  0xff   : > { %v4833_v56 = vpop.f32.mrf.mxu3 }
 0x103   : > { %1461 = vmatmul.bf16.gmra.mxu2 %v3631_v11  ;;  %v3928_v11 = vld [vmem:[%s7655_s1 + $0x84] sm:$0xf] }
 0x104   : > { %1630 = vmatmul.bf16.gmra.mxu3 %v3635_v54  ;;  %v3656_v54 = vld [vmem:[%s7655_s1 + $0x88] sm:$0xf0] }
 0x105   : > { %v3659_v58 = vor.u32 %v3928_v11, %v3656_v54  ;;  %v3931_v11 = vld [vmem:[%s7655_s1 + $0x94] sm:$0xf0]  ;;  %v4865_v54 = vpop.f32.mrf.mxu0 }
 0x106   : > { %v4835_v1 = vpop.f32.mrf.mxu2  ;;  %1138 = vmatmul.bf16.gmra.mxu0 %v3655_v60  ;;  %7819 = vst [vmem:[#allocation31_spill] sm:$0xff] %v4865_v54  ;;  %v4867_v20 = vor.u32 %v3931_v11, %v3662_v59 }
 0x107   : > { %v4837_v51 = vpop.f32.mrf.mxu3 }
 0x109   : > { %1307 = vmatmul.bf16.gmra.mxu1 %v3659_v58 }
 0x10d   : > { %v4881_v59 = vpop.f32.mrf.mxu0 }
 0x10e   : > { %v1246_v21 = vpop.f32.mrf.mxu2  ;;  %7821 = vst [vmem:[#allocation33_spill] sm:$0xff] %v4881_v59 }
 0x10f   : > { %v1415_v24 = vpop.f32.mrf.mxu3 }
 0x113   : > { %1466 = vmatmul.bf16.gmra.mxu2 %v3639_v25  ;;  %v3664_v25 = vld [vmem:[%s7655_s1 + $0x98] sm:$0xf0] }
 0x114   : > { %1635 = vmatmul.bf16.gmra.mxu3 %v3643_v18  ;;  %v4875_v18 = vpop.f32.mrf.mxu1  ;;  %v4877_v52 = vor.u32 %v3930_v32, %v3664_v25  ;;  %v3933_v32 = vld [vmem:[%s7655_s1 + $0xa4] sm:$0xf0] }
 0x115   : > { %7820 = vst [vmem:[#allocation32_spill] sm:$0xff] %v4875_v18  ;;  %v3670_v18 = vld [vmem:[%s7655_s1 + $0xa0] sm:$0xf]  ;;  %v4891_v25 = vpop.f32.mrf.mxu0 }
 0x116   : > { %v1249_v57 = vpop.f32.mrf.mxu2  ;;  %1143 = vmatmul.bf16.gmra.mxu0 %v4867_v20  ;;  %7823 = vst [vmem:[#allocation35_spill] sm:$0xff] %v4891_v25  ;;  %v4893_v63 = vor.u32 %v3933_v32, %v3670_v18 }
 0x117   : > { %v1418_v8 = vpop.f32.mrf.mxu3  ;;  %v1250_v14 = vadd.f32 %v1249_v57, %v4691_v37  ;;  %v1242_v57 = vadd.f32 %v4831_v44, %v4724_v0 }
 0x119   : > { %1312 = vmatmul.bf16.gmra.mxu1 %v4877_v52 }
 0x11c   : > { %v4883_v11 = vpop.f32.mrf.mxu1 }
 0x11d   : > { %7822 = vst [vmem:[#allocation34_spill] sm:$0xff] %v4883_v11  ;;  %v3932_v11 = vld [vmem:[%s7655_s1 + $0xa4] sm:$0xf]  ;;  %v4910_v19 = vpop.f32.mrf.mxu0 }
 0x11e   : > { %v1251_v43 = vpop.f32.mrf.mxu2  ;;  %7825 = vst [vmem:[#allocation37_spill] sm:$0xff] %v4910_v19 }
 0x11f   : > { %v1420_v54 = vpop.f32.mrf.mxu3  ;;  %v1252_v32 = vadd.f32 %v1251_v43, %v4689_v36  ;;  %v1419_v43 = vadd.f32 %v1418_v8, %v1250_v14 }
 0x121   : > { %v1421_v29 = vadd.f32 %v1420_v54, %v1252_v32 }
 0x123   : > { %1471 = vmatmul.bf16.gmra.mxu2 %v3647_v10  ;;  %v3672_v10 = vld [vmem:[%s7655_s1 + $0xa8] sm:$0xf0] }
 0x124   : > { %1640 = vmatmul.bf16.gmra.mxu3 %v3651_v41  ;;  %v4901_v41 = vpop.f32.mrf.mxu1  ;;  %v4903_v59 = vor.u32 %v3932_v11, %v3672_v10  ;;  %v1247_v10 = vadd.f32 %v1246_v21, %v4709_v53  ;;  %v3678_v21 = vld [vmem:[%s7655_s1 + $0xb0] sm:$0xf] }
 0x125   : > { %7824 = vst [vmem:[#allocation36_spill] sm:$0xff] %v4901_v41 }
 0x126   : > { %v1254_v22 = vpop.f32.mrf.mxu2  ;;  %1148 = vmatmul.bf16.gmra.mxu0 %v4893_v63 }
 0x127   : > { %v1423_v5 = vpop.f32.mrf.mxu3  ;;  %v1255_v25 = vadd.f32 %v1254_v22, %v4683_v34  ;;  %v1245_v22 = vadd.f32 %v4835_v1, %v4711_v55 }
 0x129   : > { %1317 = vmatmul.bf16.gmra.mxu1 %v4903_v59  ;;  %v1424_v17 = vadd.f32 %v1423_v5, %v1255_v25  ;;  %v1416_v5 = vadd.f32 %v1415_v24, %v1247_v10  ;;  %v1414_v14 = vadd.f32 %v4837_v51, %v1245_v22  ;;  %v3934_v24 = vld [vmem:[%s7655_s1 + $0xb4] sm:$0xf] }
 0x12b   : > { %v1792_v8 = vpack.c.bf16 %v1416_v5, %v1414_v14  ;;  %v7845_v14 = vpack.c.bf16 %v4768_v23, %v4772_v49 }
 0x12c   : > { %v4913_v11 = vpop.f32.mrf.mxu1 }
 0x12d   : > { %7826 = vst [vmem:[#allocation38_spill] sm:$0xff] %v4913_v11 }
 0x12e   : > { %v1256_v18 = vpop.f32.mrf.mxu2 }
 0x12f   : > { %v1257_v7 = vadd.f32 %v1256_v18, %v4679_v31  ;;  %v1425_v9 = vpop.f32.mrf.mxu3 }
 0x131   : > { %v1426_v41 = vadd.f32 %v1425_v9, %v1257_v7  ;;  %v1794_v9 = vpack.c.bf16 %v1421_v29, %v1419_v43  ;;  %v3680_v29 = vld [vmem:[%s7655_s1 + $0xb8] sm:$0xf0]  ;;  %v3937_v43 = vld [vmem:[%s7655_s1 + $0xc4] sm:$0xf0] }
 0x132   : > { %v3683_v1 = vor.u32 %v3934_v24, %v3680_v29 }
 0x133   : > { %1476 = vmatmul.bf16.gmra.mxu2 %v3655_v60  ;;  %v1796_v46 = vpack.c.bf16 %v1426_v41, %v1424_v17  ;;  %v3935_v17 = vld [vmem:[%s7655_s1 + $0xb4] sm:$0xf0]  ;;  %v1411_v60 = vadd.f32 %v4833_v56, %v1242_v57  ;;  %v7835_v56 = vpack.c.bf16 %v4812_v50, %v4803_v42  ;;  %v3936_v50 = vld [vmem:[%s7655_s1 + $0xc4] sm:$0xf]  ;;  %v3688_v42 = vld [vmem:[%s7655_s1 + $0xc8] sm:$0xf0] }
 0x134   : > { %1645 = vmatmul.bf16.gmra.mxu3 %v3659_v58  ;;  %v4930_v58 = vpop.f32.mrf.mxu0  ;;  %v4939_v44 = vpop.f32.mrf.mxu1 }
 0x135   : > { %1822 = vmatpush.bf16.msrb.mxu0 %v1796_v46  ;;  %7829 = vst [vmem:[#allocation41_spill] sm:$0xff] %v4930_v58  ;;  %v3679_v46 = vor.u32 %v3935_v17, %v3678_v21  ;;  %v1790_v25 = vpack.c.bf16 %v1411_v60, %v4823_v26  ;;  %v3686_v26 = vld [vmem:[%s7655_s1 + $0xc0] sm:$0xf]  ;;  %v7841_v21 = vpack.c.bf16 %v4765_v35, %v4755_v48  ;;  %v3694_v48 = vld [vmem:[%s7655_s1 + $0xd0] sm:$0xf] }
 0x136   : > { %v4918_v18 = vpop.f32.mrf.mxu2  ;;  %7830 = vst [vmem:[#allocation42_spill] sm:$0xff] %v4939_v44  ;;  %v3939_v60 = vld [vmem:[%s7655_s1 + $0xd4] sm:$0xf0] }
 0x137   : > { %7827 = vst [vmem:[#allocation39_spill] sm:$0xff] %v4918_v18  ;;  %v4922_v7 = vpop.f32.mrf.mxu3  ;;  %1153 = vmatmul.bf16.gmra.mxu0 %v3679_v46  ;;  %v3695_v49 = vor.u32 %v3939_v60, %v3694_v48 }
 0x138   : > { %7828 = vst [vmem:[#allocation40_spill] sm:$0xff] %v4922_v7 }
 0x139   : > { %1823 = vmatpush.bf16.msrb.mxu0 %v1794_v9  ;;  %1322 = vmatmul.bf16.gmra.mxu1 %v3683_v1  ;;  %v3691_v9 = vor.u32 %v3936_v50, %v3688_v42 }
 0x13c   : > { %v4947_v41 = vpop.f32.mrf.mxu0  ;;  %v4949_v32 = vpop.f32.mrf.mxu1 }
 0x13d   : > { %1824 = vmatpush.bf16.msrb.mxu0 %v1792_v8  ;;  %7833 = vst [vmem:[#allocation45_spill] sm:$0xff] %v4947_v41 }
 0x13e   : > { %v4942_v54 = vpop.f32.mrf.mxu2  ;;  %7834 = vst [vmem:[#allocation46_spill] sm:$0xff] %v4949_v32 }
 0x13f   : > { %7831 = vst [vmem:[#allocation43_spill] sm:$0xff] %v4942_v54  ;;  %v4944_v51 = vpop.f32.mrf.mxu3 }
 0x140   : > { %7832 = vst [vmem:[#allocation44_spill] sm:$0xff] %v4944_v51 }
 0x141   : > { %1825 = vmatpush.bf16.msrb.mxu0 %v1790_v25 }
 0x143   : > { %1481 = vmatmul.bf16.gmra.mxu2 %v4867_v20  ;;  %v3687_v20 = vor.u32 %v3937_v43, %v3686_v26 }
 0x144   : > { %1650 = vmatmul.bf16.gmra.mxu3 %v4877_v52  ;;  %v4966_v57 = vpop.f32.mrf.mxu0  ;;  %v7839_v52 = vpack.c.bf16 %v4792_v61, %v4783_v30  ;;  %v4977_v5 = vpop.f32.mrf.mxu1 }
 0x145   : > { %1826 = vmatpush.bf16.msrb.mxu0 %v7835_v56  ;;  %7838 = vst [vmem:[#allocation49_spill] sm:$0xff] %v4966_v57 }
 0x146   : > { %v4956_v10 = vpop.f32.mrf.mxu2  ;;  %7840 = vst [vmem:[#allocation50_spill] sm:$0xff] %v4977_v5 }
 0x147   : > { %7836 = vst [vmem:[#allocation47_spill] sm:$0xff] %v4956_v10  ;;  %v4958_v22 = vpop.f32.mrf.mxu3  ;;  %1158 = vmatmul.bf16.gmra.mxu0 %v3687_v20 }
 0x148   : > { %7837 = vst [vmem:[#allocation48_spill] sm:$0xff] %v4958_v22 }
 0x149   : > { %1827 = vmatpush.bf16.msrb.mxu0 %v7839_v52  ;;  %1327 = vmatmul.bf16.gmra.mxu1 %v3691_v9 }
 0x14c   : > { %v4986_v30 = vpop.f32.mrf.mxu0  ;;  %v4991_v24 = vpop.f32.mrf.mxu1 }
 0x14d   : > { %1828 = vmatpush.bf16.msrb.mxu0 %v7841_v21  ;;  %7844 = vst [vmem:[#allocation53_spill] sm:$0xff] %v4986_v30  ;;  %v3702_v21 = vld [vmem:[%s7655_s1 + $0xe0] sm:$0xf] }
 0x14e   : > { %v4982_v17 = vpop.f32.mrf.mxu2  ;;  %7846 = vst [vmem:[#allocation54_spill] sm:$0xff] %v4991_v24 }
 0x14f   : > { %7842 = vst [vmem:[#allocation51_spill] sm:$0xff] %v4982_v17  ;;  %v4984_v61 = vpop.f32.mrf.mxu3 }
 0x150   : > { %7843 = vst [vmem:[#allocation52_spill] sm:$0xff] %v4984_v61 }
 0x151   : > { %1829 = vmatpush.bf16.msrb.mxu0 %v7845_v14  ;;  %v3941_v14 = vld [vmem:[%s7655_s1 + $0xe4] sm:$0xf0] }
 0x152   : > { %v3703_v60 = vor.u32 %v3941_v14, %v3702_v21 }
 0x153   : > { %1486 = vmatmul.bf16.gmra.mxu2 %v4893_v63  ;;  %v3938_v63 = vld [vmem:[%s7655_s1 + $0xd4] sm:$0xf] }
 0x154   : > { %1655 = vmatmul.bf16.gmra.mxu3 %v4903_v59  ;;  %v5005_v23 = vpop.f32.mrf.mxu0  ;;  %v3696_v59 = vld [vmem:[%s7655_s1 + $0xd8] sm:$0xf0] }
 0x155   : > { %7849 = vst [vmem:[#allocation57_spill] sm:$0xff] %v5005_v23  ;;  %v3699_v25 = vor.u32 %v3938_v63, %v3696_v59 }
 0x156   : > { %v4995_v29 = vpop.f32.mrf.mxu2  ;;  %v5013_v8 = vpop.f32.mrf.mxu1 }
 0x157   : > { %7847 = vst [vmem:[#allocation55_spill] sm:$0xff] %v4995_v29  ;;  %v4997_v35 = vpop.f32.mrf.mxu3  ;;  %1163 = vmatmul.bf16.gmra.mxu0 %v3695_v49 }
 0x158   : > { %7848 = vst [vmem:[#allocation56_spill] sm:$0xff] %v4997_v35 }
 0x159   : > { %7850 = vst [vmem:[#allocation58_spill] sm:$0xff] %v5013_v8  ;;  %1332 = vmatmul.bf16.gmra.mxu1 %v3699_v25 }
 0x15c   : > { %v5019_v43 = vpop.f32.mrf.mxu0 }
 0x15d   : > { %7853 = vst [vmem:[#allocation61_spill] sm:$0xff] %v5019_v43 }
 0x15e   : > { %v5015_v56 = vpop.f32.mrf.mxu2  ;;  %v5021_v52 = vpop.f32.mrf.mxu1 }
 0x15f   : > { %7851 = vst [vmem:[#allocation59_spill] sm:$0xff] %v5015_v56  ;;  %v5017_v26 = vpop.f32.mrf.mxu3 }
 0x160   : > { %7852 = vst [vmem:[#allocation60_spill] sm:$0xff] %v5017_v26 }
 0x161   : > { %7854 = vst [vmem:[#allocation62_spill] sm:$0xff] %v5021_v52 }
 0x163   : > { %1491 = vmatmul.bf16.gmra.mxu2 %v3679_v46  ;;  %v3940_v46 = vld [vmem:[%s7655_s1 + $0xe4] sm:$0xf] }
 0x164   : > { %1660 = vmatmul.bf16.gmra.mxu3 %v3683_v1  ;;  %v5033_v48 = vpop.f32.mrf.mxu0  ;;  %v3704_v1 = vld [vmem:[%s7655_s1 + $0xe8] sm:$0xf0] }
 0x165   : > { %7857 = vst [vmem:[#allocation65_spill] sm:$0xff] %v5033_v48  ;;  %v3707_v59 = vor.u32 %v3940_v46, %v3704_v1  ;;  %v3710_v46 = vld [vmem:[%s7655_s1 + $0xf0] sm:$0xf]  ;;  %v3943_v1 = vld [vmem:[%s7655_s1 + $0xf4] sm:$0xf0] }
 0x166   : > { %v5023_v50 = vpop.f32.mrf.mxu2  ;;  %v5041_v63 = vpop.f32.mrf.mxu1  ;;  %v3711_v23 = vor.u32 %v3943_v1, %v3710_v46 }
 0x167   : > { %7855 = vst [vmem:[#allocation63_spill] sm:$0xff] %v5023_v50  ;;  %v5025_v42 = vpop.f32.mrf.mxu3  ;;  %1168 = vmatmul.bf16.gmra.mxu0 %v3703_v60 }
 0x168   : > { %7856 = vst [vmem:[#allocation64_spill] sm:$0xff] %v5025_v42 }
 0x169   : > { %7858 = vst [vmem:[#allocation66_spill] sm:$0xff] %v5041_v63  ;;  %1337 = vmatmul.bf16.gmra.mxu1 %v3707_v59 }
 0x16c   : > { %v5047_v43 = vpop.f32.mrf.mxu0 }
 0x16d   : > { %7861 = vst [vmem:[#allocation69_spill] sm:$0xff] %v5047_v43 }
 0x16e   : > { %v5043_v52 = vpop.f32.mrf.mxu2  ;;  %v5049_v21 = vpop.f32.mrf.mxu1 }
 0x16f   : > { %7859 = vst [vmem:[#allocation67_spill] sm:$0xff] %v5043_v52  ;;  %v5045_v8 = vpop.f32.mrf.mxu3 }
 0x170   : > { %7860 = vst [vmem:[#allocation68_spill] sm:$0xff] %v5045_v8 }
 0x171   : > { %7862 = vst [vmem:[#allocation70_spill] sm:$0xff] %v5049_v21 }
 0x173   : > { %1496 = vmatmul.bf16.gmra.mxu2 %v3687_v20  ;;  %v3942_v20 = vld [vmem:[%s7655_s1 + $0xf4] sm:$0xf] }
 0x174   : > { %1665 = vmatmul.bf16.gmra.mxu3 %v3691_v9  ;;  %v5061_v63 = vpop.f32.mrf.mxu0  ;;  %v3712_v9 = vld [vmem:[%s7655_s1 + $0xf8] sm:$0xf0] }
 0x175   : > { %7865 = vst [vmem:[#allocation73_spill] sm:$0xff] %v5061_v63  ;;  %v3715_v43 = vor.u32 %v3942_v20, %v3712_v9  ;;  %v3718_v20 = vld [vmem:[%s7655_s1 + $0x100] sm:$0xf]  ;;  %v3945_v9 = vld [vmem:[%s7655_s1 + $0x104] sm:$0xf0] }
 0x176   : > { %v5051_v14 = vpop.f32.mrf.mxu2  ;;  %v5069_v21 = vpop.f32.mrf.mxu1 }
 0x177   : > { %7863 = vst [vmem:[#allocation71_spill] sm:$0xff] %v5051_v14  ;;  %v5053_v48 = vpop.f32.mrf.mxu3  ;;  %1173 = vmatmul.bf16.gmra.mxu0 %v3711_v23 }
 0x178   : > { %7864 = vst [vmem:[#allocation72_spill] sm:$0xff] %v5053_v48 }
 0x179   : > { %7866 = vst [vmem:[#allocation74_spill] sm:$0xff] %v5069_v21  ;;  %1342 = vmatmul.bf16.gmra.mxu1 %v3715_v43 }
 0x17c   : > { %v5075_v5 = vpop.f32.mrf.mxu0 }
 0x17d   : > { %7869 = vst [vmem:[#allocation77_spill] sm:$0xff] %v5075_v5 }
 0x17e   : > { %v5071_v24 = vpop.f32.mrf.mxu2  ;;  %v5077_v46 = vpop.f32.mrf.mxu1 }
 0x17f   : > { %7867 = vst [vmem:[#allocation75_spill] sm:$0xff] %v5071_v24  ;;  %v5073_v48 = vpop.f32.mrf.mxu3 }
 0x180   : > { %7868 = vst [vmem:[#allocation76_spill] sm:$0xff] %v5073_v48  ;;  %v3719_v48 = vor.u32 %v3945_v9, %v3718_v20 }
 0x181   : > { %7870 = vst [vmem:[#allocation78_spill] sm:$0xff] %v5077_v46 }
 0x183   : > { %1501 = vmatmul.bf16.gmra.mxu2 %v3695_v49  ;;  %v3944_v49 = vld [vmem:[%s7655_s1 + $0x104] sm:$0xf] }
 0x184   : > { %1670 = vmatmul.bf16.gmra.mxu3 %v3699_v25  ;;  %v5089_v21 = vpop.f32.mrf.mxu0  ;;  %v3720_v25 = vld [vmem:[%s7655_s1 + $0x108] sm:$0xf0] }
 0x185   : > { %7873 = vst [vmem:[#allocation81_spill] sm:$0xff] %v5089_v21  ;;  %v3723_v5 = vor.u32 %v3944_v49, %v3720_v25  ;;  %v3726_v49 = vld [vmem:[%s7655_s1 + $0x110] sm:$0xf]  ;;  %v3947_v25 = vld [vmem:[%s7655_s1 + $0x114] sm:$0xf0] }
 0x186   : > { %v5079_v1 = vpop.f32.mrf.mxu2  ;;  %v5097_v46 = vpop.f32.mrf.mxu1 }
 0x187   : > { %7871 = vst [vmem:[#allocation79_spill] sm:$0xff] %v5079_v1  ;;  %v5081_v63 = vpop.f32.mrf.mxu3  ;;  %1178 = vmatmul.bf16.gmra.mxu0 %v3719_v48 }
 0x188   : > { %7872 = vst [vmem:[#allocation80_spill] sm:$0xff] %v5081_v63 }
 0x189   : > { %7874 = vst [vmem:[#allocation82_spill] sm:$0xff] %v5097_v46  ;;  %1347 = vmatmul.bf16.gmra.mxu1 %v3723_v5 }
 0x18c   : > { %v5103_v24 = vpop.f32.mrf.mxu0 }
 0x18d   : > { %7877 = vst [vmem:[#allocation85_spill] sm:$0xff] %v5103_v24 }
 0x18e   : > { %v5099_v63 = vpop.f32.mrf.mxu2  ;;  %v5105_v20 = vpop.f32.mrf.mxu1 }
 0x18f   : > { %7875 = vst [vmem:[#allocation83_spill] sm:$0xff] %v5099_v63  ;;  %v5101_v1 = vpop.f32.mrf.mxu3 }
 0x190   : > { %7876 = vst [vmem:[#allocation84_spill] sm:$0xff] %v5101_v1  ;;  %v3727_v1 = vor.u32 %v3947_v25, %v3726_v49 }
 0x191   : > { %7878 = vst [vmem:[#allocation86_spill] sm:$0xff] %v5105_v20 }
 0x193   : > { %1506 = vmatmul.bf16.gmra.mxu2 %v3703_v60  ;;  %v3946_v60 = vld [vmem:[%s7655_s1 + $0x114] sm:$0xf] }
 0x194   : > { %1675 = vmatmul.bf16.gmra.mxu3 %v3707_v59  ;;  %v5117_v46 = vpop.f32.mrf.mxu0  ;;  %v3728_v59 = vld [vmem:[%s7655_s1 + $0x118] sm:$0xf0] }
 0x195   : > { %7881 = vst [vmem:[#allocation89_spill] sm:$0xff] %v5117_v46  ;;  %v3731_v24 = vor.u32 %v3946_v60, %v3728_v59  ;;  %v3734_v60 = vld [vmem:[%s7655_s1 + $0x120] sm:$0xf]  ;;  %v3949_v59 = vld [vmem:[%s7655_s1 + $0x124] sm:$0xf0] }
 0x196   : > { %v5107_v9 = vpop.f32.mrf.mxu2  ;;  %v5125_v20 = vpop.f32.mrf.mxu1 }
 0x197   : > { %7879 = vst [vmem:[#allocation87_spill] sm:$0xff] %v5107_v9  ;;  %v5109_v21 = vpop.f32.mrf.mxu3  ;;  %1183 = vmatmul.bf16.gmra.mxu0 %v3727_v1 }
 0x198   : > { %7880 = vst [vmem:[#allocation88_spill] sm:$0xff] %v5109_v21 }
 0x199   : > { %7882 = vst [vmem:[#allocation90_spill] sm:$0xff] %v5125_v20  ;;  %1352 = vmatmul.bf16.gmra.mxu1 %v3731_v24 }
 0x19c   : > { %v5131_v63 = vpop.f32.mrf.mxu0 }
 0x19d   : > { %7885 = vst [vmem:[#allocation93_spill] sm:$0xff] %v5131_v63 }
 0x19e   : > { %v5127_v21 = vpop.f32.mrf.mxu2  ;;  %v5133_v49 = vpop.f32.mrf.mxu1 }
 0x19f   : > { %7883 = vst [vmem:[#allocation91_spill] sm:$0xff] %v5127_v21  ;;  %v5129_v9 = vpop.f32.mrf.mxu3 }
 0x1a0   : > { %7884 = vst [vmem:[#allocation92_spill] sm:$0xff] %v5129_v9  ;;  %v3735_v9 = vor.u32 %v3949_v59, %v3734_v60 }
 0x1a1   : > { %7886 = vst [vmem:[#allocation94_spill] sm:$0xff] %v5133_v49 }
 0x1a3   : > { %1511 = vmatmul.bf16.gmra.mxu2 %v3711_v23  ;;  %v3948_v23 = vld [vmem:[%s7655_s1 + $0x124] sm:$0xf] }
 0x1a4   : > { %1680 = vmatmul.bf16.gmra.mxu3 %v3715_v43  ;;  %v5145_v20 = vpop.f32.mrf.mxu0  ;;  %v3736_v43 = vld [vmem:[%s7655_s1 + $0x128] sm:$0xf0] }
 0x1a5   : > { %7889 = vst [vmem:[#allocation97_spill] sm:$0xff] %v5145_v20  ;;  %v3739_v63 = vor.u32 %v3948_v23, %v3736_v43  ;;  %v3742_v23 = vld [vmem:[%s7655_s1 + $0x130] sm:$0xf]  ;;  %v3951_v43 = vld [vmem:[%s7655_s1 + $0x134] sm:$0xf0] }
 0x1a6   : > { %v5135_v25 = vpop.f32.mrf.mxu2  ;;  %v5153_v49 = vpop.f32.mrf.mxu1 }
 0x1a7   : > { %7887 = vst [vmem:[#allocation95_spill] sm:$0xff] %v5135_v25  ;;  %v5137_v46 = vpop.f32.mrf.mxu3  ;;  %1188 = vmatmul.bf16.gmra.mxu0 %v3735_v9 }
 0x1a8   : > { %7888 = vst [vmem:[#allocation96_spill] sm:$0xff] %v5137_v46 }
 0x1a9   : > { %7890 = vst [vmem:[#allocation98_spill] sm:$0xff] %v5153_v49  ;;  %1357 = vmatmul.bf16.gmra.mxu1 %v3739_v63 }
 0x1ac   : > { %v5159_v21 = vpop.f32.mrf.mxu0 }
 0x1ad   : > { %7893 = vst [vmem:[#allocation101_spill] sm:$0xff] %v5159_v21 }
 0x1ae   : > { %v5155_v46 = vpop.f32.mrf.mxu2  ;;  %v5161_v60 = vpop.f32.mrf.mxu1 }
 0x1af   : > { %7891 = vst [vmem:[#allocation99_spill] sm:$0xff] %v5155_v46  ;;  %v5157_v25 = vpop.f32.mrf.mxu3 }
 0x1b0   : > { %7892 = vst [vmem:[#allocation100_spill] sm:$0xff] %v5157_v25  ;;  %v3743_v25 = vor.u32 %v3951_v43, %v3742_v23 }
 0x1b1   : > { %7894 = vst [vmem:[#allocation102_spill] sm:$0xff] %v5161_v60 }
 0x1b3   : > { %1516 = vmatmul.bf16.gmra.mxu2 %v3719_v48  ;;  %v3950_v48 = vld [vmem:[%s7655_s1 + $0x134] sm:$0xf] }
 0x1b4   : > { %1685 = vmatmul.bf16.gmra.mxu3 %v3723_v5  ;;  %v5173_v49 = vpop.f32.mrf.mxu0  ;;  %v3744_v5 = vld [vmem:[%s7655_s1 + $0x138] sm:$0xf0] }
 0x1b5   : > { %7897 = vst [vmem:[#allocation105_spill] sm:$0xff] %v5173_v49  ;;  %v3747_v21 = vor.u32 %v3950_v48, %v3744_v5  ;;  %v3750_v48 = vld [vmem:[%s7655_s1 + $0x140] sm:$0xf]  ;;  %v3953_v5 = vld [vmem:[%s7655_s1 + $0x144] sm:$0xf0] }
 0x1b6   : > { %v5163_v59 = vpop.f32.mrf.mxu2  ;;  %v5181_v60 = vpop.f32.mrf.mxu1 }
 0x1b7   : > { %7895 = vst [vmem:[#allocation103_spill] sm:$0xff] %v5163_v59  ;;  %v5165_v20 = vpop.f32.mrf.mxu3  ;;  %1193 = vmatmul.bf16.gmra.mxu0 %v3743_v25 }
 0x1b8   : > { %7896 = vst [vmem:[#allocation104_spill] sm:$0xff] %v5165_v20 }
 0x1b9   : > { %7898 = vst [vmem:[#allocation106_spill] sm:$0xff] %v5181_v60  ;;  %1362 = vmatmul.bf16.gmra.mxu1 %v3747_v21 }
 0x1bc   : > { %v5187_v46 = vpop.f32.mrf.mxu0 }
 0x1bd   : > { %7901 = vst [vmem:[#allocation109_spill] sm:$0xff] %v5187_v46 }
 0x1be   : > { %v5183_v20 = vpop.f32.mrf.mxu2  ;;  %v5189_v23 = vpop.f32.mrf.mxu1 }
 0x1bf   : > { %7899 = vst [vmem:[#allocation107_spill] sm:$0xff] %v5183_v20  ;;  %v5185_v59 = vpop.f32.mrf.mxu3 }
 0x1c0   : > { %7900 = vst [vmem:[#allocation108_spill] sm:$0xff] %v5185_v59  ;;  %v3751_v59 = vor.u32 %v3953_v5, %v3750_v48 }
 0x1c1   : > { %7902 = vst [vmem:[#allocation110_spill] sm:$0xff] %v5189_v23 }
 0x1c3   : > { %1521 = vmatmul.bf16.gmra.mxu2 %v3727_v1  ;;  %v3952_v1 = vld [vmem:[%s7655_s1 + $0x144] sm:$0xf] }
 0x1c4   : > { %1690 = vmatmul.bf16.gmra.mxu3 %v3731_v24  ;;  %v5201_v60 = vpop.f32.mrf.mxu0  ;;  %v3752_v24 = vld [vmem:[%s7655_s1 + $0x148] sm:$0xf0] }
 0x1c5   : > { %7905 = vst [vmem:[#allocation113_spill] sm:$0xff] %v5201_v60  ;;  %v3755_v46 = vor.u32 %v3952_v1, %v3752_v24  ;;  %v3758_v1 = vld [vmem:[%s7655_s1 + $0x150] sm:$0xf]  ;;  %v3955_v24 = vld [vmem:[%s7655_s1 + $0x154] sm:$0xf0] }
 0x1c6   : > { %v5191_v43 = vpop.f32.mrf.mxu2  ;;  %v5209_v23 = vpop.f32.mrf.mxu1 }
 0x1c7   : > { %7903 = vst [vmem:[#allocation111_spill] sm:$0xff] %v5191_v43  ;;  %v5193_v49 = vpop.f32.mrf.mxu3  ;;  %1198 = vmatmul.bf16.gmra.mxu0 %v3751_v59 }
 0x1c8   : > { %7904 = vst [vmem:[#allocation112_spill] sm:$0xff] %v5193_v49 }
 0x1c9   : > { %7906 = vst [vmem:[#allocation114_spill] sm:$0xff] %v5209_v23  ;;  %1367 = vmatmul.bf16.gmra.mxu1 %v3755_v46 }
 0x1cc   : > { %v5215_v20 = vpop.f32.mrf.mxu0 }
 0x1cd   : > { %7909 = vst [vmem:[#allocation117_spill] sm:$0xff] %v5215_v20 }
 0x1ce   : > { %v5211_v49 = vpop.f32.mrf.mxu2  ;;  %v5217_v48 = vpop.f32.mrf.mxu1 }
 0x1cf   : > { %7907 = vst [vmem:[#allocation115_spill] sm:$0xff] %v5211_v49  ;;  %v5213_v43 = vpop.f32.mrf.mxu3 }
 0x1d0   : > { %7908 = vst [vmem:[#allocation116_spill] sm:$0xff] %v5213_v43  ;;  %v3759_v43 = vor.u32 %v3955_v24, %v3758_v1 }
 0x1d1   : > { %7910 = vst [vmem:[#allocation118_spill] sm:$0xff] %v5217_v48 }
 0x1d3   : > { %1526 = vmatmul.bf16.gmra.mxu2 %v3735_v9  ;;  %v3954_v9 = vld [vmem:[%s7655_s1 + $0x154] sm:$0xf] }
 0x1d4   : > { %1695 = vmatmul.bf16.gmra.mxu3 %v3739_v63  ;;  %v5229_v23 = vpop.f32.mrf.mxu0  ;;  %v3760_v63 = vld [vmem:[%s7655_s1 + $0x158] sm:$0xf0] }
 0x1d5   : > { %7913 = vst [vmem:[#allocation121_spill] sm:$0xff] %v5229_v23  ;;  %v3763_v48 = vor.u32 %v3954_v9, %v3760_v63  ;;  %v3766_v9 = vld [vmem:[%s7655_s1 + $0x160] sm:$0xf]  ;;  %v3957_v63 = vld [vmem:[%s7655_s1 + $0x164] sm:$0xf0] }
 0x1d6   : > { %v5219_v5 = vpop.f32.mrf.mxu2  ;;  %v5237_v20 = vpop.f32.mrf.mxu1 }
 0x1d7   : > { %7911 = vst [vmem:[#allocation119_spill] sm:$0xff] %v5219_v5  ;;  %v5221_v60 = vpop.f32.mrf.mxu3  ;;  %1203 = vmatmul.bf16.gmra.mxu0 %v3759_v43 }
 0x1d8   : > { %7912 = vst [vmem:[#allocation120_spill] sm:$0xff] %v5221_v60 }
 0x1d9   : > { %7914 = vst [vmem:[#allocation122_spill] sm:$0xff] %v5237_v20  ;;  %1372 = vmatmul.bf16.gmra.mxu1 %v3763_v48  ;;  %v3767_v20 = vor.u32 %v3957_v63, %v3766_v9 }
 0x1dc   : > { %v5243_v49 = vpop.f32.mrf.mxu0 }
 0x1dd   : > { %7917 = vst [vmem:[#allocation125_spill] sm:$0xff] %v5243_v49 }
 0x1de   : > { %v5239_v60 = vpop.f32.mrf.mxu2  ;;  %v5245_v1 = vpop.f32.mrf.mxu1 }
 0x1df   : > { %7915 = vst [vmem:[#allocation123_spill] sm:$0xff] %v5239_v60  ;;  %v5241_v5 = vpop.f32.mrf.mxu3 }
 0x1e0   : > { %7916 = vst [vmem:[#allocation124_spill] sm:$0xff] %v5241_v5 }
 0x1e1   : > { %7918 = vst [vmem:[#allocation126_spill] sm:$0xff] %v5245_v1 }
 0x1e3   : > { %1531 = vmatmul.bf16.gmra.mxu2 %v3743_v25  ;;  %v3956_v25 = vld [vmem:[%s7655_s1 + $0x164] sm:$0xf] }
 0x1e4   : > { %1700 = vmatmul.bf16.gmra.mxu3 %v3747_v21  ;;  %v3768_v21 = vld [vmem:[%s7655_s1 + $0x168] sm:$0xf0]  ;;  %v5263_v49 = vpop.f32.mrf.mxu0 }
 0x1e5   : > { %v3771_v1 = vor.u32 %v3956_v25, %v3768_v21  ;;  %7921 = vst [vmem:[#allocation129_spill] sm:$0xff] %v5263_v49  ;;  %v3774_v25 = vld [vmem:[%s7655_s1 + $0x170] sm:$0xf]  ;;  %v3959_v21 = vld [vmem:[%s7655_s1 + $0x174] sm:$0xf0] }
 0x1e6   : > { %v5247_v24 = vpop.f32.mrf.mxu2 }
 0x1e7   : > { %7919 = vst [vmem:[#allocation127_spill] sm:$0xff] %v5247_v24  ;;  %v5249_v23 = vpop.f32.mrf.mxu3  ;;  %1208 = vmatmul.bf16.gmra.mxu0 %v3767_v20  ;;  %v5267_v24 = vpop.f32.mrf.mxu1 }
 0x1e8   : > { %7920 = vst [vmem:[#allocation128_spill] sm:$0xff] %v5249_v23 }
 0x1e9   : > { %1377 = vmatmul.bf16.gmra.mxu1 %v3771_v1  ;;  %7923 = vst [vmem:[#allocation131_spill] sm:$0xff] %v5267_v24  ;;  %v3775_v24 = vor.u32 %v3959_v21, %v3774_v25 }
 0x1ec   : > { %v5271_v9 = vpop.f32.mrf.mxu0 }
 0x1ed   : > { %7925 = vst [vmem:[#allocation133_spill] sm:$0xff] %v5271_v9 }
 0x1ee   : > { %v5265_v23 = vpop.f32.mrf.mxu2 }
 0x1ef   : > { %7922 = vst [vmem:[#allocation130_spill] sm:$0xff] %v5265_v23  ;;  %v5269_v5 = vpop.f32.mrf.mxu3  ;;  %v5283_v49 = vpop.f32.mrf.mxu1 }
 0x1f0   : > { %7924 = vst [vmem:[#allocation132_spill] sm:$0xff] %v5269_v5 }
 0x1f1   : > { %7928 = vst [vmem:[#allocation136_spill] sm:$0xff] %v5283_v49 }
 0x1f3   : > { %1536 = vmatmul.bf16.gmra.mxu2 %v3751_v59  ;;  %v3776_v59 = vld [vmem:[%s7655_s1 + $0x178] sm:$0xf0] }
 0x1f4   : > { %1705 = vmatmul.bf16.gmra.mxu3 %v3755_v46  ;;  %v3958_v46 = vld [vmem:[%s7655_s1 + $0x174] sm:$0xf] }
 0x1f5   : > { %v3779_v9 = vor.u32 %v3958_v46, %v3776_v59 }
 0x1f6   : > { %v5273_v63 = vpop.f32.mrf.mxu2 }
 0x1f7   : > { %7926 = vst [vmem:[#allocation134_spill] sm:$0xff] %v5273_v63  ;;  %v5275_v60 = vpop.f32.mrf.mxu3  ;;  %1213 = vmatmul.bf16.gmra.mxu0 %v3775_v24  ;;  %v5293_v63 = vpop.f32.mrf.mxu0 }
 0x1f8   : > { %7927 = vst [vmem:[#allocation135_spill] sm:$0xff] %v5275_v60  ;;  %v5297_v23 = vpop.f32.mrf.mxu1 }
 0x1f9   : > { %1382 = vmatmul.bf16.gmra.mxu1 %v3779_v9  ;;  %7930 = vst [vmem:[#allocation138_spill] sm:$0xff] %v5293_v63 }
 0x1fa   : > { %7932 = vst [vmem:[#allocation140_spill] sm:$0xff] %v5297_v23 }
 0x1fe   : > { %v5291_v60 = vpop.f32.mrf.mxu2 }
 0x1ff   : > { %7929 = vst [vmem:[#allocation137_spill] sm:$0xff] %v5291_v60  ;;  %v5295_v5 = vpop.f32.mrf.mxu3  ;;  %v5303_v49 = vpop.f32.mrf.mxu0 }
 0x200   : > { %7931 = vst [vmem:[#allocation139_spill] sm:$0xff] %v5295_v5  ;;  %v5305_v30 = vpop.f32.mrf.mxu1 }
 0x201   : > { %7935 = vst [vmem:[#allocation143_spill] sm:$0xff] %v5303_v49 }
 0x202   : > { %7936 = vst [vmem:[#allocation144_spill] sm:$0xff] %v5305_v30 }
 0x203   : > { %1541 = vmatmul.bf16.gmra.mxu2 %v3759_v43 }
 0x204   : > { %1710 = vmatmul.bf16.gmra.mxu3 %v3763_v48 }
 0x206   : > { %v5299_v25 = vpop.f32.mrf.mxu2 }
 0x207   : > { %7933 = vst [vmem:[#allocation141_spill] sm:$0xff] %v5299_v25  ;;  %v5301_v21 = vpop.f32.mrf.mxu3  ;;  %v1179_v60 = vpop.f32.mrf.mxu0 }
 0x208   : > { %7934 = vst [vmem:[#allocation142_spill] sm:$0xff] %v5301_v21  ;;  %v1348_v23 = vpop.f32.mrf.mxu1 }
 0x20e   : > { %v5307_v46 = vpop.f32.mrf.mxu2 }
 0x20f   : > { %7937 = vst [vmem:[#allocation145_spill] sm:$0xff] %v5307_v46  ;;  %v5309_v59 = vpop.f32.mrf.mxu3  ;;  %v1181_v48 = vpop.f32.mrf.mxu0 }
 0x210   : > { %7938 = vst [vmem:[#allocation146_spill] sm:$0xff] %v5309_v59  ;;  %v1350_v49 = vpop.f32.mrf.mxu1 }
 0x213   : > { %1546 = vmatmul.bf16.gmra.mxu2 %v3767_v20 }
 0x214   : > { %1715 = vmatmul.bf16.gmra.mxu3 %v3771_v1 }
 0x216   : > { %v5311_v63 = vpop.f32.mrf.mxu2 }
 0x217   : > { %7939 = vst [vmem:[#allocation147_spill] sm:$0xff] %v5311_v63  ;;  %v5313_v43 = vpop.f32.mrf.mxu3  ;;  %v1184_v46 = vpop.f32.mrf.mxu0 }
 0x218   : > { %7940 = vst [vmem:[#allocation148_spill] sm:$0xff] %v5313_v43  ;;  %v1353_v20 = vpop.f32.mrf.mxu1 }
 0x21e   : > { %v5315_v25 = vpop.f32.mrf.mxu2 }
 0x21f   : > { %7941 = vst [vmem:[#allocation149_spill] sm:$0xff] %v5315_v25  ;;  %v5317_v21 = vpop.f32.mrf.mxu3  ;;  %v1186_v5 = vpop.f32.mrf.mxu0 }
 0x220   : > { %7942 = vst [vmem:[#allocation150_spill] sm:$0xff] %v5317_v21  ;;  %v1355_v43 = vpop.f32.mrf.mxu1 }
 0x223   : > { %1551 = vmatmul.bf16.gmra.mxu2 %v3775_v24  ;;  %v1180_v24 = vadd.f32 %v1179_v60, %v4579_v13 }
 0x224   : > { %1720 = vmatmul.bf16.gmra.mxu3 %v3779_v9  ;;  %v1182_v9 = vadd.f32 %v1181_v48, %v4606_v38 }
 0x225   : > { %v1349_v14 = vadd.f32 %v1348_v23, %v1180_v24  ;;  %v1187_v23 = vadd.f32 %v1186_v5, %v4597_v33 }
 0x226   : > { %v5319_v30 = vpop.f32.mrf.mxu2  ;;  %v1351_v57 = vadd.f32 %v1350_v49, %v1182_v9  ;;  %v1185_v49 = vadd.f32 %v1184_v46, %v4577_v12 }
 0x227   : > { %7943 = vst [vmem:[#allocation151_spill] sm:$0xff] %v5319_v30  ;;  %v5321_v59 = vpop.f32.mrf.mxu3  ;;  %v1189_v30 = vpop.f32.mrf.mxu0 }
 0x228   : > { %7944 = vst [vmem:[#allocation152_spill] sm:$0xff] %v5321_v59  ;;  %v1358_v8 = vpop.f32.mrf.mxu1 }
 0x22e   : > { %v5323_v1 = vpop.f32.mrf.mxu2 }
 0x22f   : > { %7945 = vst [vmem:[#allocation153_spill] sm:$0xff] %v5323_v1  ;;  %v5325_v63 = vpop.f32.mrf.mxu3  ;;  %v1191_v60 = vpop.f32.mrf.mxu0 }
 0x230   : > { %7946 = vst [vmem:[#allocation154_spill] sm:$0xff] %v5325_v63 }
 0x233   : > { %1556 = vmatmul.bf16.gmra.mxu2 %v4414_v3 }
 0x234   : > { %1725 = vmatmul.bf16.gmra.mxu3 %v4416_v4  ;;  %v1766_v4 = vpack.c.bf16 %v1351_v57, %v1349_v14 }
 0x236   : > { %v1517_v21 = vpop.f32.mrf.mxu2 }
 0x237   : > { %v1686_v25 = vpop.f32.mrf.mxu3  ;;  %v1518_v59 = vadd.f32 %v1517_v21, %v4579_v13  ;;  %v1360_v13 = vpop.f32.mrf.mxu1  ;;  %v1354_v21 = vadd.f32 %v1353_v20, %v1185_v49  ;;  %v1192_v20 = vadd.f32 %v1191_v60, %v4566_v6 }
 0x238   : > { %v1194_v57 = vpop.f32.mrf.mxu0 }
 0x239   : > { %v1687_v3 = vadd.f32 %v1686_v25, %v1518_v59  ;;  %v1356_v25 = vadd.f32 %v1355_v43, %v1187_v23  ;;  %v1190_v43 = vadd.f32 %v1189_v30, %v4544_v47  ;;  %v1361_v24 = vadd.f32 %v1360_v13, %v1192_v20 }
 0x23e   : > { %v1519_v1 = vpop.f32.mrf.mxu2 }
 0x23f   : > { %v1520_v63 = vadd.f32 %v1519_v1, %v4606_v38  ;;  %v1688_v32 = vpop.f32.mrf.mxu3 }
 0x241   : > { %v1689_v42 = vadd.f32 %v1688_v32, %v1520_v63  ;;  %v1768_v63 = vpack.c.bf16 %v1356_v25, %v1354_v21 }
 0x243   : > { %v1767_v44 = vpack.c.bf16 %v1689_v42, %v1687_v3  ;;  %1561 = vmatmul.bf16.gmra.mxu2 %v4450_v15 }
 0x244   : > { %1730 = vmatmul.bf16.gmra.mxu3 %v4452_v16 }
 0x245   : > { %1798 = vxpose.binary.xlu2.c.b16.start [1/16] %v1767_v44, %v1766_v4, 128  ;;  %v1363_v44 = vpop.f32.mrf.mxu1 }
 0x246   : > { %v1522_v48 = vpop.f32.mrf.mxu2 }
 0x247   : > { %v1691_v52 = vpop.f32.mrf.mxu3  ;;  %v1523_v38 = vadd.f32 %v1522_v48, %v4577_v12  ;;  %v1196_v12 = vpop.f32.mrf.mxu0 }
 0x249   : > { %v1692_v14 = vadd.f32 %v1691_v52, %v1523_v38  ;;  %v1359_v52 = vadd.f32 %v1358_v8, %v1190_v43  ;;  %v1197_v8 = vadd.f32 %v1196_v12, %v4636_v62  ;;  %v7949_v12 = vld [vmem:[#allocation11_spill] sm:$0xff] }
 0x24d   : > { %v1365_v1 = vpop.f32.mrf.mxu1 }
 0x24e   : > { %v1524_v32 = vpop.f32.mrf.mxu2  ;;  %v1366_v25 = vadd.f32 %v1365_v1, %v1197_v8  ;;  %v7953_v8 = vld [vmem:[#allocation9_spill] sm:$0xff] }
 0x24f   : > { %v1525_v42 = vadd.f32 %v1524_v32, %v4597_v33  ;;  %v1693_v15 = vpop.f32.mrf.mxu3  ;;  %v1199_v49 = vpop.f32.mrf.mxu0 }
 0x251   : > { %v1694_v16 = vadd.f32 %v1693_v15, %v1525_v42 }
 0x253   : > { %v1769_v59 = vpack.c.bf16 %v1694_v16, %v1692_v14  ;;  %1566 = vmatmul.bf16.gmra.mxu2 %v4486_v27 }
 0x254   : > { %1735 = vmatmul.bf16.gmra.mxu3 %v4488_v28  ;;  %v1770_v28 = vpack.c.bf16 %v1361_v24, %v1359_v52 }
 0x255   : > { %1799 = vxpose.binary.xlu2.c.b16.cont [2/16] %v1769_v59, %v1768_v63, 128  ;;  %v1368_v60 = vpop.f32.mrf.mxu1  ;;  %v7947_v59 = vld [vmem:[#allocation3_spill] sm:$0xff] }
 0x256   : > { %v1527_v5 = vpop.f32.mrf.mxu2 }
 0x257   : > { %v1696_v46 = vpop.f32.mrf.mxu3  ;;  %v1528_v33 = vadd.f32 %v1527_v5, %v4544_v47  ;;  %v1195_v47 = vadd.f32 %v1194_v57, %v4641_v2  ;;  %v1201_v13 = vpop.f32.mrf.mxu0 }
 0x258   : > { %v1202_v43 = vadd.f32 %v1201_v13, %v7949_v12 }
 0x259   : > { %v1697_v27 = vadd.f32 %v1696_v46, %v1528_v33  ;;  %v1364_v21 = vadd.f32 %v1363_v44, %v1195_v47  ;;  %v7952_v47 = vld [vmem:[#allocation10_spill] sm:$0xff] }
 0x25b   : > { %v1772_v16 = vpack.c.bf16 %v1366_v25, %v1364_v21 }
 0x25e   : > { %v1529_v9 = vpop.f32.mrf.mxu2 }
 0x25f   : > { %v1530_v3 = vadd.f32 %v1529_v9, %v4566_v6  ;;  %v1698_v4 = vpop.f32.mrf.mxu3  ;;  %v1204_v5 = vpop.f32.mrf.mxu0 }
 0x261   : > { %v1699_v48 = vadd.f32 %v1698_v4, %v1530_v3 }
 0x263   : > { %v1771_v23 = vpack.c.bf16 %v1699_v48, %v1697_v27  ;;  %1571 = vmatmul.bf16.gmra.mxu2 %v4522_v39  ;;  %v1370_v39 = vpop.f32.mrf.mxu1 }
 0x264   : > { %1740 = vmatmul.bf16.gmra.mxu3 %v4524_v40  ;;  %v1371_v33 = vadd.f32 %v1370_v39, %v1202_v43  ;;  %v7956_v43 = vld [vmem:[#allocation12_spill] sm:$0xff] }
 0x265   : > { %1800 = vxpose.binary.xlu2.c.b16.cont [3/16] %v1771_v23, %v1770_v28, 128  ;;  %v7950_v28 = vld [vmem:[#allocation4_spill] sm:$0xff]  ;;  %v7951_v23 = vld [vmem:[#allocation5_spill] sm:$0xff] }
 0x266   : > { %v1532_v30 = vpop.f32.mrf.mxu2 }
 0x267   : > { %v1701_v38 = vpop.f32.mrf.mxu3  ;;  %v1533_v6 = vadd.f32 %v1532_v30, %v4641_v2  ;;  %v7948_v2 = vld [vmem:[#allocation6_spill] sm:$0xff] }
 0x268   : > { %v1200_v44 = vadd.f32 %v1199_v49, %v7948_v2 }
 0x269   : > { %v1702_v14 = vadd.f32 %v1701_v38, %v1533_v6 }
 0x26a   : > { %v1369_v1 = vadd.f32 %v1368_v60, %v1200_v44  ;;  %v1205_v60 = vadd.f32 %v1204_v5, %v7952_v47 }
 0x26b   : > { %v1373_v20 = vpop.f32.mrf.mxu1 }
 0x26c   : > { %v1774_v27 = vpack.c.bf16 %v1371_v33, %v1369_v1  ;;  %v1374_v25 = vadd.f32 %v1373_v20, %v1205_v60 }
 0x26e   : > { %v1534_v32 = vpop.f32.mrf.mxu2 }
 0x26f   : > { %v1535_v42 = vadd.f32 %v1534_v32, %v4636_v62  ;;  %v1703_v15 = vpop.f32.mrf.mxu3 }
 0x271   : > { %v1704_v40 = vadd.f32 %v1703_v15, %v1535_v42 }
 0x273   : > { %v1773_v63 = vpack.c.bf16 %v1704_v40, %v1702_v14  ;;  %1576 = vmatmul.bf16.gmra.mxu2 %v4540_v45  ;;  %v1206_v45 = vpop.f32.mrf.mxu0  ;;  %v1375_v49 = vpop.f32.mrf.mxu1 }
 0x274   : > { %1745 = vmatmul.bf16.gmra.mxu3 %v7947_v59  ;;  %v1207_v13 = vadd.f32 %v1206_v45, %v7953_v8 }
 0x275   : > { %1801 = vxpose.binary.xlu2.c.b16.cont [4/16] %v1773_v63, %v1772_v16, 128 }
 0x276   : > { %v1537_v57 = vpop.f32.mrf.mxu2  ;;  %v1376_v32 = vadd.f32 %v1375_v49, %v1207_v13  ;;  %v7960_v13 = vld [vmem:[#allocation16_spill] sm:$0xff] }
 0x277   : > { %v1706_v46 = vpop.f32.mrf.mxu3  ;;  %v1538_v62 = vadd.f32 %v1537_v57, %v7948_v2  ;;  %v7954_v57 = vld [vmem:[#allocation7_spill] sm:$0xff] }
 0x278   : > { %v1776_v63 = vpack.c.bf16 %v1376_v32, %v1374_v25 }
 0x279   : > { %v1707_v3 = vadd.f32 %v1706_v46, %v1538_v62  ;;  %v7955_v46 = vld [vmem:[#allocation8_spill] sm:$0xff]  ;;  %v7957_v62 = vld [vmem:[#allocation15_spill] sm:$0xff] }
 0x27b   : > { %v1209_v6 = vpop.f32.mrf.mxu0  ;;  %v1378_v15 = vpop.f32.mrf.mxu1 }
 0x27c   : > { %v1210_v20 = vadd.f32 %v1209_v6, %v7956_v43 }
 0x27e   : > { %v1539_v52 = vpop.f32.mrf.mxu2 }
 0x27f   : > { %v1540_v24 = vadd.f32 %v1539_v52, %v7949_v12  ;;  %v1708_v9 = vpop.f32.mrf.mxu3  ;;  %v1379_v52 = vadd.f32 %v1378_v15, %v1210_v20 }
 0x281   : > { %v1709_v4 = vadd.f32 %v1708_v9, %v1540_v24 }
 0x283   : > { %v1775_v48 = vpack.c.bf16 %v1709_v4, %v1707_v3  ;;  %1581 = vmatmul.bf16.gmra.mxu2 %v7950_v28  ;;  %v1211_v5 = vpop.f32.mrf.mxu0  ;;  %v1380_v12 = vpop.f32.mrf.mxu1 }
 0x284   : > { %1750 = vmatmul.bf16.gmra.mxu3 %v7951_v23  ;;  %v1212_v1 = vadd.f32 %v1211_v5, %v7957_v62 }
 0x285   : > { %1802 = vxpose.binary.xlu2.c.b16.cont [5/16] %v1775_v48, %v1774_v27, 128 }
 0x286   : > { %v1542_v30 = vpop.f32.mrf.mxu2  ;;  %v1381_v24 = vadd.f32 %v1380_v12, %v1212_v1 }
 0x287   : > { %v1711_v38 = vpop.f32.mrf.mxu3  ;;  %v1543_v21 = vadd.f32 %v1542_v30, %v7952_v47  ;;  %v7958_v30 = vld [vmem:[#allocation13_spill] sm:$0xff] }
 0x288   : > { %v1778_v28 = vpack.c.bf16 %v1381_v24, %v1379_v52 }
 0x289   : > { %v1712_v40 = vadd.f32 %v1711_v38, %v1543_v21  ;;  %v7959_v38 = vld [vmem:[#allocation14_spill] sm:$0xff] }
 0x28a   : > { %v7961_v21 = vld [vmem:[#allocation18_spill] sm:$0xff] }
 0x28b   : > { %v1214_v45 = vpop.f32.mrf.mxu0  ;;  %v1383_v23 = vpop.f32.mrf.mxu1 }
 0x28c   : > { %v1215_v6 = vadd.f32 %v1214_v45, %v7960_v13 }
 0x28e   : > { %v1544_v42 = vpop.f32.mrf.mxu2 }
 0x28f   : > { %v1545_v39 = vadd.f32 %v1544_v42, %v7953_v8  ;;  %v1713_v14 = vpop.f32.mrf.mxu3 }
 0x291   : > { %v1714_v16 = vadd.f32 %v1713_v14, %v1545_v39  ;;  %v1384_v39 = vadd.f32 %v1383_v23, %v1215_v6 }
 0x293   : > { %v1777_v59 = vpack.c.bf16 %v1714_v16, %v1712_v40  ;;  %1586 = vmatmul.bf16.gmra.mxu2 %v7954_v57  ;;  %v1216_v8 = vpop.f32.mrf.mxu0  ;;  %v1385_v32 = vpop.f32.mrf.mxu1 }
 0x294   : > { %1755 = vmatmul.bf16.gmra.mxu3 %v7955_v46  ;;  %v1217_v25 = vadd.f32 %v1216_v8, %v7961_v21 }
 0x295   : > { %1803 = vxpose.binary.xlu2.c.b16.cont [6/16] %v1777_v59, %v1776_v63, 128 }
 0x296   : > { %v1547_v2 = vpop.f32.mrf.mxu2  ;;  %v1386_v16 = vadd.f32 %v1385_v32, %v1217_v25 }
 0x297   : > { %v1716_v44 = vpop.f32.mrf.mxu3  ;;  %v1548_v33 = vadd.f32 %v1547_v2, %v7956_v43  ;;  %v7962_v2 = vld [vmem:[#allocation26_spill] sm:$0xff] }
 0x298   : > { %v1780_v46 = vpack.c.bf16 %v1386_v16, %v1384_v39  ;;  %v7966_v39 = vld [vmem:[#allocation17_spill] sm:$0xff] }
 0x299   : > { %v1717_v27 = vadd.f32 %v1716_v44, %v1548_v33  ;;  %v7963_v33 = vld [vmem:[#allocation22_spill] sm:$0xff] }
 0x29e   : > { %v1549_v9 = vpop.f32.mrf.mxu2 }
 0x29f   : > { %v1550_v3 = vadd.f32 %v1549_v9, %v7957_v62  ;;  %v1718_v4 = vpop.f32.mrf.mxu3 }
 0x2a1   : > { %v1719_v48 = vadd.f32 %v1718_v4, %v1550_v3 }
 0x2a3   : > { %v1779_v49 = vpack.c.bf16 %v1719_v48, %v1717_v27  ;;  %1591 = vmatmul.bf16.gmra.mxu2 %v7958_v30  ;;  %v7964_v27 = vld [vmem:[#allocation21_spill] sm:$0xff] }
 0x2a4   : > { %1760 = vmatmul.bf16.gmra.mxu3 %v7959_v38 }
 0x2a5   : > { %1804 = vxpose.binary.xlu2.c.b16.cont [7/16] %v1779_v49, %v1778_v28, 128 }
 0x2a6   : > { %v1552_v47 = vpop.f32.mrf.mxu2 }
 0x2a7   : > { %v1721_v60 = vpop.f32.mrf.mxu3  ;;  %v1553_v42 = vadd.f32 %v1552_v47, %v7960_v13 }
 0x2a9   : > { %v1722_v63 = vadd.f32 %v1721_v60, %v1553_v42  ;;  %v7965_v60 = vld [vmem:[#allocation20_spill] sm:$0xff] }
 0x2ae   : > { %v1554_v15 = vpop.f32.mrf.mxu2 }
 0x2af   : > { %v1555_v14 = vadd.f32 %v1554_v15, %v7961_v21  ;;  %v1723_v40 = vpop.f32.mrf.mxu3 }
 0x2b1   : > { %v1724_v59 = vadd.f32 %v1723_v40, %v1555_v14 }
 0x2b3   : > { %v1781_v57 = vpack.c.bf16 %v1724_v59, %v1722_v63 }
 0x2b5   : > { %1805 = vxpose.binary.xlu2.c.b16.end [8/16] %v1781_v57, %v1780_v46, 128 }
 0x2b6   : > { %v1557_v5 = vpop.f32.mrf.mxu2 }
 0x2b7   : > { %v1558_v44 = vadd.f32 %v1557_v5, %v7962_v2  ;;  %v1726_v12 = vpop.f32.mrf.mxu3 }
 0x2b9   : > { %v5376_v43 = vadd.f32 %v1726_v12, %v1558_v44 }
 0x2be   : > { %v5378_v20 = vpop.f32.mrf.mxu2 }
 0x2bf   : > { %v5380_v62 = vpop.f32.mrf.mxu3 }
 0x2c6   : > { %v1562_v1 = vpop.f32.mrf.mxu2 }
 0x2c7   : > { %v1563_v52 = vadd.f32 %v1562_v1, %v7963_v33  ;;  %v1731_v24 = vpop.f32.mrf.mxu3 }
 0x2c9   : > { %v5383_v9 = vadd.f32 %v1731_v24, %v1563_v52 }
 0x2ce   : > { %v5385_v45 = vpop.f32.mrf.mxu2 }
 0x2cf   : > { %v5387_v3 = vpop.f32.mrf.mxu3 }
 0x2d6   : > { %v1567_v4 = vpop.f32.mrf.mxu2 }
 0x2d7   : > { %v1568_v48 = vadd.f32 %v1567_v4, %v7964_v27  ;;  %v1736_v28 = vpop.f32.mrf.mxu3 }
 0x2d9   : > { %v5390_v23 = vadd.f32 %v1736_v28, %v1568_v48 }
 0x2de   : > { %v5392_v49 = vpop.f32.mrf.mxu2 }
 0x2df   : > { %v5394_v30 = vpop.f32.mrf.mxu3 }
 0x2e6   : > { %v1572_v38 = vpop.f32.mrf.mxu2  ;;  %v5396_v47 = vpop.trf.xlu2 }
 0x2e7   : > { %v1573_v8 = vadd.f32 %v1572_v38, %v7965_v60  ;;  %v1741_v13 = vpop.f32.mrf.mxu3  ;;  %1830 = vmatmul.bf16.vlgmr.msrb.gmra.mxu0 %v5396_v47 }
 0x2e9   : > { %v5400_v6 = vadd.f32 %v1741_v13, %v1573_v8 }
 0x2ee   : > { %v1574_v21 = vpop.f32.mrf.mxu2  ;;  %v5402_v25 = vpop.trf.xlu2 }
 0x2ef   : > { %v1743_v32 = vpop.f32.mrf.mxu3 }
 0x2f6   : > { %v1577_v42 = vpop.f32.mrf.mxu2  ;;  %v5404_v15 = vpop.trf.xlu2 }
 0x2f7   : > { %v1578_v14 = vadd.f32 %v1577_v42, %v7966_v39  ;;  %v1746_v40 = vpop.f32.mrf.mxu3  ;;  %1835 = vmatmul.bf16.gmra.mxu0 %v5404_v15 }
 0x2f9   : > { %v1747_v16 = vadd.f32 %v1746_v40, %v1578_v14 }
 0x2fe   : > { %v1579_v63 = vpop.f32.mrf.mxu2  ;;  %v5408_v59 = vpop.trf.xlu2 }
 0x2ff   : > { %v1748_v57 = vpop.f32.mrf.mxu3 }
 0x306   : > { %v1582_v46 = vpop.f32.mrf.mxu2  ;;  %v5410_v5 = vpop.trf.xlu2 }
 0x307   : > { %v1751_v2 = vpop.f32.mrf.mxu3  ;;  %1840 = vmatmul.bf16.gmra.mxu0 %v5410_v5  ;;  %v1583_v56 = vadd.f32 %v1582_v46, %v4711_v55 }
 0x30e   : > { %v1584_v44 = vpop.f32.mrf.mxu2  ;;  %v5413_v12 = vpop.trf.xlu2 }
 0x30f   : > { %v1753_v1 = vpop.f32.mrf.mxu3  ;;  %v1585_v26 = vadd.f32 %v1584_v44, %v4709_v53 }
 0x311   : > { %v1754_v29 = vadd.f32 %v1753_v1, %v1585_v26  ;;  %v7970_v26 = vld [vmem:[#allocation25_spill] sm:$0xff] }
 0x316   : > { %v1587_v33 = vpop.f32.mrf.mxu2  ;;  %v5415_v52 = vpop.trf.xlu2 }
 0x317   : > { %v1756_v24 = vpop.f32.mrf.mxu3  ;;  %1845 = vmatmul.bf16.gmra.mxu0 %v5415_v52  ;;  %v1588_v41 = vadd.f32 %v1587_v33, %v4691_v37 }
 0x319   : > { %v1757_v19 = vadd.f32 %v1756_v24, %v1588_v41 }
 0x31e   : > { %v1589_v4 = vpop.f32.mrf.mxu2  ;;  %v5418_v27 = vpop.trf.xlu2 }
 0x31f   : > { %v1758_v48 = vpop.f32.mrf.mxu3  ;;  %v1590_v39 = vadd.f32 %v1589_v4, %v4689_v36  ;;  %v7967_v4 = vld [vmem:[#allocation19_spill] sm:$0xff] }
 0x320   : > { %v1575_v37 = vadd.f32 %v1574_v21, %v7967_v4 }
 0x321   : > { %v1759_v11 = vadd.f32 %v1758_v48, %v1590_v39 }
 0x322   : > { %v1744_v41 = vadd.f32 %v1743_v32, %v1575_v37 }
 0x323   : > { %v1795_v36 = vpack.c.bf16 %v1759_v11, %v1757_v19 }
 0x324   : > { %v1789_v11 = vpack.c.bf16 %v1744_v41, %v5400_v6 }
 0x326   : > { %v1592_v28 = vpop.f32.mrf.mxu2  ;;  %v1814_v38 = vpop.trf.xlu2 }
 0x327   : > { %v1761_v60 = vpop.f32.mrf.mxu3  ;;  %1850 = vmatmul.bf16.gmra.mxu0 %v1814_v38  ;;  %v1593_v8 = vadd.f32 %v1592_v28, %v4683_v34  ;;  %v1580_v28 = vadd.f32 %v1579_v63, %v4724_v0 }
 0x329   : > { %v1762_v50 = vadd.f32 %v1761_v60, %v1593_v8  ;;  %v1749_v33 = vadd.f32 %v1748_v57, %v1580_v28 }
 0x32e   : > { %v1594_v13 = vpop.f32.mrf.mxu2  ;;  %v5421_v42 = vpop.trf.xlu2 }
 0x32f   : > { %v1595_v14 = vadd.f32 %v1594_v13, %v4679_v31  ;;  %v1763_v40 = vpop.f32.mrf.mxu3  ;;  %v1752_v31 = vadd.f32 %v1751_v2, %v1583_v56 }
 0x331   : > { %v1764_v58 = vadd.f32 %v1763_v40, %v1595_v14  ;;  %v1793_v60 = vpack.c.bf16 %v1754_v29, %v1752_v31  ;;  %v1560_v29 = vadd.f32 %v5378_v20, %v7970_v26 }
 0x333   : > { %v1797_v35 = vpack.c.bf16 %v1764_v58, %v1762_v50  ;;  %v7968_v58 = vld [vmem:[#allocation23_spill] sm:$0xff]  ;;  %v7969_v50 = vld [vmem:[#allocation24_spill] sm:$0xff] }
 0x334   : > { %v1570_v55 = vadd.f32 %v5392_v49, %v7968_v58  ;;  %v1565_v0 = vadd.f32 %v5385_v45, %v7969_v50  ;;  %v1729_v49 = vadd.f32 %v5380_v62, %v1560_v29  ;;  %v408_v58 = vld [vmem:[%s7656_s2 + $0xb0] sm:$0xff] }
 0x335   : > { %1911 = vmatpush.bf16.msrb.mxu1 %v1797_v35  ;;  %v1791_v35 = vpack.c.bf16 %v1749_v33, %v1747_v16 }
 0x336   : > { %v1816_v34 = vpop.trf.xlu2  ;;  %v1739_v19 = vadd.f32 %v5394_v30, %v1570_v55  ;;  %v1734_v21 = vadd.f32 %v5387_v3, %v1565_v0  ;;  %v1783_v30 = vpack.c.bf16 %v1729_v49, %v5376_v43 }
 0x337   : > { %1855 = vmatmul.bf16.gmra.mxu0 %v1816_v34 }
 0x338   : > { %v1787_v63 = vpack.c.bf16 %v1739_v19, %v5390_v23  ;;  %v1785_v32 = vpack.c.bf16 %v1734_v21, %v5383_v9 }
 0x339   : > { %1912 = vmatpush.bf16.msrb.mxu1 %v1795_v36 }
 0x33d   : > { %1913 = vmatpush.bf16.msrb.mxu1 %v1793_v60 }
 0x33e   : > { %v5430_v53 = vpop.trf.xlu2 }
 0x341   : > { %1914 = vmatpush.bf16.msrb.mxu1 %v1791_v35 }
 0x345   : > { %1915 = vmatpush.bf16.msrb.mxu1 %v1789_v11 }
 0x346   : > { %v1818_v56 = vpop.trf.xlu2 }
 0x347   : > { %1860 = vmatmul.bf16.gmra.mxu0 %v1818_v56 }
 0x349   : > { %1916 = vmatpush.bf16.msrb.mxu1 %v1787_v63 }
 0x34d   : > { %1917 = vmatpush.bf16.msrb.mxu1 %v1785_v32 }
 0x34e   : > { %v5444_v45 = vpop.trf.xlu2 }
 0x351   : > { %1918 = vmatpush.bf16.msrb.mxu1 %v1783_v30 }
 0x354   : > { %1919 = vmatmul.bf16.vlgmr.msrb.gmra.mxu1 %v5396_v47 }
 0x356   : > { %v1820_v6 = vpop.trf.xlu2 }
 0x357   : > { %1865 = vmatmul.bf16.gmra.mxu0 %v1820_v6 }
 0x364   : > { %1924 = vmatmul.bf16.gmra.mxu1 %v5404_v15  ;;  %v1831_v20 = vpop.f32.mrf.mxu0 }
 0x365   : > { %v3844_v15 = vclamps-f32 %v1831_v20, 10.0  ;;  %v2512_v20 = vld [vmem:[%s7657_s3] sm:$0xff] }
 0x367   : > { %1870 = vmatmul.bf16.gmra.mxu0 %v5402_v25  ;;  %v2128_v16 = vmul.f32 1.442695, %v3844_v15 }
 0x369   : > { %4009 = vpow2.f32 %v2128_v16 }
 0x36c   : > { %v5455_v43 = vpop.f32.mrf.mxu0 }
 0x36f   : > { %v5467_v1 = vpop.eup %4009 }
 0x370   : > { %7971 = vst [vmem:[#allocation3_spill] sm:$0xff] %v5467_v1 }
 0x374   : > { %1929 = vmatmul.bf16.gmra.mxu1 %v5410_v5  ;;  %v1836_v62 = vpop.f32.mrf.mxu0 }
 0x375   : > { %v3848_v24 = vclamps-f32 %v1836_v62, 10.0 }
 0x377   : > { %1875 = vmatmul.bf16.gmra.mxu0 %v5408_v59  ;;  %v2136_v8 = vmul.f32 1.442695, %v3848_v24 }
 0x37c   : > { %v5458_v9 = vpop.f32.mrf.mxu0 }
 0x384   : > { %1934 = vmatmul.bf16.gmra.mxu1 %v5415_v52  ;;  %v1841_v3 = vpop.f32.mrf.mxu0 }
 0x385   : > { %v3852_v36 = vclamps-f32 %v1841_v3, 10.0 }
 0x387   : > { %1880 = vmatmul.bf16.gmra.mxu0 %v5413_v12  ;;  %v2144_v4 = vmul.f32 1.442695, %v3852_v36 }
 0x38c   : > { %v1843_v23 = vpop.f32.mrf.mxu0 }
 0x38d   : > { %v3854_v55 = vclamps-f32 %v1843_v23, 10.0 }
 0x38f   : > { %v2148_v41 = vmul.f32 1.442695, %v3854_v55 }
 0x394   : > { %1939 = vmatmul.bf16.gmra.mxu1 %v1814_v38  ;;  %v1846_v47 = vpop.f32.mrf.mxu0 }
 0x395   : > { %v3856_v11 = vclamps-f32 %v1846_v47, 10.0 }
 0x397   : > { %1885 = vmatmul.bf16.gmra.mxu0 %v5418_v27  ;;  %v2152_v21 = vmul.f32 1.442695, %v3856_v11  ;;  %v5549_v11 = vpop.trf.xlu2 }
 0x39c   : > { %v5462_v5 = vpop.f32.mrf.mxu0 }
 0x39d   : > { %v3858_v62 = vclamps-f32 %v5462_v5, 10.0  ;;  %v2515_v5 = vld [vmem:[%s7657_s3 + $0x18] sm:$0xff] }
 0x39f   : > { %v2156_v47 = vmul.f32 1.442695, %v3858_v62 }
 0x3a4   : > { %1944 = vmatmul.bf16.gmra.mxu1 %v1816_v34  ;;  %v5473_v38 = vpop.f32.mrf.mxu0 }
 0x3a7   : > { %1890 = vmatmul.bf16.gmra.mxu0 %v5421_v42 }
 0x3b4   : > { %1949 = vmatmul.bf16.gmra.mxu1 %v1818_v56 }
 0x3b7   : > { %1895 = vmatmul.bf16.gmra.mxu0 %v5430_v53 }
 0x3c4   : > { %1954 = vmatmul.bf16.gmra.mxu1 %v1820_v6 }
 0x3c7   : > { %1900 = vmatmul.bf16.gmra.mxu0 %v5444_v45 }
 0x3d1   : > { %v1920_v57 = vpop.f32.mrf.mxu1 }
 0x3d2   : > { %v3845_v46 = vclamps-f32 %v1920_v57, 10.0 }
 0x3d4   : > { %v2130_v2 = vmul.f32 1.442695, %v3845_v46  ;;  %1959 = vmatmul.bf16.gmra.mxu1 %v5402_v25  ;;  %v5476_v25 = vpop.f32.mrf.mxu0  ;;  %v3860_v46 = vclamps-f32 %v5473_v38, 10.0 }
 0x3d6   : > { %4011 = vpow2.f32 %v2130_v2 }
 0x3d7   : > { %4013 = vpow2.f32 %v2136_v8  ;;  %1905 = vmatmul.bf16.gmra.mxu0 %v5549_v11 }
 0x3d9   : > { %v5465_v44 = vpop.f32.mrf.mxu1 }
 0x3dc   : > { %v5469_v52 = vpop.eup %4011  ;;  %v5486_v33 = vpop.f32.mrf.mxu0 }
 0x3dd   : > { %7972 = vst [vmem:[#allocation6_spill] sm:$0xff] %v5469_v52  ;;  %v2256_v48 = vadd.f32 %v5469_v52, %v5467_v1  ;;  %v5480_v34 = vpop.eup %4013 }
 0x3de   : > { %7973 = vst [vmem:[#allocation11_spill] sm:$0xff] %v5480_v34 }
 0x3df   : > { %2257 = vadd.xlane.f32.xlu2 %v2256_v48  ;;  %v2160_v48 = vmul.f32 1.442695, %v3860_v46 }
 0x3e1   : > { %v1925_v13 = vpop.f32.mrf.mxu1 }
 0x3e2   : > { %v3849_v39 = vclamps-f32 %v1925_v13, 10.0 }
 0x3e4   : > { %v2138_v14 = vmul.f32 1.442695, %v3849_v39  ;;  %1964 = vmatmul.bf16.gmra.mxu1 %v5408_v59  ;;  %v5496_v56 = vpop.f32.mrf.mxu0 }
 0x3e5   : > { %v3866_v62 = vclamps-f32 %v5496_v56, 10.0  ;;  %v2527_v56 = vld [vmem:[%s7657_s3 + $0x78] sm:$0xff] }
 0x3e6   : > { %4015 = vpow2.f32 %v2138_v14 }
 0x3e7   : > { %4017 = vpow2.f32 %v2144_v4  ;;  %v3862_v4 = vclamps-f32 %v5476_v25, 10.0  ;;  %v2521_v25 = vld [vmem:[%s7657_s3 + $0x48] sm:$0xff] }
 0x3e9   : > { %v5478_v40 = vpop.f32.mrf.mxu1 }
 0x3ec   : > { %v5482_v28 = vpop.eup %4015  ;;  %v5514_v23 = vpop.f32.mrf.mxu0 }
 0x3ed   : > { %7974 = vst [vmem:[#allocation4_spill] sm:$0xff] %v5482_v28  ;;  %v2262_v31 = vadd.f32 %v5482_v28, %v5480_v34  ;;  %v5492_v50 = vpop.eup %4017 }
 0x3ef   : > { %2263 = vadd.xlane.f32.xlu0 %v2262_v31  ;;  %v2518_v31 = vld [vmem:[%s7657_s3 + $0x30] sm:$0xff] }
 0x3f1   : > { %v1930_v37 = vpop.f32.mrf.mxu1 }
 0x3f2   : > { %v3853_v60 = vclamps-f32 %v1930_v37, 10.0 }
 0x3f4   : > { %v2146_v59 = vmul.f32 1.442695, %v3853_v60  ;;  %1969 = vmatmul.bf16.gmra.mxu1 %v5413_v12  ;;  %v415_v12 = vld [vmem:[%s7656_s2 + $0xe8] sm:$0xff]  ;;  %v5526_v8 = vpop.f32.mrf.mxu0  ;;  %v2164_v60 = vmul.f32 1.442695, %v3862_v4 }
 0x3f6   : > { %4019 = vpow2.f32 %v2146_v59 }
 0x3f7   : > { %562 = vperm.xlu2 %4008, %v408_v58   ;;  %4021 = vpow2.f32 %v2148_v41 }
 0x3f9   : > { %v1932_v35 = vpop.f32.mrf.mxu1 }
 0x3fa   : > { %v3855_v0 = vclamps-f32 %v1932_v35, 10.0  ;;  %v3864_v35 = vclamps-f32 %v5486_v33, 10.0 }
 0x3fc   : > { %v5494_v19 = vpop.eup %4019  ;;  %v2150_v26 = vmul.f32 1.442695, %v3855_v0  ;;  %v5541_v55 = vpop.f32.mrf.mxu0 }
 0x3fd   : > { %v2268_v29 = vadd.f32 %v5494_v19, %v5492_v50  ;;  %v5503_v32 = vpop.eup %4021 }
 0x3fe   : > { %4023 = vpow2.f32 %v2150_v26 }
 0x3ff   : > { %597 = vperm.xlu2 %4008, %v415_v12   ;;  %2269 = vadd.xlane.f32.xlu0 %v2268_v29  ;;  %4025 = vpow2.f32 %v2152_v21  ;;  %v2168_v12 = vmul.f32 1.442695, %v3864_v35 }
 0x401   : > { %v1935_v63 = vpop.f32.mrf.mxu1 }
 0x402   : > { %v3857_v49 = vclamps-f32 %v1935_v63, 10.0 }
 0x404   : > { %v5505_v30 = vpop.eup %4023  ;;  %v2154_v6 = vmul.f32 1.442695, %v3857_v49  ;;  %1974 = vmatmul.bf16.gmra.mxu1 %v5418_v27  ;;  %v5558_v49 = vpop.f32.mrf.mxu0 }
 0x405   : > { %v2271_v3 = vadd.f32 %v5505_v30, %v5503_v32  ;;  %v5516_v16 = vpop.eup %4025 }
 0x406   : > { %4027 = vpow2.f32 %v2154_v6 }
 0x407   : > { %2546 = vperm.xlu2 %4008, %v2512_v20   ;;  %2272 = vadd.xlane.f32.xlu1 %v2271_v3  ;;  %4029 = vpow2.f32 %v2156_v47  ;;  %v2524_v20 = vld [vmem:[%s7657_s3 + $0x60] sm:$0xff]  ;;  %v2172_v47 = vmul.f32 1.442695, %v3866_v62 }
 0x409   : > { %v1937_v15 = vpop.f32.mrf.mxu1 }
 0x40a   : > { %v3859_v57 = vclamps-f32 %v1937_v15, 10.0 }
 0x40c   : > { %v5518_v27 = vpop.eup %4027  ;;  %v2158_v2 = vmul.f32 1.442695, %v3859_v57 }
 0x40d   : > { %v2274_v24 = vadd.f32 %v5518_v27, %v5516_v16  ;;  %v5528_v14 = vpop.eup %4029 }
 0x40e   : > { %4031 = vpow2.f32 %v2158_v2 }
 0x40f   : > { %2561 = vperm.xlu2 %4008, %v2515_v5   ;;  %2275 = vadd.xlane.f32.xlu0 %v2274_v24  ;;  %4033 = vpow2.f32 %v2160_v48  ;;  %v5577_v48 = vpop.f32.mrf.mxu0 }
 0x411   : > { %v1940_v13 = vpop.f32.mrf.mxu1 }
 0x412   : > { %v3861_v39 = vclamps-f32 %v1940_v13, 10.0 }
 0x414   : > { %v5530_v38 = vpop.eup %4031  ;;  %v2162_v36 = vmul.f32 1.442695, %v3861_v39  ;;  %1979 = vmatmul.bf16.gmra.mxu1 %v5421_v42 }
 0x415   : > { %v2277_v37 = vadd.f32 %v5530_v38, %v5528_v14  ;;  %v5539_v58 = vpop.eup %4033 }
 0x416   : > { %4035 = vpow2.f32 %v2162_v36 }
 0x417   : > { %2576 = vperm.xlu2 %4008, %v2518_v31   ;;  %2278 = vadd.xlane.f32.xlu1 %v2277_v37  ;;  %4037 = vpow2.f32 %v2164_v60  ;;  %v2530_v37 = vld [vmem:[%s7657_s3 + $0x90] sm:$0xff]  ;;  %v3870_v60 = vclamps-f32 %v5526_v8, 10.0  ;;  %v2533_v8 = vld [vmem:[%s7657_s3 + $0xa8] sm:$0xff] }
 0x419   : > { %v1942_v59 = vpop.f32.mrf.mxu1  ;;  %v2180_v35 = vmul.f32 1.442695, %v3870_v60 }
 0x41a   : > { %v3863_v41 = vclamps-f32 %v1942_v59, 10.0 }
 0x41c   : > { %v5543_v42 = vpop.eup %4035  ;;  %v2166_v0 = vmul.f32 1.442695, %v3863_v41  ;;  %v5590_v41 = vpop.f32.mrf.mxu0 }
 0x41d   : > { %v2280_v26 = vadd.f32 %v5543_v42, %v5539_v58  ;;  %v5554_v33 = vpop.eup %4037 }
 0x41e   : > { %4039 = vpow2.f32 %v2166_v0 }
 0x41f   : > { %2591 = vperm.xlu2 %4008, %v2521_v25   ;;  %2281 = vadd.xlane.f32.xlu0 %v2280_v26  ;;  %4041 = vpow2.f32 %v2168_v12  ;;  %v3872_v12 = vclamps-f32 %v5541_v55, 10.0 }
 0x421   : > { %v1945_v29 = vpop.f32.mrf.mxu1 }
 0x422   : > { %v3865_v21 = vclamps-f32 %v1945_v29, 10.0 }
 0x424   : > { %v5556_v63 = vpop.eup %4039  ;;  %v2170_v6 = vmul.f32 1.442695, %v3865_v21  ;;  %1984 = vmatmul.bf16.gmra.mxu1 %v5430_v53  ;;  %v3868_v53 = vclamps-f32 %v5514_v23, 10.0  ;;  %v5602_v62 = vpop.f32.mrf.mxu0 }
 0x425   : > { %v2283_v3 = vadd.f32 %v5556_v63, %v5554_v33  ;;  %v5567_v57 = vpop.eup %4041 }
 0x426   : > { %4043 = vpow2.f32 %v2170_v6  ;;  %v2176_v13 = vmul.f32 1.442695, %v3868_v53  ;;  %v2184_v6 = vmul.f32 1.442695, %v3872_v12  ;;  %v3874_v53 = vclamps-f32 %v5558_v49, 10.0  ;;  %v2539_v49 = vld [vmem:[%s7657_s3 + $0xd8] sm:$0xff] }
 0x427   : > { %2606 = vperm.xlu2 %4008, %v2524_v20   ;;  %2284 = vadd.xlane.f32.xlu1 %v2283_v3  ;;  %4045 = vpow2.f32 %v2172_v47 }
 0x429   : > { %v1947_v15 = vpop.f32.mrf.mxu1 }
 0x42a   : > { %v3867_v46 = vclamps-f32 %v1947_v15, 10.0 }
 0x42c   : > { %v5569_v2 = vpop.eup %4043  ;;  %v2174_v5 = vmul.f32 1.442695, %v3867_v46  ;;  %v2536_v46 = vld [vmem:[%s7657_s3 + $0xc0] sm:$0xff] }
 0x42d   : > { %v2286_v24 = vadd.f32 %v5569_v2, %v5567_v57  ;;  %v5579_v31 = vpop.eup %4045 }
 0x42e   : > { %4047 = vpow2.f32 %v2174_v5 }
 0x42f   : > { %2621 = vperm.xlu2 %4008, %v2527_v56   ;;  %2287 = vadd.xlane.f32.xlu0 %v2286_v24  ;;  %4049 = vpow2.f32 %v2176_v13  ;;  %v2188_v56 = vmul.f32 1.442695, %v3874_v53 }
 0x431   : > { %v1950_v39 = vpop.f32.mrf.mxu1 }
 0x432   : > { %v3869_v36 = vclamps-f32 %v1950_v39, 10.0 }
 0x434   : > { %v5581_v23 = vpop.eup %4047  ;;  %v2178_v4 = vmul.f32 1.442695, %v3869_v36  ;;  %1989 = vmatmul.bf16.gmra.mxu1 %v5444_v45 }
 0x435   : > { %v2289_v59 = vadd.f32 %v5581_v23, %v5579_v31  ;;  %v5592_v25 = vpop.eup %4049 }
 0x436   : > { %4051 = vpow2.f32 %v2178_v4 }
 0x437   : > { %2636 = vperm.xlu2 %4008, %v2530_v37   ;;  %2290 = vadd.xlane.f32.xlu1 %v2289_v59  ;;  %4053 = vpow2.f32 %v2180_v35 }
 0x439   : > { %v1952_v0 = vpop.f32.mrf.mxu1 }
 0x43a   : > { %v3871_v26 = vclamps-f32 %v1952_v0, 10.0  ;;  %v2542_v0 = vld [vmem:[%s7657_s3 + $0xf0] sm:$0xff] }
 0x43c   : > { %v5594_v45 = vpop.eup %4051  ;;  %v2182_v29 = vmul.f32 1.442695, %v3871_v26 }
 0x43d   : > { %v2292_v21 = vadd.f32 %v5594_v45, %v5592_v25  ;;  %v5604_v47 = vpop.eup %4053 }
 0x43e   : > { %4055 = vpow2.f32 %v2182_v29 }
 0x43f   : > { %2651 = vperm.xlu2 %4008, %v2533_v8   ;;  %2293 = vadd.xlane.f32.xlu0 %v2292_v21  ;;  %4057 = vpow2.f32 %v2184_v6 }
 0x441   : > { %v1955_v20 = vpop.f32.mrf.mxu1 }
 0x442   : > { %v3873_v3 = vclamps-f32 %v1955_v20, 10.0 }
 0x444   : > { %v5606_v55 = vpop.eup %4055  ;;  %v2186_v15 = vmul.f32 1.442695, %v3873_v3  ;;  %1994 = vmatmul.bf16.gmra.mxu1 %v5549_v11  ;;  %v5619_v11 = vpop.f32.mrf.mxu0 }
 0x445   : > { %v2295_v5 = vadd.f32 %v5606_v55, %v5604_v47  ;;  %v5615_v13 = vpop.eup %4057 }
 0x446   : > { %4059 = vpow2.f32 %v2186_v15 }
 0x447   : > { %2666 = vperm.xlu2 %4008, %v2536_v46   ;;  %2296 = vadd.xlane.f32.xlu1 %v2295_v5  ;;  %4061 = vpow2.f32 %v2188_v56 }
 0x449   : > { %v1957_v24 = vpop.f32.mrf.mxu1 }
 0x44a   : > { %v3875_v39 = vclamps-f32 %v1957_v24, 10.0 }
 0x44c   : > { %v5617_v36 = vpop.eup %4059  ;;  %v2190_v4 = vmul.f32 1.442695, %v3875_v39  ;;  %v1881_v12 = vpop.f32.mrf.mxu0 }
 0x44d   : > { %v2298_v37 = vadd.f32 %v5617_v36, %v5615_v13  ;;  %v5628_v59 = vpop.eup %4061  ;;  %v3884_v3 = vclamps-f32 %v1881_v12, 10.0 }
 0x44e   : > { %4063 = vpow2.f32 %v2190_v4 }
 0x44f   : > { %2681 = vperm.xlu2 %4008, %v2539_v49   ;;  %2299 = vadd.xlane.f32.xlu0 %v2298_v37  ;;  %v2208_v46 = vmul.f32 1.442695, %v3884_v3 }
 0x451   : > { %v5626_v60 = vpop.f32.mrf.mxu1  ;;  %4065 = vpow2.f32 %v2208_v46 }
 0x454   : > { %v5630_v35 = vpop.eup %4063  ;;  %v1883_v8 = vpop.f32.mrf.mxu0 }
 0x455   : > { %v2301_v26 = vadd.f32 %v5630_v35, %v5628_v59  ;;  %v3886_v39 = vclamps-f32 %v1883_v8, 10.0 }
 0x457   : > { %2696 = vperm.xlu2 %4008, %v2542_v0   ;;  %2302 = vadd.xlane.f32.xlu1 %v2301_v26  ;;  %v2212_v49 = vmul.f32 1.442695, %v3886_v39  ;;  %v5645_v61 = vpop.eup %4065 }
 0x459   : > { %v5637_v29 = vpop.f32.mrf.mxu1 }
 0x45c   : > { %v1886_v20 = vpop.f32.mrf.mxu0 }
 0x45d   : > { %v3888_v3 = vclamps-f32 %v1886_v20, 10.0 }
 0x461   : > { %v5639_v21 = vpop.f32.mrf.mxu1 }
 0x462   : > { %v5643_v15 = vpop.xlane.xlu0 %2263 }
 0x463   : > { %7975 = vst [vmem:[#allocation5_spill] sm:$0xff] %v5643_v15 }
 0x464   : > { %v1888_v56 = vpop.f32.mrf.mxu0 }
 0x469   : > { %v5641_v6 = vpop.f32.mrf.mxu1 }
 0x46c   : > { %v1891_v8 = vpop.f32.mrf.mxu0 }
 0x471   : > { %v1970_v53 = vpop.f32.mrf.mxu1 }
 0x472   : > { %v3885_v5 = vclamps-f32 %v1970_v53, 10.0  ;;  %v2270_v4 = vpop.xlane.xlu0 %2269 }
 0x474   : > { %v2210_v24 = vmul.f32 1.442695, %v3885_v5 }
 0x476   : > { %4067 = vpow2.f32 %v2210_v24  ;;  %v2216_v24 = vmul.f32 1.442695, %v3888_v3 }
 0x477   : > { %4069 = vrcp.f32 %v2270_v4 }
 0x479   : > { %v1972_v37 = vpop.f32.mrf.mxu1 }
 0x47a   : > { %v3887_v0 = vclamps-f32 %v1972_v37, 10.0  ;;  %v2273_v26 = vpop.xlane.xlu1 %2272 }
 0x47b   : > { %4071 = vrcp.f32 %v2273_v26 }
 0x47c   : > { %v5647_v12 = vpop.eup %4067  ;;  %v2214_v22 = vmul.f32 1.442695, %v3887_v0  ;;  %4073 = vpow2.f32 %v2212_v49 }
 0x47d   : > { %v2316_v53 = vadd.f32 %v5647_v12, %v5645_v61  ;;  %v4070_v46 = vpop.eup %4069 }
 0x47e   : > { %4075 = vpow2.f32 %v2214_v22  ;;  %v5652_v4 = vmul.f32 %v4070_v46, %v5492_v50  ;;  %v5658_v49 = vmul.f32 %v4070_v46, %v5494_v19 }
 0x47f   : > { %2317 = vadd.xlane.f32.xlu0 %v2316_v53  ;;  %4077 = vpow2.f32 %v2216_v24 }
 0x481   : > { %v4072_v5 = vpop.eup %4071  ;;  %v1975_v39 = vpop.f32.mrf.mxu1 }
 0x482   : > { %v3889_v37 = vclamps-f32 %v1975_v39, 10.0  ;;  %v5655_v26 = vmul.f32 %v4072_v5, %v5503_v32  ;;  %v5661_v20 = vmul.f32 %v4072_v5, %v5505_v30  ;;  %v5663_v0 = vpop.eup %4073  ;;  %v3890_v32 = vclamps-f32 %v1888_v56, 10.0  ;;  %v2276_v39 = vpop.xlane.xlu0 %2275 }
 0x483   : > { %v1893_v30 = vpop.f32.mrf.mxu0  ;;  %v3892_v56 = vclamps-f32 %v1891_v8, 10.0 }
 0x484   : > { %v5665_v22 = vpop.eup %4075  ;;  %v2218_v53 = vmul.f32 1.442695, %v3889_v37  ;;  %v2220_v46 = vmul.f32 1.442695, %v3890_v32 }
 0x485   : > { %v2319_v19 = vadd.f32 %v5665_v22, %v5663_v0  ;;  %v5673_v10 = vpop.eup %4077 }
 0x486   : > { %4079 = vpow2.f32 %v2218_v53 }
 0x487   : > { %2320 = vadd.xlane.f32.xlu1 %v2319_v19  ;;  %4081 = vrcp.f32 %v2276_v39  ;;  %v2224_v39 = vmul.f32 1.442695, %v3892_v56 }
 0x489   : > { %v1977_v5 = vpop.f32.mrf.mxu1 }
 0x48a   : > { %v3891_v17 = vclamps-f32 %v1977_v5, 10.0  ;;  %v2279_v37 = vpop.xlane.xlu1 %2278 }
 0x48b   : > { %4083 = vrcp.f32 %v2279_v37  ;;  %v1896_v5 = vpop.f32.mrf.mxu0 }
 0x48c   : > { %v5675_v3 = vpop.eup %4079  ;;  %v2222_v50 = vmul.f32 1.442695, %v3891_v17  ;;  %4085 = vpow2.f32 %v2220_v46 }
 0x48d   : > { %7976 = vst [vmem:[#allocation10_spill] sm:$0xff] %v5675_v3  ;;  %v2322_v24 = vadd.f32 %v5675_v3, %v5673_v10  ;;  %v4082_v7 = vpop.eup %4081 }
 0x48e   : > { %4087 = vpow2.f32 %v2222_v50  ;;  %v5680_v19 = vmul.f32 %v4082_v7, %v5516_v16  ;;  %v5686_v17 = vmul.f32 %v4082_v7, %v5518_v27  ;;  %v3896_v16 = vclamps-f32 %v1896_v5, 10.0 }
 0x48f   : > { %2323 = vadd.xlane.f32.xlu0 %v2322_v24  ;;  %4089 = vpow2.f32 %v2224_v39 }
 0x491   : > { %v4084_v53 = vpop.eup %4083  ;;  %v1980_v32 = vpop.f32.mrf.mxu1 }
 0x492   : > { %v3893_v51 = vclamps-f32 %v1980_v32, 10.0  ;;  %v5683_v37 = vmul.f32 %v4084_v53, %v5528_v14  ;;  %v5689_v8 = vmul.f32 %v4084_v53, %v5530_v38  ;;  %v5691_v46 = vpop.eup %4085  ;;  %v3894_v14 = vclamps-f32 %v1893_v30, 10.0 }
 0x493   : > { %7977 = vst [vmem:[#allocation9_spill] sm:$0xff] %v5691_v46  ;;  %v2232_v30 = vmul.f32 1.442695, %v3896_v16 }
 0x494   : > { %v5693_v50 = vpop.eup %4087  ;;  %v2226_v56 = vmul.f32 1.442695, %v3893_v51  ;;  %v2228_v27 = vmul.f32 1.442695, %v3894_v14  ;;  %v1898_v51 = vpop.f32.mrf.mxu0 }
 0x495   : > { %7978 = vst [vmem:[#allocation7_spill] sm:$0xff] %v5693_v50  ;;  %v2325_v7 = vadd.f32 %v5693_v50, %v5691_v46  ;;  %v5701_v32 = vpop.eup %4089  ;;  %v3898_v52 = vclamps-f32 %v1898_v51, 10.0  ;;  %v5719_v51 = vpop.xlane.xlu0 %2281 }
 0x496   : > { %4091 = vpow2.f32 %v2226_v56  ;;  %7979 = vst [vmem:[#allocation8_spill] sm:$0xff] %v5701_v32 }
 0x497   : > { %2326 = vadd.xlane.f32.xlu1 %v2325_v7  ;;  %4093 = vpow2.f32 %v2228_v27  ;;  %v2236_v5 = vmul.f32 1.442695, %v3898_v52 }
 0x499   : > { %v1982_v38 = vpop.f32.mrf.mxu1 }
 0x49a   : > { %v3895_v53 = vclamps-f32 %v1982_v38, 10.0  ;;  %v5721_v52 = vpop.xlane.xlu1 %2284 }
 0x49c   : > { %v5703_v18 = vpop.eup %4091  ;;  %v2230_v54 = vmul.f32 1.442695, %v3895_v53  ;;  %v1901_v27 = vpop.f32.mrf.mxu0 }
 0x49d   : > { %7980 = vst [vmem:[#allocation12_spill] sm:$0xff] %v5703_v18  ;;  %v2328_v39 = vadd.f32 %v5703_v18, %v5701_v32  ;;  %v5707_v7 = vpop.eup %4093  ;;  %v3900_v32 = vclamps-f32 %v1901_v27, 10.0 }
 0x49e   : > { %4095 = vpow2.f32 %v2230_v54  ;;  %7981 = vst [vmem:[#allocation15_spill] sm:$0xff] %v5707_v7 }
 0x49f   : > { %2329 = vadd.xlane.f32.xlu0 %v2328_v39  ;;  %4097 = vpow2.f32 %v2232_v30 }
 0x4a1   : > { %v1985_v24 = vpop.f32.mrf.mxu1 }
 0x4a2   : > { %v3897_v56 = vclamps-f32 %v1985_v24, 10.0 }
 0x4a4   : > { %v5709_v14 = vpop.eup %4095  ;;  %v2234_v38 = vmul.f32 1.442695, %v3897_v56  ;;  %v1903_v56 = vpop.f32.mrf.mxu0 }
 0x4a5   : > { %7982 = vst [vmem:[#allocation13_spill] sm:$0xff] %v5709_v14  ;;  %v2331_v53 = vadd.f32 %v5709_v14, %v5707_v7  ;;  %v5713_v39 = vpop.eup %4097  ;;  %v3902_v27 = vclamps-f32 %v1903_v56, 10.0 }
 0x4a6   : > { %4099 = vpow2.f32 %v2234_v38  ;;  %7983 = vst [vmem:[#allocation14_spill] sm:$0xff] %v5713_v39  ;;  %v2240_v38 = vmul.f32 1.442695, %v3900_v32 }
 0x4a7   : > { %2332 = vadd.xlane.f32.xlu1 %v2331_v53  ;;  %4101 = vpow2.f32 %v2236_v5  ;;  %v2244_v32 = vmul.f32 1.442695, %v3902_v27  ;;  %v3880_v27 = vclamps-f32 %v5602_v62, 10.0 }
 0x4a9   : > { %v1987_v18 = vpop.f32.mrf.mxu1 }
 0x4aa   : > { %v3899_v54 = vclamps-f32 %v1987_v18, 10.0 }
 0x4ac   : > { %v5715_v16 = vpop.eup %4099  ;;  %v2238_v24 = vmul.f32 1.442695, %v3899_v54 }
 0x4ad   : > { %7984 = vst [vmem:[#allocation16_spill] sm:$0xff] %v5715_v16  ;;  %v2334_v30 = vadd.f32 %v5715_v16, %v5713_v39  ;;  %v5723_v14 = vpop.eup %4101  ;;  %v5729_v16 = vpop.xlane.xlu0 %2287 }
 0x4ae   : > { %4103 = vpow2.f32 %v2238_v24  ;;  %7985 = vst [vmem:[#allocation18_spill] sm:$0xff] %v5723_v14  ;;  %v1906_v24 = vpop.f32.mrf.mxu0  ;;  %v5731_v39 = vpop.xlane.xlu1 %2290 }
 0x4af   : > { %2335 = vadd.xlane.f32.xlu0 %v2334_v30  ;;  %4105 = vpow2.f32 %v2240_v38  ;;  %v3904_v38 = vclamps-f32 %v1906_v24, 10.0  ;;  %v3881_v24 = vclamps-f32 %v5639_v21, 10.0  ;;  %v3847_v21 = vclamps-f32 %v5465_v44, 10.0 }
 0x4b1   : > { %v1990_v53 = vpop.f32.mrf.mxu1  ;;  %v2202_v62 = vmul.f32 1.442695, %v3881_v24  ;;  %v3850_v24 = vclamps-f32 %v5458_v9, 10.0 }
 0x4b2   : > { %v3901_v18 = vclamps-f32 %v1990_v53, 10.0 }
 0x4b4   : > { %v5725_v7 = vpop.eup %4103  ;;  %v2242_v54 = vmul.f32 1.442695, %v3901_v18 }
 0x4b5   : > { %7986 = vst [vmem:[#allocation26_spill] sm:$0xff] %v5725_v7  ;;  %v2337_v5 = vadd.f32 %v5725_v7, %v5723_v14  ;;  %v5733_v1 = vpop.eup %4105  ;;  %v2294_v7 = vpop.xlane.xlu0 %2293 }
 0x4b6   : > { %4107 = vpow2.f32 %v2242_v54  ;;  %7987 = vst [vmem:[#allocation22_spill] sm:$0xff] %v5733_v1  ;;  %v2248_v54 = vmul.f32 1.442695, %v3904_v38 }
 0x4b7   : > { %2338 = vadd.xlane.f32.xlu1 %v2337_v5  ;;  %4109 = vpow2.f32 %v2244_v32 }
 0x4b9   : > { %v1992_v30 = vpop.f32.mrf.mxu1 }
 0x4ba   : > { %v3903_v53 = vclamps-f32 %v1992_v30, 10.0  ;;  %v2297_v14 = vpop.xlane.xlu1 %2296  ;;  %v1908_v30 = vpop.f32.mrf.mxu0 }
 0x4bc   : > { %v5735_v28 = vpop.eup %4107  ;;  %v2246_v18 = vmul.f32 1.442695, %v3903_v53 }
 0x4bd   : > { %7988 = vst [vmem:[#allocation21_spill] sm:$0xff] %v5735_v28  ;;  %v2340_v56 = vadd.f32 %v5735_v28, %v5733_v1  ;;  %v5740_v15 = vpop.eup %4109 }
 0x4be   : > { %4111 = vpow2.f32 %v2246_v18  ;;  %v3906_v18 = vclamps-f32 %v1908_v30, 10.0  ;;  %v3846_v30 = vclamps-f32 %v5455_v43, 10.0 }
 0x4bf   : > { %2341 = vadd.xlane.f32.xlu0 %v2340_v56  ;;  %4113 = vpow2.f32 %v2248_v54  ;;  %v2200_v56 = vmul.f32 1.442695, %v3880_v27  ;;  %v3851_v54 = vclamps-f32 %v5478_v40, 10.0 }
 0x4c0   : > { %v2132_v40 = vmul.f32 1.442695, %v3846_v30 }
 0x4c1   : > { %v1995_v5 = vpop.f32.mrf.mxu1 }
 0x4c2   : > { %v3905_v34 = vclamps-f32 %v1995_v5, 10.0  ;;  %v2300_v38 = vpop.xlane.xlu0 %2299  ;;  %v2252_v5 = vmul.f32 1.442695, %v3906_v18 }
 0x4c4   : > { %v5742_v50 = vpop.eup %4111  ;;  %v2250_v32 = vmul.f32 1.442695, %v3905_v34 }
 0x4c5   : > { %v2343_v53 = vadd.f32 %v5742_v50, %v5740_v15  ;;  %v5747_v1 = vpop.eup %4113 }
 0x4c6   : > { %4115 = vpow2.f32 %v2250_v32 }
 0x4c7   : > { %2344 = vadd.xlane.f32.xlu1 %v2343_v53  ;;  %4117 = vrcp.f32 %v2300_v38  ;;  %v2134_v53 = vmul.f32 1.442695, %v3847_v21 }
 0x4c8   : > { %4119 = vpow2.f32 %v2200_v56  ;;  %v2140_v56 = vmul.f32 1.442695, %v3850_v24 }
 0x4c9   : > { %v1997_v28 = vpop.f32.mrf.mxu1 }
 0x4ca   : > { %v3907_v3 = vclamps-f32 %v1997_v28, 10.0  ;;  %v2303_v46 = vpop.xlane.xlu1 %2302 }
 0x4cb   : > { %4121 = vrcp.f32 %v2303_v46  ;;  %v2142_v46 = vmul.f32 1.442695, %v3851_v54 }
 0x4cc   : > { %v5750_v34 = vpop.eup %4115  ;;  %4123 = vpow2.f32 %v2202_v62  ;;  %v2254_v27 = vmul.f32 1.442695, %v3907_v3 }
 0x4cd   : > { %4125 = vpow2.f32 %v2252_v5  ;;  %v2346_v32 = vadd.f32 %v5750_v34, %v5747_v1  ;;  %v4118_v28 = vpop.eup %4117 }
 0x4ce   : > { %4127 = vpow2.f32 %v2254_v27  ;;  %v5757_v44 = vpop.eup %4119  ;;  %v2412_v43 = vmul.f32 %v4118_v28, %v5615_v13  ;;  %v2413_v9 = vmul.f32 %v4118_v28, %v5617_v36  ;;  %v3878_v13 = vclamps-f32 %v5590_v41, 10.0 }
 0x4cf   : > { %4129 = vrcp.f32 %v2297_v14  ;;  %2347 = vadd.xlane.f32.xlu0 %v2346_v32  ;;  %v3879_v14 = vclamps-f32 %v5637_v29, 10.0 }
 0x4d0   : > { %4131 = vrcp.f32 %v2294_v7  ;;  %v3883_v7 = vclamps-f32 %v5641_v6, 10.0 }
 0x4d1   : > { %v4122_v18 = vpop.eup %4121  ;;  %4133 = vpow2.f32 %v2134_v53  ;;  %v2198_v24 = vmul.f32 1.442695, %v3879_v14  ;;  %v2196_v53 = vmul.f32 1.442695, %v3878_v13 }
 0x4d2   : > { %v5759_v3 = vpop.eup %4123  ;;  %v2414_v38 = vmul.f32 %v4122_v18, %v5628_v59  ;;  %v2415_v62 = vmul.f32 %v4122_v18, %v5630_v35  ;;  %4135 = vpow2.f32 %v2142_v46  ;;  %v3882_v35 = vclamps-f32 %v5619_v11, 10.0 }
 0x4d3   : > { %v5765_v5 = vpop.eup %4125  ;;  %4137 = vpow2.f32 %v2132_v40  ;;  %v2310_v36 = vadd.f32 %v5759_v3, %v5757_v44  ;;  %v2206_v6 = vmul.f32 1.442695, %v3883_v7 }
 0x4d4   : > { %v5768_v21 = vpop.eup %4127  ;;  %v2462_v54 = vpack.c.bf16 %v2414_v38, %v2412_v43  ;;  %v2463_v27 = vpack.c.bf16 %v2415_v62, %v2413_v9  ;;  %4139 = vpow2.f32 %v2140_v56  ;;  %v2204_v11 = vmul.f32 1.442695, %v3882_v35 }
 0x4d5   : > { %v4130_v30 = vpop.eup %4129  ;;  %v2349_v59 = vadd.f32 %v5768_v21, %v5765_v5  ;;  %4141 = vrcp.f32 %v5731_v39 }
 0x4d6   : > { %2704 = vmatpush.bf16.xpose.msra.mxu2 %v2462_v54  ;;  %2793 = vmatpush.bf16.xpose.msra.mxu3 %v2463_v27  ;;  %v4132_v29 = vpop.eup %4131  ;;  %v2410_v41 = vmul.f32 %v4130_v30, %v5604_v47  ;;  %v2411_v32 = vmul.f32 %v4130_v30, %v5606_v55  ;;  %4143 = vrcp.f32 %v5729_v16  ;;  %v3877_v47 = vclamps-f32 %v5626_v60, 10.0 }
 0x4d7   : > { %2311 = vadd.xlane.f32.xlu0 %v2310_v36  ;;  %2350 = vadd.xlane.f32.xlu1 %v2349_v59  ;;  %v5780_v28 = vpop.eup %4133  ;;  %v2408_v18 = vmul.f32 %v4132_v29, %v5592_v25  ;;  %v2409_v40 = vmul.f32 %v4132_v29, %v5594_v45  ;;  %4145 = vpow2.f32 %v2198_v24  ;;  %v3876_v45 = vclamps-f32 %v5577_v48, 10.0 }
 0x4d8   : > { %v5783_v46 = vpop.eup %4135  ;;  %4147 = vpow2.f32 %v2206_v6  ;;  %v2194_v60 = vmul.f32 1.442695, %v3877_v47 }
 0x4d9   : > { %v5787_v39 = vpop.eup %4137  ;;  %v2460_v55 = vpack.c.bf16 %v2410_v41, %v2408_v18  ;;  %v2461_v43 = vpack.c.bf16 %v2411_v32, %v2409_v40  ;;  %4149 = vpow2.f32 %v2196_v53  ;;  %v2192_v48 = vmul.f32 1.442695, %v3876_v45 }
 0x4da   : > { %v5789_v56 = vpop.eup %4139  ;;  %v2259_v16 = vadd.f32 %v5787_v39, %v5780_v28  ;;  %4151 = vpow2.f32 %v2204_v11  ;;  %v7991_v40 = vpack.c.bf16 %v5655_v26, %v5652_v4 }
 0x4db   : > { %v4142_v9 = vpop.eup %4141  ;;  %v2265_v25 = vadd.f32 %v5789_v56, %v5783_v46  ;;  %4153 = vrcp.f32 %v5721_v52 }
 0x4dc   : > { %v4144_v38 = vpop.eup %4143  ;;  %v2406_v62 = vmul.f32 %v4142_v9, %v5579_v31  ;;  %v2407_v14 = vmul.f32 %v4142_v9, %v5581_v23  ;;  %4155 = vrcp.f32 %v5719_v51 }
 0x4dd   : > { %v5800_v7 = vpop.eup %4145  ;;  %v2404_v27 = vmul.f32 %v4144_v38, %v5567_v57  ;;  %v2405_v30 = vmul.f32 %v4144_v38, %v5569_v2  ;;  %4157 = vpow2.f32 %v2194_v60  ;;  %v7993_v38 = vld [vmem:[#allocation9_spill] sm:$0xff] }
 0x4de   : > { %2705 = vmatpush.bf16.xpose.msra.mxu2 %v2460_v55  ;;  %2794 = vmatpush.bf16.xpose.msra.mxu3 %v2461_v43  ;;  %v5803_v54 = vpop.eup %4147  ;;  %4159 = vpow2.f32 %v2192_v48  ;;  %v7995_v48 = vld [vmem:[#allocation7_spill] sm:$0xff] }
 0x4df   : > { %2260 = vadd.xlane.f32.xlu0 %v2259_v16  ;;  %2266 = vadd.xlane.f32.xlu1 %v2265_v25  ;;  %v5807_v13 = vpop.eup %4149  ;;  %v2458_v36 = vpack.c.bf16 %v2406_v62, %v2404_v27  ;;  %v2459_v31 = vpack.c.bf16 %v2407_v14, %v2405_v30  ;;  %v393_v16 = vld [vmem:[%s7656_s2 + $0x38] sm:$0xff] }
 0x4e0   : > { %v5809_v52 = vpop.eup %4151  ;;  %v2307_v23 = vadd.f32 %v5807_v13, %v5800_v7  ;;  %v7994_v62 = vld [vmem:[#allocation10_spill] sm:$0xff] }
 0x4e1   : > { %v4154_v59 = vpop.eup %4153  ;;  %v2313_v51 = vadd.f32 %v5809_v52, %v5803_v54 }
 0x4e2   : > { %v4156_v57 = vpop.eup %4155  ;;  %v2402_v2 = vmul.f32 %v4154_v59, %v5554_v33  ;;  %v2403_v35 = vmul.f32 %v4154_v59, %v5556_v63  ;;  %v7989_v33 = vpack.c.bf16 %v5683_v37, %v5680_v19  ;;  %v7992_v19 = vpack.c.bf16 %v5661_v20, %v5658_v49  ;;  %v392_v59 = vld [vmem:[%s7656_s2 + $0x30] sm:$0xff] }
 0x4e3   : > { %v5817_v29 = vpop.eup %4157  ;;  %v2400_v24 = vmul.f32 %v4156_v57, %v5539_v58  ;;  %v2401_v6 = vmul.f32 %v4156_v57, %v5543_v42  ;;  %v7990_v58 = vpack.c.bf16 %v5689_v8, %v5686_v17  ;;  %v387_v42 = vld [vmem:[%s7656_s2 + $0x8] sm:$0xff]  ;;  %v389_v17 = vld [vmem:[%s7656_s2 + $0x18] sm:$0xff] }
 0x4e4   : > { %v5821_v41 = vpop.eup %4159  ;;  %v399_v57 = vld [vmem:[%s7656_s2 + $0x68] sm:$0xff] }
 0x4e5   : > { %v2456_v32 = vpack.c.bf16 %v2402_v2, %v2400_v24  ;;  %v2457_v53 = vpack.c.bf16 %v2403_v35, %v2401_v6  ;;  %v2304_v11 = vadd.f32 %v5821_v41, %v5817_v29  ;;  %v396_v35 = vld [vmem:[%s7656_s2 + $0x50] sm:$0xff]  ;;  %v401_v24 = vld [vmem:[%s7656_s2 + $0x78] sm:$0xff] }
 0x4e6   : > { %2706 = vmatpush.bf16.xpose.msra.mxu2 %v2458_v36  ;;  %2795 = vmatpush.bf16.xpose.msra.mxu3 %v2459_v31  ;;  %v395_v31 = vld [vmem:[%s7656_s2 + $0x48] sm:$0xff] }
 0x4e7   : > { %2308 = vadd.xlane.f32.xlu0 %v2307_v23  ;;  %2314 = vadd.xlane.f32.xlu1 %v2313_v51  ;;  %v397_v23 = vld [vmem:[%s7656_s2 + $0x58] sm:$0xff]  ;;  %v394_v51 = vld [vmem:[%s7656_s2 + $0x40] sm:$0xff] }
 0x4ee   : > { %2707 = vmatpush.bf16.xpose.msra.mxu2 %v2456_v32  ;;  %2796 = vmatpush.bf16.xpose.msra.mxu3 %v2457_v53  ;;  %v398_v53 = vld [vmem:[%s7656_s2 + $0x60] sm:$0xff] }
 0x4ef   : > { %2305 = vadd.xlane.f32.xlu1 %v2304_v11  ;;  %v403_v11 = vld [vmem:[%s7656_s2 + $0x88] sm:$0xff] }
 0x4f2   : > { %v2318_v18 = vpop.xlane.xlu0 %2317 }
 0x4f3   : > { %4161 = vrcp.f32 %v2318_v18 }
 0x4f6   : > { %2708 = vmatpush.bf16.xpose.msra.mxu2 %v7989_v33  ;;  %2797 = vmatpush.bf16.xpose.msra.mxu3 %v7990_v58  ;;  %v400_v58 = vld [vmem:[%s7656_s2 + $0x70] sm:$0xff] }
 0x4f9   : > { %v4162_v37 = vpop.eup %4161 }
 0x4fa   : > { %v2321_v63 = vpop.xlane.xlu1 %2320  ;;  %v5844_v47 = vmul.f32 %v4162_v37, %v5645_v61  ;;  %v5850_v43 = vmul.f32 %v4162_v37, %v5647_v12  ;;  %v386_v61 = vld [vmem:[%s7656_s2] sm:$0xff]  ;;  %v391_v12 = vld [vmem:[%s7656_s2 + $0x28] sm:$0xff] }
 0x4fb   : > { %4163 = vrcp.f32 %v2321_v63  ;;  %457 = vperm.xlu0 %4006, %v387_v42   ;;  %v405_v42 = vld [vmem:[%s7656_s2 + $0x98] sm:$0xff]  ;;  %v407_v37 = vld [vmem:[%s7656_s2 + $0xa8] sm:$0xff] }
 0x4fe   : > { %2709 = vmatpush.bf16.xpose.msra.mxu2 %v7991_v40  ;;  %2798 = vmatpush.bf16.xpose.msra.mxu3 %v7992_v19  ;;  %v402_v19 = vld [vmem:[%s7656_s2 + $0x80] sm:$0xff] }
 0x501   : > { %v4164_v8 = vpop.eup %4163 }
 0x502   : > { %v5847_v55 = vmul.f32 %v4164_v8, %v5663_v0  ;;  %v5853_v4 = vmul.f32 %v4164_v8, %v5665_v22  ;;  %v2324_v20 = vpop.xlane.xlu0 %2323  ;;  %v388_v22 = vld [vmem:[%s7656_s2 + $0x10] sm:$0xff] }
 0x503   : > { %467 = vperm.xlu0 %4006, %v389_v17   ;;  %4165 = vrcp.f32 %v2324_v20 }
 0x504   : > { %v2468_v26 = vpack.c.bf16 %v5847_v55, %v5844_v47  ;;  %v2469_v49 = vpack.c.bf16 %v5853_v4, %v5850_v43 }
 0x508   : > { %452 = vperm.xlu1 %4007, %v386_v61   ;;  %v404_v61 = vld [vmem:[%s7656_s2 + $0x90] sm:$0xff] }
 0x509   : > { %v4166_v9 = vpop.eup %4165 }
 0x50a   : > { %v2327_v0 = vpop.xlane.xlu1 %2326  ;;  %v5872_v45 = vmul.f32 %v4166_v9, %v5673_v10  ;;  %v5878_v14 = vmul.f32 %v4166_v9, %v7994_v62  ;;  %v390_v10 = vld [vmem:[%s7656_s2 + $0x20] sm:$0xff] }
 0x50b   : > { %4167 = vrcp.f32 %v2327_v0  ;;  %477 = vperm.xlu0 %4006, %v391_v12   ;;  %v7996_v12 = vld [vmem:[#allocation5_spill] sm:$0xff]  ;;  %v410_v0 = vld [vmem:[%s7656_s2 + $0xc0] sm:$0xff] }
 0x510   : > { %462 = vperm.xlu1 %4007, %v388_v22  }
 0x511   : > { %v4168_v25 = vpop.eup %4167 }
 0x512   : > { %v5875_v60 = vmul.f32 %v4168_v25, %v7993_v38  ;;  %v5881_v27 = vmul.f32 %v4168_v25, %v7995_v48  ;;  %v5905_v2 = vpop.xlane.xlu0 %2329 }
 0x513   : > { %487 = vperm.xlu0 %4006, %v393_v16  }
 0x514   : > { %v2470_v30 = vpack.c.bf16 %v5875_v60, %v5872_v45  ;;  %v2471_v36 = vpack.c.bf16 %v5881_v27, %v5878_v14  ;;  %v8014_v60 = vld [vmem:[#allocation39_spill] sm:$0xff]  ;;  %v8015_v14 = vld [vmem:[#allocation30_spill] sm:$0xff] }
 0x518   : > { %472 = vperm.xlu1 %4007, %v390_v10  }
 0x51a   : > { %v5913_v6 = vpop.xlane.xlu1 %2332 }
 0x51b   : > { %497 = vperm.xlu0 %4006, %v395_v31  }
 0x520   : > { %482 = vperm.xlu1 %4007, %v392_v59   ;;  %v406_v59 = vld [vmem:[%s7656_s2 + $0xa0] sm:$0xff] }
 0x522   : > { %v2336_v32 = vpop.xlane.xlu0 %2335 }
 0x523   : > { %507 = vperm.xlu0 %4006, %v397_v23  }
 0x528   : > { %492 = vperm.xlu1 %4007, %v394_v51  }
 0x52a   : > { %v2339_v18 = vpop.xlane.xlu1 %2338 }
 0x52b   : > { %517 = vperm.xlu0 %4006, %v399_v57   ;;  %v2258_v57 = vpop.xlane.xlu2 %2257 }
 0x530   : > { %502 = vperm.xlu1 %4007, %v396_v35  }
 0x532   : > { %v2342_v33 = vpop.xlane.xlu0 %2341 }
 0x533   : > { %527 = vperm.xlu0 %4006, %v401_v24  }
 0x538   : > { %512 = vperm.xlu1 %4007, %v398_v53  }
 0x53a   : > { %v2345_v63 = vpop.xlane.xlu1 %2344 }
 0x53b   : > { %537 = vperm.xlu0 %4006, %v403_v11  }
 0x540   : > { %522 = vperm.xlu1 %4007, %v400_v58  }
 0x542   : > { %v2348_v40 = vpop.xlane.xlu0 %2347 }
 0x543   : > { %547 = vperm.xlu0 %4006, %v405_v42   ;;  %4169 = vrcp.f32 %v2348_v40 }
 0x548   : > { %532 = vperm.xlu1 %4007, %v402_v19   ;;  %v8000_v19 = vld [vmem:[#allocation21_spill] sm:$0xff] }
 0x549   : > { %v4170_v20 = vpop.eup %4169 }
 0x54a   : > { %v2351_v17 = vpop.xlane.xlu1 %2350  ;;  %v5933_v8 = vpop.xlane.xlu0 %2311  ;;  %v2444_v16 = vmul.f32 %v4170_v20, %v5747_v1  ;;  %v2445_v25 = vmul.f32 %v4170_v20, %v5750_v34  ;;  %v412_v34 = vld [vmem:[%s7656_s2 + $0xd0] sm:$0xff] }
 0x54b   : > { %557 = vperm.xlu0 %4006, %v407_v37   ;;  %4171 = vrcp.f32 %v2351_v17 }
 0x54c   : > { %4173 = vrcp.f32 %v7996_v12 }
 0x54d   : > { %4175 = vrcp.f32 %v2345_v63  ;;  %v7999_v63 = vld [vmem:[#allocation22_spill] sm:$0xff] }
 0x54e   : > { %4177 = vrcp.f32 %v2342_v33  ;;  %v7998_v33 = vld [vmem:[#allocation4_spill] sm:$0xff] }
 0x550   : > { %542 = vperm.xlu1 %4007, %v404_v61  }
 0x551   : > { %v4172_v22 = vpop.eup %4171 }
 0x552   : > { %v2267_v9 = vpop.xlane.xlu1 %2266  ;;  %v2446_v38 = vmul.f32 %v4172_v22, %v5765_v5  ;;  %v2447_v62 = vmul.f32 %v4172_v22, %v5768_v21  ;;  %v2261_v48 = vpop.xlane.xlu0 %2260  ;;  %v7997_v21 = vld [vmem:[#allocation11_spill] sm:$0xff] }
 0x553   : > { %572 = vperm.xlu0 %4006, %v410_v0   ;;  %4179 = vrcp.f32 %v2267_v9  ;;  %v4174_v23 = vpop.eup %4173  ;;  %v8001_v9 = vld [vmem:[#allocation18_spill] sm:$0xff] }
 0x554   : > { %v2478_v10 = vpack.c.bf16 %v2446_v38, %v2444_v16  ;;  %v2479_v31 = vpack.c.bf16 %v2447_v62, %v2445_v25  ;;  %v4176_v51 = vpop.eup %4175  ;;  %4181 = vrcp.f32 %v2261_v48  ;;  %v2388_v35 = vmul.f32 %v4174_v23, %v7997_v21  ;;  %v8002_v25 = vld [vmem:[#allocation26_spill] sm:$0xff]  ;;  %v8003_v62 = vld [vmem:[#allocation3_spill] sm:$0xff] }
 0x555   : > { %v4178_v1 = vpop.eup %4177  ;;  %4183 = vrcp.f32 %v2339_v18  ;;  %v2442_v24 = vmul.f32 %v4176_v51, %v5740_v15  ;;  %v2443_v53 = vmul.f32 %v4176_v51, %v5742_v50  ;;  %v2389_v58 = vmul.f32 %v4174_v23, %v7998_v33  ;;  %v409_v15 = vld [vmem:[%s7656_s2 + $0xb8] sm:$0xff]  ;;  %v8006_v51 = vld [vmem:[#allocation16_spill] sm:$0xff] }
 0x556   : > { %2882 = vmatpush.bf16.xpose.msra.mxu0 %v2478_v10  ;;  %2971 = vmatpush.bf16.xpose.msra.mxu1 %v2479_v31  ;;  %4185 = vrcp.f32 %v2258_v57  ;;  %v2440_v40 = vmul.f32 %v4178_v1, %v7999_v63  ;;  %v2441_v18 = vmul.f32 %v4178_v1, %v8000_v19  ;;  %v8004_v10 = vld [vmem:[#allocation6_spill] sm:$0xff]  ;;  %v8010_v63 = vld [vmem:[#allocation12_spill] sm:$0xff] }
 0x557   : > { %4187 = vrcp.f32 %v2336_v32  ;;  %v417_v21 = vld [vmem:[%s7656_s2 + $0xf8] sm:$0xff] }
 0x558   : > { %552 = vperm.xlu1 %4007, %v406_v59   ;;  %v2476_v20 = vpack.c.bf16 %v2442_v24, %v2440_v40  ;;  %v2477_v12 = vpack.c.bf16 %v2443_v53, %v2441_v18  ;;  %4189 = vrcp.f32 %v5913_v6  ;;  %v8005_v59 = vld [vmem:[#allocation14_spill] sm:$0xff]  ;;  %v8007_v24 = vld [vmem:[#allocation15_spill] sm:$0xff] }
 0x559   : > { %v4180_v5 = vpop.eup %4179  ;;  %4191 = vrcp.f32 %v5905_v2 }
 0x55a   : > { %v2390_v11 = vmul.f32 %v4180_v5, %v5789_v56  ;;  %v2391_v42 = vmul.f32 %v4180_v5, %v5783_v46  ;;  %v4182_v61 = vpop.eup %4181  ;;  %v414_v46 = vld [vmem:[%s7656_s2 + $0xe0] sm:$0xff]  ;;  %v2315_v2 = vpop.xlane.xlu1 %2314 }
 0x55b   : > { %582 = vperm.xlu0 %4006, %v412_v34   ;;  %v4184_v50 = vpop.eup %4183  ;;  %v2386_v0 = vmul.f32 %v4182_v61, %v5787_v39  ;;  %v2387_v22 = vmul.f32 %v4182_v61, %v5780_v28  ;;  %v411_v28 = vld [vmem:[%s7656_s2 + $0xc8] sm:$0xff]  ;;  %v2309_v19 = vpop.xlane.xlu0 %2308  ;;  %v2514_v61 = vld [vmem:[%s7657_s3 + $0x10] sm:$0xff]  ;;  %4193 = vrcp.f32 %v2315_v2 }
 0x55c   : > { %v2450_v37 = vpack.c.bf16 %v2390_v11, %v2388_v35  ;;  %v2451_v17 = vpack.c.bf16 %v2391_v42, %v2389_v58  ;;  %v4186_v56 = vpop.eup %4185  ;;  %v2438_v16 = vmul.f32 %v4184_v50, %v8001_v9  ;;  %v2439_v38 = vmul.f32 %v4184_v50, %v8002_v25  ;;  %v8008_v11 = vld [vmem:[#allocation13_spill] sm:$0xff]  ;;  %v8009_v58 = vld [vmem:[#allocation8_spill] sm:$0xff]  ;;  %v8013_v9 = vld [vmem:[#allocation27_spill] sm:$0xff] }
 0x55d   : > { %v4188_v32 = vpop.eup %4187  ;;  %v2384_v48 = vmul.f32 %v4186_v56, %v8003_v62  ;;  %v2385_v31 = vmul.f32 %v4186_v56, %v8004_v10  ;;  %v2517_v50 = vld [vmem:[%s7657_s3 + $0x28] sm:$0xff]  ;;  %v8011_v56 = vld [vmem:[#allocation29_spill] sm:$0xff]  ;;  %4195 = vrcp.f32 %v5933_v8 }
 0x55e   : > { %2710 = vmatpush.bf16.xpose.msra.mxu2 %v2450_v37  ;;  %2799 = vmatpush.bf16.xpose.msra.mxu3 %v2451_v17  ;;  %v2436_v23 = vmul.f32 %v4188_v32, %v8005_v59  ;;  %v2437_v6 = vmul.f32 %v4188_v32, %v8006_v51  ;;  %v4190_v5 = vpop.eup %4189  ;;  %v413_v17 = vld [vmem:[%s7656_s2 + $0xd8] sm:$0xff]  ;;  %v8012_v32 = vld [vmem:[#allocation43_spill] sm:$0xff]  ;;  %v8017_v25 = vld [vmem:[#allocation28_spill] sm:$0xff] }
 0x55f   : > { %2883 = vmatpush.bf16.xpose.msra.mxu0 %v2476_v20  ;;  %2972 = vmatpush.bf16.xpose.msra.mxu1 %v2477_v12  ;;  %v2448_v57 = vpack.c.bf16 %v2386_v0, %v2384_v48  ;;  %v2449_v1 = vpack.c.bf16 %v2387_v22, %v2385_v31  ;;  %v4192_v35 = vpop.eup %4191  ;;  %v2434_v53 = vmul.f32 %v4190_v5, %v8007_v24  ;;  %v8018_v62 = vld [vmem:[#allocation40_spill] sm:$0xff] }
 0x560   : > { %567 = vperm.xlu1 %4007, %v409_v15   ;;  %v2474_v39 = vpack.c.bf16 %v2438_v16, %v2436_v23  ;;  %v2475_v34 = vpack.c.bf16 %v2439_v38, %v2437_v6  ;;  %v2435_v33 = vmul.f32 %v4190_v5, %v8008_v11  ;;  %v2432_v42 = vmul.f32 %v4192_v35, %v8009_v58  ;;  %v416_v15 = vld [vmem:[%s7656_s2 + $0xf0] sm:$0xff]  ;;  %v2513_v10 = vld [vmem:[%s7657_s3 + $0x8] sm:$0xff]  ;;  %v2520_v23 = vld [vmem:[%s7657_s3 + $0x40] sm:$0xff] }
 0x561   : > { %v2433_v40 = vmul.f32 %v4192_v35, %v8010_v63  ;;  %v4194_v31 = vpop.eup %4193  ;;  %v8020_v5 = vld [vmem:[#allocation47_spill] sm:$0xff] }
 0x562   : > { %v2472_v18 = vpack.c.bf16 %v2434_v53, %v2432_v42  ;;  %v2306_v20 = vpop.xlane.xlu1 %2305  ;;  %v8024_v42 = vld [vmem:[#allocation48_spill] sm:$0xff] }
 0x563   : > { %592 = vperm.xlu0 %4006, %v414_v46   ;;  %v2473_v37 = vpack.c.bf16 %v2435_v33, %v2433_v40  ;;  %v4196_v51 = vpop.eup %4195  ;;  %4197 = vrcp.f32 %v2306_v20  ;;  %v8023_v33 = vld [vmem:[#allocation32_spill] sm:$0xff] }
 0x564   : > { %4199 = vrcp.f32 %v2309_v19  ;;  %v2420_v47 = vmul.f32 %v4196_v51, %v5757_v44  ;;  %v2421_v55 = vmul.f32 %v4196_v51, %v5759_v3  ;;  %v2523_v44 = vld [vmem:[%s7657_s3 + $0x58] sm:$0xff]  ;;  %v8021_v3 = vld [vmem:[#allocation33_spill] sm:$0xff] }
 0x566   : > { %2711 = vmatpush.bf16.xpose.msra.mxu2 %v2448_v57  ;;  %2800 = vmatpush.bf16.xpose.msra.mxu3 %v2449_v1  ;;  %v2422_v57 = vmul.f32 %v4194_v31, %v5809_v52  ;;  %v2423_v1 = vmul.f32 %v4194_v31, %v5803_v54 }
 0x567   : > { %2884 = vmatpush.bf16.xpose.msra.mxu0 %v2474_v39  ;;  %2973 = vmatpush.bf16.xpose.msra.mxu1 %v2475_v34  ;;  %v8019_v34 = vld [vmem:[#allocation31_spill] sm:$0xff] }
 0x568   : > { %577 = vperm.xlu1 %4007, %v411_v28   ;;  %v2466_v4 = vpack.c.bf16 %v2422_v57, %v2420_v47  ;;  %v8035_v47 = vld [vmem:[#allocation41_spill] sm:$0xff] }
 0x569   : > { %v4198_v39 = vpop.eup %4197 }
 0x56a   : > { %v4200_v54 = vpop.eup %4199  ;;  %v2416_v53 = vmul.f32 %v4198_v39, %v5821_v41  ;;  %v2417_v11 = vmul.f32 %v4198_v39, %v5817_v29  ;;  %v2519_v41 = vld [vmem:[%s7657_s3 + $0x38] sm:$0xff]  ;;  %v8037_v39 = vld [vmem:[#allocation45_spill] sm:$0xff] }
 0x56b   : > { %607 = vperm.xlu0 %4006, %v417_v21   ;;  %v8022_v21 = vld [vmem:[#allocation51_spill] sm:$0xff]  ;;  %v2418_v40 = vmul.f32 %v4200_v54, %v5807_v13  ;;  %v2419_v19 = vmul.f32 %v4200_v54, %v5800_v7  ;;  %v2526_v13 = vld [vmem:[%s7657_s3 + $0x70] sm:$0xff]  ;;  %v8040_v54 = vld [vmem:[#allocation64_spill] sm:$0xff] }
 0x56d   : > { %v458_v12 = vpop.permute.xlu0 %457  ;;  %v2464_v20 = vpack.c.bf16 %v2418_v40, %v2416_v53  ;;  %v2531_v53 = vld [vmem:[%s7657_s3 + $0x98] sm:$0xff]  ;;  %v2534_v40 = vld [vmem:[%s7657_s3 + $0xb0] sm:$0xff] }
 0x56e   : > { %v1102_v46 = vadd.f32 %v8011_v56, %v458_v12  ;;  %v1440_v0 = vadd.f32 %v8012_v32, %v458_v12  ;;  %v2465_v12 = vpack.c.bf16 %v2419_v19, %v2417_v11  ;;  %v2522_v56 = vld [vmem:[%s7657_s3 + $0x50] sm:$0xff] }
 0x56f   : > { %2885 = vmatpush.bf16.xpose.msra.mxu0 %v2472_v18  ;;  %2974 = vmatpush.bf16.xpose.msra.mxu1 %v2473_v37  ;;  %v8025_v18 = vld [vmem:[#allocation34_spill] sm:$0xff]  ;;  %v8043_v19 = vld [vmem:[#allocation49_spill] sm:$0xff] }
 0x570   : > { %587 = vperm.xlu1 %4007, %v413_v17   ;;  %v1271_v27 = vadd.f32 %v8015_v14, %v1102_v46  ;;  %v8026_v17 = vld [vmem:[#allocation52_spill] sm:$0xff]  ;;  %v8027_v46 = vld [vmem:[#allocation35_spill] sm:$0xff] }
 0x573   : > { %2556 = vperm.xlu0 %4006, %v2514_v61  }
 0x575   : > { %v468_v43 = vpop.permute.xlu0 %467 }
 0x576   : > { %v1107_v2 = vadd.f32 %v8021_v3, %v468_v43  ;;  %v1445_v35 = vadd.f32 %v8022_v21, %v468_v43  ;;  %v8036_v43 = vld [vmem:[#allocation63_spill] sm:$0xff] }
 0x577   : > { %2886 = vmatpush.bf16.xpose.msra.mxu0 %v2470_v30  ;;  %2975 = vmatpush.bf16.xpose.msra.mxu1 %v2471_v36  ;;  %v8016_v36 = vld [vmem:[#allocation44_spill] sm:$0xff] }
 0x578   : > { %602 = vperm.xlu1 %4007, %v416_v15   ;;  %v1609_v16 = vadd.f32 %v8016_v36, %v1440_v0  ;;  %v1276_v37 = vadd.f32 %v8025_v18, %v1107_v2  ;;  %v1614_v61 = vadd.f32 %v8026_v17, %v1445_v35  ;;  %v8028_v0 = vld [vmem:[#allocation55_spill] sm:$0xff]  ;;  %v8031_v36 = vld [vmem:[#allocation36_spill] sm:$0xff]  ;;  %v8041_v2 = vld [vmem:[#allocation46_spill] sm:$0xff] }
 0x579   : > { %v8042_v35 = vld [vmem:[#allocation68_spill] sm:$0xff] }
 0x57a   : > { %v453_v22 = vpop.permute.xlu1 %452 }
 0x57b   : > { %v1100_v45 = vadd.f32 %v8013_v9, %v453_v22  ;;  %v1438_v30 = vadd.f32 %v8014_v60, %v453_v22  ;;  %2571 = vperm.xlu0 %4006, %v2517_v50   ;;  %v2529_v9 = vld [vmem:[%s7657_s3 + $0x88] sm:$0xff] }
 0x57d   : > { %v1269_v38 = vadd.f32 %v8017_v25, %v1100_v45  ;;  %v1607_v48 = vadd.f32 %v8018_v62, %v1438_v30  ;;  %v478_v50 = vpop.permute.xlu0 %477  ;;  %v8029_v45 = vld [vmem:[#allocation37_spill] sm:$0xff]  ;;  %v8030_v30 = vld [vmem:[#allocation59_spill] sm:$0xff]  ;;  %v8032_v25 = vld [vmem:[#allocation56_spill] sm:$0xff] }
 0x57e   : > { %v1112_v60 = vadd.f32 %v8029_v45, %v478_v50  ;;  %v1450_v14 = vadd.f32 %v8030_v30, %v478_v50  ;;  %v8033_v62 = vld [vmem:[#allocation38_spill] sm:$0xff]  ;;  %v2537_v45 = vld [vmem:[%s7657_s3 + $0xc8] sm:$0xff] }
 0x57f   : > { %v2480_v59 = vpack.c.bf16 %v1271_v27, %v1269_v38  ;;  %v2481_v8 = vpack.c.bf16 %v1609_v16, %v1607_v48  ;;  %2887 = vmatpush.bf16.xpose.msra.mxu0 %v2468_v26  ;;  %2976 = vmatpush.bf16.xpose.msra.mxu1 %v2469_v49  ;;  %v2467_v26 = vpack.c.bf16 %v2423_v1, %v2421_v55  ;;  %v2516_v49 = vld [vmem:[%s7657_s3 + $0x20] sm:$0xff] }
 0x580   : > { %2551 = vperm.xlu1 %4007, %v2513_v10   ;;  %v1281_v48 = vadd.f32 %v8033_v62, %v1112_v60  ;;  %v8034_v10 = vld [vmem:[#allocation60_spill] sm:$0xff]  ;;  %v2528_v1 = vld [vmem:[%s7657_s3 + $0x80] sm:$0xff] }
 0x581   : > { %2712 = vmatmul.bf16.vlgmr.msra.gmra.mxu2 %v2480_v59  ;;  %2801 = vmatmul.bf16.vlgmr.msra.gmra.mxu3 %v2481_v8  ;;  %v1619_v31 = vadd.f32 %v8034_v10, %v1450_v14 }
 0x582   : > { %v463_v6 = vpop.permute.xlu1 %462 }
 0x583   : > { %2586 = vperm.xlu0 %4006, %v2520_v23   ;;  %v1105_v28 = vadd.f32 %v8019_v34, %v463_v6  ;;  %v1443_v52 = vadd.f32 %v8020_v5, %v463_v6  ;;  %v2532_v6 = vld [vmem:[%s7657_s3 + $0xa0] sm:$0xff] }
 0x585   : > { %v1274_v58 = vadd.f32 %v8023_v33, %v1105_v28  ;;  %v1612_v63 = vadd.f32 %v8024_v42, %v1443_v52  ;;  %v488_v27 = vpop.permute.xlu0 %487  ;;  %v8038_v28 = vld [vmem:[#allocation67_spill] sm:$0xff]  ;;  %v8039_v52 = vld [vmem:[#allocation42_spill] sm:$0xff]  ;;  %v2538_v42 = vld [vmem:[%s7657_s3 + $0xd0] sm:$0xff] }
 0x586   : > { %v1117_v34 = vadd.f32 %v8037_v39, %v488_v27  ;;  %v1455_v5 = vadd.f32 %v8038_v28, %v488_v27 }
 0x587   : > { %2888 = vmatpush.bf16.xpose.msra.mxu0 %v2466_v4  ;;  %2977 = vmatpush.bf16.xpose.msra.mxu1 %v2467_v26  ;;  %v2482_v29 = vpack.c.bf16 %v1276_v37, %v1274_v58  ;;  %v2483_v15 = vpack.c.bf16 %v1614_v61, %v1612_v63  ;;  %v8044_v37 = vld [vmem:[#allocation71_spill] sm:$0xff]  ;;  %v2541_v61 = vld [vmem:[%s7657_s3 + $0xe8] sm:$0xff] }
 0x588   : > { %2566 = vperm.xlu1 %4007, %v2516_v49   ;;  %v2535_v49 = vld [vmem:[%s7657_s3 + $0xb8] sm:$0xff]  ;;  %v1286_v21 = vadd.f32 %v8041_v2, %v1117_v34  ;;  %v8059_v34 = vld [vmem:[#allocation65_spill] sm:$0xff]  ;;  %v8062_v2 = vld [vmem:[#allocation91_spill] sm:$0xff] }
 0x58a   : > { %v473_v24 = vpop.permute.xlu1 %472 }
 0x58b   : > { %2601 = vperm.xlu0 %4006, %v2523_v44   ;;  %v1110_v32 = vadd.f32 %v8027_v46, %v473_v24  ;;  %v1448_v22 = vadd.f32 %v8028_v0, %v473_v24  ;;  %v1624_v24 = vadd.f32 %v8042_v35, %v1455_v5 }
 0x58d   : > { %v1279_v16 = vadd.f32 %v8031_v36, %v1110_v32  ;;  %v1617_v38 = vadd.f32 %v8032_v25, %v1448_v22  ;;  %v498_v57 = vpop.permute.xlu0 %497  ;;  %v8049_v32 = vld [vmem:[#allocation54_spill] sm:$0xff]  ;;  %v8050_v22 = vld [vmem:[#allocation76_spill] sm:$0xff]  ;;  %v2540_v36 = vld [vmem:[%s7657_s3 + $0xe0] sm:$0xff] }
 0x58f   : > { %2889 = vmatpush.bf16.xpose.msra.mxu0 %v2464_v20  ;;  %2978 = vmatpush.bf16.xpose.msra.mxu1 %v2465_v12  ;;  %v2484_v23 = vpack.c.bf16 %v1281_v48, %v1279_v16  ;;  %v2485_v51 = vpack.c.bf16 %v1619_v31, %v1617_v38  ;;  %v8045_v20 = vld [vmem:[#allocation53_spill] sm:$0xff]  ;;  %v8052_v38 = vld [vmem:[#allocation79_spill] sm:$0xff] }
 0x590   : > { %2581 = vperm.xlu1 %4007, %v2519_v41   ;;  %v1122_v12 = vadd.f32 %v8045_v20, %v498_v57  ;;  %v8051_v16 = vld [vmem:[#allocation57_spill] sm:$0xff]  ;;  %v8054_v31 = vld [vmem:[#allocation83_spill] sm:$0xff] }
 0x591   : > { %2717 = vmatmul.bf16.gmra.mxu2 %v2482_v29  ;;  %2806 = vmatmul.bf16.gmra.mxu3 %v2483_v15  ;;  %v8053_v48 = vld [vmem:[#allocation61_spill] sm:$0xff] }
 0x592   : > { %v483_v7 = vpop.permute.xlu1 %482  ;;  %v1291_v0 = vadd.f32 %v8049_v32, %v1122_v12  ;;  %v8068_v12 = vld [vmem:[#allocation95_spill] sm:$0xff] }
 0x593   : > { %2616 = vperm.xlu0 %4006, %v2526_v13   ;;  %v1115_v55 = vadd.f32 %v8035_v47, %v483_v7  ;;  %v1453_v4 = vadd.f32 %v8036_v43, %v483_v7  ;;  %v8047_v13 = vld [vmem:[#allocation50_spill] sm:$0xff]  ;;  %v8048_v7 = vld [vmem:[#allocation72_spill] sm:$0xff] }
 0x595   : > { %v1284_v44 = vadd.f32 %v8039_v52, %v1115_v55  ;;  %v1622_v3 = vadd.f32 %v8040_v54, %v1453_v4  ;;  %v508_v11 = vpop.permute.xlu0 %507  ;;  %v8058_v55 = vld [vmem:[#allocation84_spill] sm:$0xff]  ;;  %v2543_v4 = vld [vmem:[%s7657_s3 + $0xf8] sm:$0xff]  ;;  %v8060_v52 = vld [vmem:[#allocation87_spill] sm:$0xff] }
 0x596   : > { %2890 = vmatmul.bf16.vlgmr.msra.gmra.mxu0 %v2480_v59  ;;  %2979 = vmatmul.bf16.vlgmr.msra.gmra.mxu1 %v2481_v8  ;;  %v2525_v8 = vld [vmem:[%s7657_s3 + $0x68] sm:$0xff]  ;;  %v1127_v10 = vadd.f32 %v8053_v48, %v508_v11  ;;  %v8061_v54 = vld [vmem:[#allocation69_spill] sm:$0xff]  ;;  %v8076_v48 = vld [vmem:[#allocation103_spill] sm:$0xff] }
 0x597   : > { %v2486_v33 = vpack.c.bf16 %v1286_v21, %v1284_v44  ;;  %v2487_v58 = vpack.c.bf16 %v1624_v24, %v1622_v3  ;;  %v8063_v24 = vld [vmem:[#allocation66_spill] sm:$0xff] }
 0x598   : > { %2596 = vperm.xlu1 %4007, %v2522_v56  }
 0x59a   : > { %v493_v59 = vpop.permute.xlu1 %492 }
 0x59b   : > { %2631 = vperm.xlu0 %4006, %v2529_v9   ;;  %v1120_v18 = vadd.f32 %v8043_v19, %v493_v59  ;;  %v1458_v17 = vadd.f32 %v8044_v37, %v493_v59  ;;  %v1465_v59 = vadd.f32 %v8054_v31, %v508_v11  ;;  %v8064_v11 = vld [vmem:[#allocation88_spill] sm:$0xff] }
 0x59d   : > { %v518_v41 = vpop.permute.xlu0 %517  ;;  %v1289_v50 = vadd.f32 %v8047_v13, %v1120_v18  ;;  %v1627_v56 = vadd.f32 %v8048_v7, %v1458_v17  ;;  %v1634_v43 = vadd.f32 %v8058_v55, %v1465_v59  ;;  %v8070_v13 = vld [vmem:[#allocation99_spill] sm:$0xff]  ;;  %v8071_v7 = vld [vmem:[#allocation74_spill] sm:$0xff]  ;;  %v8077_v59 = vld [vmem:[#allocation85_spill] sm:$0xff] }
 0x59e   : > { %v1132_v3 = vadd.f32 %v8061_v54, %v518_v41  ;;  %v1470_v21 = vadd.f32 %v8062_v2, %v518_v41  ;;  %v8080_v55 = vld [vmem:[#allocation104_spill] sm:$0xff] }
 0x59f   : > { %v2488_v60 = vpack.c.bf16 %v1291_v0, %v1289_v50  ;;  %v8072_v0 = vld [vmem:[#allocation96_spill] sm:$0xff] }
 0x5a0   : > { %2611 = vperm.xlu1 %4007, %v2525_v8   ;;  %v8055_v8 = vld [vmem:[#allocation58_spill] sm:$0xff] }
 0x5a1   : > { %2722 = vmatmul.bf16.gmra.mxu2 %v2484_v23  ;;  %2811 = vmatmul.bf16.gmra.mxu3 %v2485_v51 }
 0x5a2   : > { %v503_v26 = vpop.permute.xlu1 %502 }
 0x5a3   : > { %2646 = vperm.xlu0 %4006, %v2532_v6   ;;  %v1125_v25 = vadd.f32 %v8051_v16, %v503_v26  ;;  %v1463_v62 = vadd.f32 %v8052_v38, %v503_v26 }
 0x5a5   : > { %v528_v14 = vpop.permute.xlu0 %527 }
 0x5a6   : > { %2895 = vmatmul.bf16.gmra.mxu0 %v2482_v29  ;;  %2984 = vmatmul.bf16.gmra.mxu1 %v2483_v15  ;;  %v8046_v29 = vld [vmem:[#allocation75_spill] sm:$0xff]  ;;  %v1475_v50 = vadd.f32 %v8070_v13, %v528_v14 }
 0x5a7   : > { %v1460_v15 = vadd.f32 %v8046_v29, %v498_v57  ;;  %v8057_v57 = vld [vmem:[#allocation62_spill] sm:$0xff]  ;;  %v8069_v29 = vld [vmem:[#allocation77_spill] sm:$0xff] }
 0x5a8   : > { %2626 = vperm.xlu1 %4007, %v2528_v1   ;;  %v1296_v1 = vadd.f32 %v8057_v57, %v1127_v10  ;;  %v8079_v57 = vld [vmem:[#allocation82_spill] sm:$0xff] }
 0x5a9   : > { %v1629_v9 = vadd.f32 %v8050_v22, %v1460_v15  ;;  %v1137_v15 = vadd.f32 %v8069_v29, %v528_v14  ;;  %v8075_v14 = vld [vmem:[#allocation81_spill] sm:$0xff] }
 0x5aa   : > { %v513_v63 = vpop.permute.xlu1 %512 }
 0x5ab   : > { %2661 = vperm.xlu0 %4006, %v2535_v49   ;;  %v2489_v30 = vpack.c.bf16 %v1629_v9, %v1627_v56  ;;  %v1130_v28 = vadd.f32 %v8059_v34, %v513_v63  ;;  %v1468_v44 = vadd.f32 %v8060_v52, %v513_v63  ;;  %v8073_v9 = vld [vmem:[#allocation78_spill] sm:$0xff] }
 0x5ad   : > { %v538_v47 = vpop.permute.xlu0 %537 }
 0x5b0   : > { %2641 = vperm.xlu1 %4007, %v2531_v53   ;;  %v1299_v53 = vadd.f32 %v8063_v24, %v1130_v28 }
 0x5b1   : > { %2727 = vmatmul.bf16.gmra.mxu2 %v2486_v33  ;;  %2816 = vmatmul.bf16.gmra.mxu3 %v2487_v58 }
 0x5b2   : > { %v523_v46 = vpop.permute.xlu1 %522 }
 0x5b3   : > { %2676 = vperm.xlu0 %4006, %v2538_v42   ;;  %v1473_v41 = vadd.f32 %v8068_v12, %v523_v46 }
 0x5b5   : > { %v6127_v5 = vpop.permute.xlu0 %547  ;;  %v1642_v22 = vadd.f32 %v8072_v0, %v1473_v41 }
 0x5b6   : > { %2900 = vmatmul.bf16.gmra.mxu0 %v2484_v23  ;;  %2989 = vmatmul.bf16.gmra.mxu1 %v2485_v51  ;;  %v1294_v23 = vadd.f32 %v8055_v8, %v1125_v25  ;;  %v8056_v51 = vld [vmem:[#allocation80_spill] sm:$0xff]  ;;  %v6154_v25 = vpop.permute.xlu2 %562  ;;  %v1142_v8 = vadd.f32 %v8077_v59, %v538_v47  ;;  %v8092_v59 = vld [vmem:[#allocation119_spill] sm:$0xff] }
 0x5b7   : > { %v1632_v6 = vadd.f32 %v8056_v51, %v1463_v62  ;;  %v8078_v51 = vld [vmem:[#allocation107_spill] sm:$0xff] }
 0x5b8   : > { %2656 = vperm.xlu1 %4007, %v2534_v40   ;;  %v2490_v49 = vpack.c.bf16 %v1296_v1, %v1294_v23  ;;  %v8066_v40 = vld [vmem:[#allocation92_spill] sm:$0xff] }
 0x5b9   : > { %v2491_v39 = vpack.c.bf16 %v1634_v43, %v1632_v6  ;;  %v1639_v19 = vadd.f32 %v8066_v40, %v1470_v21  ;;  %v1480_v6 = vadd.f32 %v8078_v51, %v538_v47  ;;  %v8083_v21 = vld [vmem:[#allocation89_spill] sm:$0xff] }
 0x5ba   : > { %v533_v27 = vpop.permute.xlu1 %532 }
 0x5bb   : > { %2691 = vperm.xlu0 %4006, %v2541_v61   ;;  %v8067_v61 = vld [vmem:[#allocation73_spill] sm:$0xff]  ;;  %v1140_v62 = vadd.f32 %v8075_v14, %v533_v27  ;;  %v1478_v10 = vadd.f32 %v8076_v48, %v533_v27 }
 0x5bc   : > { %v1135_v20 = vadd.f32 %v8067_v61, %v523_v46 }
 0x5bd   : > { %v6138_v17 = vpop.permute.xlu0 %557  ;;  %v1309_v1 = vadd.f32 %v8079_v57, %v1140_v62  ;;  %v1647_v43 = vadd.f32 %v8080_v55, %v1478_v10  ;;  %v8091_v62 = vld [vmem:[#allocation97_spill] sm:$0xff] }
 0x5be   : > { %v1304_v56 = vadd.f32 %v8071_v7, %v1135_v20  ;;  %v6163_v23 = vpop.permute.xlu2 %597  ;;  %v8088_v20 = vld [vmem:[#allocation112_spill] sm:$0xff] }
 0x5c0   : > { %2671 = vperm.xlu1 %4007, %v2537_v45   ;;  %v1306_v45 = vadd.f32 %v8073_v9, %v1137_v15  ;;  %v8089_v15 = vld [vmem:[#allocation94_spill] sm:$0xff] }
 0x5c1   : > { %2732 = vmatmul.bf16.gmra.mxu2 %v2488_v60  ;;  %2821 = vmatmul.bf16.gmra.mxu3 %v2489_v30 }
 0x5c2   : > { %v6124_v26 = vpop.permute.xlu1 %542  ;;  %v2494_v16 = vpack.c.bf16 %v1306_v45, %v1304_v56  ;;  %v8090_v56 = vld [vmem:[#allocation116_spill] sm:$0xff] }
 0x5c3   : > { %v1145_v24 = vadd.f32 %v8083_v21, %v6124_v26  ;;  %v8098_v21 = vld [vmem:[#allocation124_spill] sm:$0xff] }
 0x5c5   : > { %v6147_v32 = vpop.permute.xlu0 %572 }
 0x5c6   : > { %2905 = vmatmul.bf16.gmra.mxu0 %v2486_v33  ;;  %2994 = vmatmul.bf16.gmra.mxu1 %v2487_v58  ;;  %v1637_v33 = vadd.f32 %v8064_v11, %v1468_v44  ;;  %v8065_v58 = vld [vmem:[#allocation70_spill] sm:$0xff]  ;;  %v2547_v54 = vpop.permute.xlu2 %2546  ;;  %v8084_v11 = vld [vmem:[#allocation111_spill] sm:$0xff] }
 0x5c7   : > { %v1301_v42 = vadd.f32 %v8065_v58, %v1132_v3  ;;  %v8085_v58 = vld [vmem:[#allocation93_spill] sm:$0xff] }
 0x5c8   : > { %2686 = vperm.xlu1 %4007, %v2540_v36   ;;  %v2493_v37 = vpack.c.bf16 %v1639_v19, %v1637_v33  ;;  %v1483_v33 = vadd.f32 %v8084_v11, %v6124_v26  ;;  %v8086_v19 = vld [vmem:[#allocation115_spill] sm:$0xff] }
 0x5c9   : > { %v2492_v18 = vpack.c.bf16 %v1301_v42, %v1299_v53  ;;  %v1147_v42 = vadd.f32 %v8085_v58, %v6127_v5 }
 0x5ca   : > { %v6132_v35 = vpop.permute.xlu1 %552  ;;  %v1652_v12 = vadd.f32 %v8088_v20, %v1483_v33 }
 0x5cb   : > { %v1316_v13 = vadd.f32 %v8089_v15, %v1147_v42  ;;  %v1150_v48 = vadd.f32 %v8091_v62, %v6132_v35 }
 0x5cd   : > { %v6156_v38 = vpop.permute.xlu0 %582 }
 0x5d0   : > { %2701 = vperm.xlu1 %4007, %v2543_v4   ;;  %v8081_v4 = vld [vmem:[#allocation86_spill] sm:$0xff] }
 0x5d1   : > { %2737 = vmatmul.bf16.gmra.mxu2 %v2490_v49  ;;  %2826 = vmatmul.bf16.gmra.mxu3 %v2491_v39 }
 0x5d2   : > { %v6140_v63 = vpop.permute.xlu1 %567 }
 0x5d5   : > { %v6170_v28 = vpop.permute.xlu0 %592 }
 0x5d6   : > { %2910 = vmatmul.bf16.gmra.mxu0 %v2488_v60  ;;  %2999 = vmatmul.bf16.gmra.mxu1 %v2489_v30  ;;  %v8074_v60 = vld [vmem:[#allocation100_spill] sm:$0xff] }
 0x5d7   : > { %v1644_v30 = vadd.f32 %v8074_v60, %v1475_v50 }
 0x5d9   : > { %v2495_v46 = vpack.c.bf16 %v1644_v30, %v1642_v22 }
 0x5da   : > { %v6152_v36 = vpop.permute.xlu1 %577 }
 0x5dd   : > { %v6182_v40 = vpop.permute.xlu0 %607 }
 0x5e1   : > { %2742 = vmatmul.bf16.gmra.mxu2 %v2492_v18  ;;  %2831 = vmatmul.bf16.gmra.mxu3 %v2493_v37 }
 0x5e2   : > { %v6160_v31 = vpop.permute.xlu1 %587 }
 0x5e5   : > { %v2557_v45 = vpop.permute.xlu0 %2556 }
 0x5e6   : > { %2915 = vmatmul.bf16.gmra.mxu0 %v2490_v49  ;;  %3004 = vmatmul.bf16.gmra.mxu1 %v2491_v39  ;;  %v1311_v49 = vadd.f32 %v8081_v4, %v1142_v8  ;;  %v8082_v39 = vld [vmem:[#allocation108_spill] sm:$0xff]  ;;  %v1488_v8 = vadd.f32 %v8092_v59, %v6132_v35  ;;  %v8095_v4 = vld [vmem:[#allocation98_spill] sm:$0xff] }
 0x5e7   : > { %v1649_v34 = vadd.f32 %v8082_v39, %v1480_v6  ;;  %v8093_v6 = vld [vmem:[#allocation101_spill] sm:$0xff]  ;;  %v8096_v39 = vld [vmem:[#allocation120_spill] sm:$0xff] }
 0x5e8   : > { %v2496_v52 = vpack.c.bf16 %v1311_v49, %v1309_v1  ;;  %v1152_v57 = vadd.f32 %v8093_v6, %v6138_v17  ;;  %v8094_v1 = vld [vmem:[#allocation123_spill] sm:$0xff]  ;;  %v1319_v49 = vadd.f32 %v8095_v4, %v1150_v48 }
 0x5e9   : > { %v2497_v27 = vpack.c.bf16 %v1649_v34, %v1647_v43  ;;  %v1490_v55 = vadd.f32 %v8094_v1, %v6138_v17  ;;  %v2562_v43 = vpop.permute.xlu2 %2561  ;;  %v1657_v34 = vadd.f32 %v8096_v39, %v1488_v8 }
 0x5ea   : > { %v6172_v44 = vpop.permute.xlu1 %602 }
 0x5f1   : > { %2747 = vmatmul.bf16.gmra.mxu2 %v2494_v16  ;;  %2836 = vmatmul.bf16.gmra.mxu3 %v2495_v46 }
 0x5f2   : > { %v2552_v41 = vpop.permute.xlu1 %2551 }
 0x5f6   : > { %2920 = vmatmul.bf16.gmra.mxu0 %v2492_v18  ;;  %3009 = vmatmul.bf16.gmra.mxu1 %v2493_v37  ;;  %v1485_v18 = vadd.f32 %v8086_v19, %v6127_v5  ;;  %v8087_v37 = vld [vmem:[#allocation90_spill] sm:$0xff] }
 0x5f7   : > { %v1314_v61 = vadd.f32 %v8087_v37, %v1145_v24  ;;  %v1659_v24 = vadd.f32 %v8098_v21, %v1490_v55 }
 0x5f8   : > { %v1654_v26 = vadd.f32 %v8090_v56, %v1485_v18 }
 0x5f9   : > { %v2498_v22 = vpack.c.bf16 %v1316_v13, %v1314_v61  ;;  %v2501_v17 = vpack.c.bf16 %v1659_v24, %v1657_v34  ;;  %v2577_v34 = vpop.permute.xlu2 %2576  ;;  %v8108_v24 = vld [vmem:[#allocation137_spill] sm:$0xff] }
 0x5fa   : > { %v2499_v9 = vpack.c.bf16 %v1654_v26, %v1652_v12  ;;  %v2567_v19 = vpop.permute.xlu1 %2566  ;;  %v8101_v26 = vld [vmem:[#allocation105_spill] sm:$0xff] }
 0x601   : > { %2752 = vmatmul.bf16.gmra.mxu2 %v2496_v52  ;;  %2841 = vmatmul.bf16.gmra.mxu3 %v2497_v27 }
 0x604   : > { %v2713_v3 = vpop.f32.mrf.mxu2  ;;  %v2802_v47 = vpop.f32.mrf.mxu3 }
 0x605   : > { %v2714_v2 = vadd.f32 %v2713_v3, %v2547_v54 }
 0x606   : > { %2925 = vmatmul.bf16.gmra.mxu0 %v2494_v16  ;;  %3014 = vmatmul.bf16.gmra.mxu1 %v2495_v46 }
 0x607   : > { %v6176_v53 = vadd.f32 %v2802_v47, %v2714_v2 }
 0x60c   : > { %v2715_v29 = vpop.f32.mrf.mxu2  ;;  %v2804_v7 = vpop.f32.mrf.mxu3 }
 0x60d   : > { %v2716_v50 = vadd.f32 %v2715_v29, %v2552_v41  ;;  %v8099_v29 = vld [vmem:[#allocation109_spill] sm:$0xff] }
 0x60e   : > { %v1157_v15 = vadd.f32 %v8099_v29, %v6140_v63  ;;  %v2582_v29 = vpop.permute.xlu1 %2581 }
 0x60f   : > { %v6190_v0 = vadd.f32 %v2804_v7, %v2716_v50  ;;  %v8100_v50 = vld [vmem:[#allocation130_spill] sm:$0xff] }
 0x610   : > { %v1495_v7 = vadd.f32 %v8100_v50, %v6140_v63 }
 0x611   : > { %2757 = vmatmul.bf16.gmra.mxu2 %v2498_v22  ;;  %2846 = vmatmul.bf16.gmra.mxu3 %v2499_v9 }
 0x613   : > { %v2891_v5 = vpop.f32.mrf.mxu0  ;;  %v2980_v60 = vpop.f32.mrf.mxu1 }
 0x614   : > { %v2892_v30 = vadd.f32 %v2891_v5, %v2547_v54  ;;  %v2718_v16 = vpop.f32.mrf.mxu2  ;;  %v2807_v46 = vpop.f32.mrf.mxu3  ;;  %v1155_v5 = vadd.f32 %v8101_v26, %v6154_v25 }
 0x615   : > { %v2719_v14 = vadd.f32 %v2718_v16, %v2557_v45 }
 0x616   : > { %v6194_v10 = vadd.f32 %v2980_v60, %v2892_v30  ;;  %2930 = vmatmul.bf16.gmra.mxu0 %v2496_v52  ;;  %3019 = vmatmul.bf16.gmra.mxu1 %v2497_v27  ;;  %v8097_v52 = vld [vmem:[#allocation102_spill] sm:$0xff] }
 0x617   : > { %v6198_v51 = vadd.f32 %v2807_v46, %v2719_v14  ;;  %v1321_v27 = vadd.f32 %v8097_v52, %v1152_v57  ;;  %v8103_v30 = vld [vmem:[#allocation110_spill] sm:$0xff]  ;;  %v2572_v46 = vpop.permute.xlu0 %2571  ;;  %v8104_v14 = vld [vmem:[#allocation132_spill] sm:$0xff] }
 0x618   : > { %v1326_v16 = vadd.f32 %v8103_v30, %v1157_v15  ;;  %v1664_v62 = vadd.f32 %v8104_v14, %v1495_v7  ;;  %v8106_v57 = vld [vmem:[#allocation128_spill] sm:$0xff]  ;;  %v8112_v15 = vld [vmem:[#allocation139_spill] sm:$0xff] }
 0x619   : > { %v2500_v58 = vpack.c.bf16 %v1321_v27, %v1319_v49 }
 0x61b   : > { %v2893_v54 = vpop.f32.mrf.mxu0  ;;  %v2982_v3 = vpop.f32.mrf.mxu1 }
 0x61c   : > { %v2894_v2 = vadd.f32 %v2893_v54, %v2552_v41  ;;  %v2720_v47 = vpop.f32.mrf.mxu2  ;;  %v2809_v35 = vpop.f32.mrf.mxu3 }
 0x61d   : > { %v2721_v11 = vadd.f32 %v2720_v47, %v2562_v43  ;;  %v8107_v47 = vld [vmem:[#allocation117_spill] sm:$0xff] }
 0x61e   : > { %v6208_v33 = vadd.f32 %v2982_v3, %v2894_v2 }
 0x61f   : > { %v6210_v42 = vadd.f32 %v2809_v35, %v2721_v11  ;;  %v1162_v35 = vadd.f32 %v8107_v47, %v6152_v36  ;;  %v1500_v11 = vadd.f32 %v8108_v24, %v6152_v36  ;;  %v2592_v47 = vpop.permute.xlu2 %2591 }
 0x621   : > { %2762 = vmatmul.bf16.gmra.mxu2 %v2500_v58  ;;  %2851 = vmatmul.bf16.gmra.mxu3 %v2501_v17  ;;  %v1669_v50 = vadd.f32 %v8112_v15, %v1500_v11  ;;  %v8120_v11 = vld [vmem:[#allocation146_spill] sm:$0xff] }
 0x623   : > { %v2896_v18 = vpop.f32.mrf.mxu0  ;;  %v2985_v37 = vpop.f32.mrf.mxu1 }
 0x624   : > { %v2897_v61 = vadd.f32 %v2896_v18, %v2557_v45  ;;  %v2723_v20 = vpop.f32.mrf.mxu2  ;;  %v2812_v12 = vpop.f32.mrf.mxu3  ;;  %v8102_v45 = vld [vmem:[#allocation127_spill] sm:$0xff] }
 0x625   : > { %v2724_v41 = vadd.f32 %v2723_v20, %v2567_v19  ;;  %v1493_v60 = vadd.f32 %v8102_v45, %v6154_v25 }
 0x626   : > { %v6214_v13 = vadd.f32 %v2985_v37, %v2897_v61  ;;  %2935 = vmatmul.bf16.gmra.mxu0 %v2498_v22  ;;  %3024 = vmatmul.bf16.gmra.mxu1 %v2499_v9  ;;  %v8105_v22 = vld [vmem:[#allocation106_spill] sm:$0xff]  ;;  %v8109_v37 = vld [vmem:[#allocation113_spill] sm:$0xff] }
 0x627   : > { %v6218_v56 = vadd.f32 %v2812_v12, %v2724_v41  ;;  %v1324_v9 = vadd.f32 %v8105_v22, %v1155_v5  ;;  %v1662_v1 = vadd.f32 %v8106_v57, %v1493_v60  ;;  %v1160_v61 = vadd.f32 %v8109_v37, %v6147_v32  ;;  %v8111_v12 = vld [vmem:[#allocation118_spill] sm:$0xff]  ;;  %v8114_v60 = vld [vmem:[#allocation135_spill] sm:$0xff]  ;;  %v8115_v57 = vld [vmem:[#allocation125_spill] sm:$0xff] }
 0x628   : > { %v1331_v41 = vadd.f32 %v8111_v12, %v1162_v35  ;;  %v8119_v35 = vld [vmem:[#allocation126_spill] sm:$0xff] }
 0x629   : > { %v2502_v49 = vpack.c.bf16 %v1326_v16, %v1324_v9  ;;  %v2503_v25 = vpack.c.bf16 %v1664_v62, %v1662_v1  ;;  %v1167_v1 = vadd.f32 %v8115_v57, %v6160_v31 }
 0x62b   : > { %v2898_v48 = vpop.f32.mrf.mxu0  ;;  %v2987_v59 = vpop.f32.mrf.mxu1  ;;  %v1336_v24 = vadd.f32 %v8119_v35, %v1167_v1 }
 0x62c   : > { %v2899_v8 = vadd.f32 %v2898_v48, %v2562_v43  ;;  %v2725_v6 = vpop.f32.mrf.mxu2  ;;  %v2814_v63 = vpop.f32.mrf.mxu3 }
 0x62d   : > { %v2726_v55 = vadd.f32 %v2725_v6, %v2572_v46 }
 0x62e   : > { %v6228_v4 = vadd.f32 %v2987_v59, %v2899_v8  ;;  %v2587_v59 = vpop.permute.xlu0 %2586 }
 0x62f   : > { %v6230_v39 = vadd.f32 %v2814_v63, %v2726_v55 }
 0x631   : > { %2767 = vmatmul.bf16.gmra.mxu2 %v2502_v49  ;;  %2856 = vmatmul.bf16.gmra.mxu3 %v2503_v25 }
 0x633   : > { %v2901_v54 = vpop.f32.mrf.mxu0  ;;  %v2990_v3 = vpop.f32.mrf.mxu1 }
 0x634   : > { %v2902_v52 = vadd.f32 %v2901_v54, %v2567_v19  ;;  %v2728_v27 = vpop.f32.mrf.mxu2  ;;  %v2817_v2 = vpop.f32.mrf.mxu3  ;;  %v8110_v19 = vld [vmem:[#allocation134_spill] sm:$0xff]  ;;  %v8116_v54 = vld [vmem:[#allocation145_spill] sm:$0xff] }
 0x635   : > { %v2729_v43 = vadd.f32 %v2728_v27, %v2577_v34  ;;  %v1498_v20 = vadd.f32 %v8110_v19, %v6147_v32  ;;  %v8117_v27 = vld [vmem:[#allocation121_spill] sm:$0xff] }
 0x636   : > { %v6234_v21 = vadd.f32 %v2990_v3, %v2902_v52  ;;  %2940 = vmatmul.bf16.gmra.mxu0 %v2500_v58  ;;  %3029 = vmatmul.bf16.gmra.mxu1 %v2501_v17  ;;  %v8113_v58 = vld [vmem:[#allocation114_spill] sm:$0xff]  ;;  %v1505_v3 = vadd.f32 %v8116_v54, %v6160_v31  ;;  %v8127_v54 = vld [vmem:[#allocation131_spill] sm:$0xff] }
 0x637   : > { %v6238_v18 = vadd.f32 %v2817_v2, %v2729_v43  ;;  %v1329_v17 = vadd.f32 %v8113_v58, %v1160_v61  ;;  %v1667_v30 = vadd.f32 %v8114_v60, %v1498_v20  ;;  %v1165_v2 = vadd.f32 %v8117_v27, %v6156_v38  ;;  %v2602_v27 = vpop.permute.xlu0 %2601 }
 0x638   : > { %v1674_v37 = vadd.f32 %v8120_v11, %v1505_v3 }
 0x639   : > { %v2504_v62 = vpack.c.bf16 %v1331_v41, %v1329_v17  ;;  %v2505_v32 = vpack.c.bf16 %v1669_v50, %v1667_v30  ;;  %v8122_v41 = vld [vmem:[#allocation142_spill] sm:$0xff]  ;;  %v2597_v17 = vpop.permute.xlu1 %2596 }
 0x63b   : > { %v2903_v7 = vpop.f32.mrf.mxu0  ;;  %v2992_v26 = vpop.f32.mrf.mxu1 }
 0x63c   : > { %v2904_v5 = vadd.f32 %v2903_v7, %v2572_v46  ;;  %v2730_v45 = vpop.f32.mrf.mxu2  ;;  %v2819_v36 = vpop.f32.mrf.mxu3 }
 0x63d   : > { %v2731_v16 = vadd.f32 %v2730_v45, %v2582_v29 }
 0x63e   : > { %v6248_v14 = vadd.f32 %v2992_v26, %v2904_v5 }
 0x63f   : > { %v6250_v48 = vadd.f32 %v2819_v36, %v2731_v16  ;;  %v8123_v16 = vld [vmem:[#allocation129_spill] sm:$0xff] }
 0x641   : > { %2772 = vmatmul.bf16.gmra.mxu2 %v2504_v62  ;;  %2861 = vmatmul.bf16.gmra.mxu3 %v2505_v32 }
 0x643   : > { %v2906_v22 = vpop.f32.mrf.mxu0  ;;  %v2995_v9 = vpop.f32.mrf.mxu1 }
 0x644   : > { %v2907_v8 = vadd.f32 %v2906_v22, %v2577_v34  ;;  %v2733_v6 = vpop.f32.mrf.mxu2  ;;  %v2822_v63 = vpop.f32.mrf.mxu3  ;;  %v8118_v34 = vld [vmem:[#allocation141_spill] sm:$0xff]  ;;  %v1170_v22 = vadd.f32 %v8123_v16, %v6170_v28 }
 0x645   : > { %v2734_v46 = vadd.f32 %v2733_v6, %v2587_v59  ;;  %v1503_v43 = vadd.f32 %v8118_v34, %v6156_v38 }
 0x646   : > { %v6254_v55 = vadd.f32 %v2995_v9, %v2907_v8  ;;  %2945 = vmatmul.bf16.gmra.mxu0 %v2502_v49  ;;  %3034 = vmatmul.bf16.gmra.mxu1 %v2503_v25  ;;  %v8121_v49 = vld [vmem:[#allocation122_spill] sm:$0xff]  ;;  %v8124_v8 = vld [vmem:[#allocation147_spill] sm:$0xff]  ;;  %v1339_v3 = vadd.f32 %v8127_v54, %v1170_v22 }
 0x647   : > { %v6258_v52 = vadd.f32 %v2822_v63, %v2734_v46  ;;  %v1334_v25 = vadd.f32 %v8121_v49, %v1165_v2  ;;  %v1672_v15 = vadd.f32 %v8122_v41, %v1503_v43  ;;  %v1508_v6 = vadd.f32 %v8124_v8, %v6170_v28  ;;  %v8125_v46 = vld [vmem:[#allocation133_spill] sm:$0xff]  ;;  %v8128_v2 = vld [vmem:[#allocation148_spill] sm:$0xff]  ;;  %v8133_v22 = vld [vmem:[#allocation143_spill] sm:$0xff] }
 0x648   : > { %v1172_v57 = vadd.f32 %v8125_v46, %v6163_v23  ;;  %v1177_v8 = vadd.f32 %v8133_v22, %v6182_v40  ;;  %v8135_v46 = vld [vmem:[#allocation140_spill] sm:$0xff] }
 0x649   : > { %v2506_v26 = vpack.c.bf16 %v1336_v24, %v1334_v25  ;;  %v2507_v38 = vpack.c.bf16 %v1674_v37, %v1672_v15  ;;  %v1677_v34 = vadd.f32 %v8128_v2, %v1508_v6  ;;  %v8130_v37 = vld [vmem:[#allocation150_spill] sm:$0xff] }
 0x64b   : > { %v2908_v61 = vpop.f32.mrf.mxu0  ;;  %v2997_v19 = vpop.f32.mrf.mxu1 }
 0x64c   : > { %v2909_v20 = vadd.f32 %v2908_v61, %v2582_v29  ;;  %v2735_v12 = vpop.f32.mrf.mxu2  ;;  %v2824_v31 = vpop.f32.mrf.mxu3 }
 0x64d   : > { %v2736_v50 = vadd.f32 %v2735_v12, %v2592_v47  ;;  %v2607_v12 = vpop.permute.xlu2 %2606 }
 0x64e   : > { %v6268_v7 = vadd.f32 %v2997_v19, %v2909_v20 }
 0x64f   : > { %v6270_v58 = vadd.f32 %v2824_v31, %v2736_v50 }
 0x651   : > { %2777 = vmatmul.bf16.gmra.mxu2 %v2506_v26  ;;  %2866 = vmatmul.bf16.gmra.mxu3 %v2507_v38 }
 0x653   : > { %v2911_v5 = vpop.f32.mrf.mxu0  ;;  %v3000_v45 = vpop.f32.mrf.mxu1 }
 0x654   : > { %v2912_v36 = vadd.f32 %v2911_v5, %v2587_v59  ;;  %v2738_v60 = vpop.f32.mrf.mxu2  ;;  %v2827_v30 = vpop.f32.mrf.mxu3  ;;  %v8126_v59 = vld [vmem:[#allocation149_spill] sm:$0xff] }
 0x655   : > { %v2739_v29 = vadd.f32 %v2738_v60, %v2597_v17  ;;  %v1510_v1 = vadd.f32 %v8126_v59, %v6163_v23  ;;  %v2612_v59 = vpop.permute.xlu1 %2611 }
 0x656   : > { %v6274_v9 = vadd.f32 %v3000_v45, %v2912_v36  ;;  %2950 = vmatmul.bf16.gmra.mxu0 %v2504_v62  ;;  %3039 = vmatmul.bf16.gmra.mxu1 %v2505_v32  ;;  %v8129_v62 = vld [vmem:[#allocation136_spill] sm:$0xff]  ;;  %v8131_v45 = vld [vmem:[#allocation138_spill] sm:$0xff] }
 0x657   : > { %v6278_v63 = vadd.f32 %v2827_v30, %v2739_v29  ;;  %v1341_v32 = vadd.f32 %v8129_v62, %v1172_v57  ;;  %v1679_v61 = vadd.f32 %v8130_v37, %v1510_v1  ;;  %v1175_v36 = vadd.f32 %v8131_v45, %v6172_v44  ;;  %v8132_v30 = vld [vmem:[#allocation151_spill] sm:$0xff]  ;;  %v8136_v1 = vld [vmem:[#allocation152_spill] sm:$0xff]  ;;  %v2617_v37 = vpop.permute.xlu0 %2616 }
 0x658   : > { %v1513_v29 = vadd.f32 %v8132_v30, %v6172_v44 }
 0x659   : > { %v2508_v25 = vpack.c.bf16 %v1341_v32, %v1339_v3  ;;  %v2509_v23 = vpack.c.bf16 %v1679_v61, %v1677_v34  ;;  %v1344_v57 = vadd.f32 %v8135_v46, %v1175_v36 }
 0x65a   : > { %v1682_v54 = vadd.f32 %v8136_v1, %v1513_v29 }
 0x65b   : > { %v2913_v43 = vpop.f32.mrf.mxu0  ;;  %v3002_v35 = vpop.f32.mrf.mxu1 }
 0x65c   : > { %v2914_v24 = vadd.f32 %v2913_v43, %v2592_v47  ;;  %v2740_v11 = vpop.f32.mrf.mxu2  ;;  %v2829_v28 = vpop.f32.mrf.mxu3 }
 0x65d   : > { %v2741_v19 = vadd.f32 %v2740_v11, %v2602_v27 }
 0x65e   : > { %v6288_v49 = vadd.f32 %v3002_v35, %v2914_v24  ;;  %v8138_v35 = vld [vmem:[#allocation154_spill] sm:$0xff] }
 0x65f   : > { %v6290_v20 = vadd.f32 %v2829_v28, %v2741_v19 }
 0x661   : > { %2782 = vmatmul.bf16.gmra.mxu2 %v2508_v25  ;;  %2871 = vmatmul.bf16.gmra.mxu3 %v2509_v23 }
 0x663   : > { %v2916_v31 = vpop.f32.mrf.mxu0  ;;  %v3005_v41 = vpop.f32.mrf.mxu1 }
 0x664   : > { %v2917_v15 = vadd.f32 %v2916_v31, %v2597_v17  ;;  %v2743_v50 = vpop.f32.mrf.mxu2  ;;  %v2832_v5 = vpop.f32.mrf.mxu3  ;;  %v8134_v17 = vld [vmem:[#allocation153_spill] sm:$0xff] }
 0x665   : > { %v2744_v47 = vadd.f32 %v2743_v50, %v2607_v12  ;;  %v1515_v6 = vadd.f32 %v8134_v17, %v6182_v40 }
 0x666   : > { %v6294_v60 = vadd.f32 %v3005_v41, %v2917_v15  ;;  %2955 = vmatmul.bf16.gmra.mxu0 %v2506_v26  ;;  %3044 = vmatmul.bf16.gmra.mxu1 %v2507_v38  ;;  %v8137_v26 = vld [vmem:[#allocation144_spill] sm:$0xff] }
 0x667   : > { %v6298_v16 = vadd.f32 %v2832_v5, %v2744_v47  ;;  %v1346_v38 = vadd.f32 %v8137_v26, %v1177_v8  ;;  %v1684_v62 = vadd.f32 %v8138_v35, %v1515_v6  ;;  %v2622_v47 = vpop.permute.xlu2 %2621 }
 0x669   : > { %v2510_v11 = vpack.c.bf16 %v1346_v38, %v1344_v57  ;;  %v2511_v40 = vpack.c.bf16 %v1684_v62, %v1682_v54 }
 0x66b   : > { %v2918_v3 = vpop.f32.mrf.mxu0  ;;  %v3007_v2 = vpop.f32.mrf.mxu1 }
 0x66c   : > { %v2919_v34 = vadd.f32 %v2918_v3, %v2602_v27  ;;  %v2745_v43 = vpop.f32.mrf.mxu2  ;;  %v2834_v44 = vpop.f32.mrf.mxu3 }
 0x66d   : > { %v2746_v32 = vadd.f32 %v2745_v43, %v2612_v59 }
 0x66e   : > { %v6308_v24 = vadd.f32 %v3007_v2, %v2919_v34 }
 0x66f   : > { %v6310_v28 = vadd.f32 %v2834_v44, %v2746_v32 }
 0x671   : > { %2787 = vmatmul.bf16.gmra.mxu2 %v2510_v11  ;;  %2876 = vmatmul.bf16.gmra.mxu3 %v2511_v40 }
 0x673   : > { %v2921_v61 = vpop.f32.mrf.mxu0  ;;  %v3010_v19 = vpop.f32.mrf.mxu1 }
 0x674   : > { %v2922_v31 = vadd.f32 %v2921_v61, %v2607_v12  ;;  %v2748_v41 = vpop.f32.mrf.mxu2  ;;  %v2837_v15 = vpop.f32.mrf.mxu3 }
 0x675   : > { %v2749_v27 = vadd.f32 %v2748_v41, %v2617_v37  ;;  %v2627_v12 = vpop.permute.xlu1 %2626 }
 0x676   : > { %v6312_v50 = vadd.f32 %v3010_v19, %v2922_v31  ;;  %2960 = vmatmul.bf16.gmra.mxu0 %v2508_v25  ;;  %3049 = vmatmul.bf16.gmra.mxu1 %v2509_v23 }
 0x677   : > { %v6314_v5 = vadd.f32 %v2837_v15, %v2749_v27 }
 0x67b   : > { %v2923_v45 = vpop.f32.mrf.mxu0  ;;  %v3012_v36 = vpop.f32.mrf.mxu1 }
 0x67c   : > { %v2924_v30 = vadd.f32 %v2923_v45, %v2612_v59  ;;  %v2750_v29 = vpop.f32.mrf.mxu2  ;;  %v2839_v22 = vpop.f32.mrf.mxu3 }
 0x67d   : > { %v2751_v8 = vadd.f32 %v2750_v29, %v2622_v47  ;;  %v2632_v59 = vpop.permute.xlu0 %2631  ;;  %v2642_v45 = vpop.permute.xlu1 %2641 }
 0x67e   : > { %v6316_v17 = vadd.f32 %v3012_v36, %v2924_v30 }
 0x67f   : > { %v6318_v6 = vadd.f32 %v2839_v22, %v2751_v8 }
 0x683   : > { %v2926_v46 = vpop.f32.mrf.mxu0  ;;  %v3015_v57 = vpop.f32.mrf.mxu1 }
 0x684   : > { %v2927_v1 = vadd.f32 %v2926_v46, %v2617_v37  ;;  %v2753_v54 = vpop.f32.mrf.mxu2  ;;  %v2842_v25 = vpop.f32.mrf.mxu3 }
 0x685   : > { %v2754_v23 = vadd.f32 %v2753_v54, %v2627_v12  ;;  %v2637_v37 = vpop.permute.xlu2 %2636 }
 0x686   : > { %v6320_v3 = vadd.f32 %v3015_v57, %v2927_v1  ;;  %2965 = vmatmul.bf16.gmra.mxu0 %v2510_v11  ;;  %3054 = vmatmul.bf16.gmra.mxu1 %v2511_v40  ;;  %v2647_v1 = vpop.permute.xlu0 %2646 }
 0x687   : > { %v6322_v2 = vadd.f32 %v2842_v25, %v2754_v23 }
 0x68b   : > { %v2928_v26 = vpop.f32.mrf.mxu0  ;;  %v3017_v38 = vpop.f32.mrf.mxu1 }
 0x68c   : > { %v2929_v34 = vadd.f32 %v2928_v26, %v2622_v47  ;;  %v2755_v43 = vpop.f32.mrf.mxu2  ;;  %v2844_v44 = vpop.f32.mrf.mxu3 }
 0x68d   : > { %v2756_v35 = vadd.f32 %v2755_v43, %v2632_v59 }
 0x68e   : > { %v6324_v62 = vadd.f32 %v3017_v38, %v2929_v34 }
 0x68f   : > { %v6326_v32 = vadd.f32 %v2844_v44, %v2756_v35 }
 0x693   : > { %v2931_v61 = vpop.f32.mrf.mxu0  ;;  %v3020_v19 = vpop.f32.mrf.mxu1 }
 0x694   : > { %v2932_v31 = vadd.f32 %v2931_v61, %v2627_v12  ;;  %v2758_v41 = vpop.f32.mrf.mxu2  ;;  %v2847_v11 = vpop.f32.mrf.mxu3 }
 0x695   : > { %v2759_v40 = vadd.f32 %v2758_v41, %v2637_v37 }
 0x696   : > { %v6328_v15 = vadd.f32 %v3020_v19, %v2932_v31 }
 0x697   : > { %v6330_v27 = vadd.f32 %v2847_v11, %v2759_v40  ;;  %v2657_v40 = vpop.permute.xlu1 %2656 }
 0x69b   : > { %v2933_v47 = vpop.f32.mrf.mxu0  ;;  %v3022_v36 = vpop.f32.mrf.mxu1 }
 0x69c   : > { %v2934_v30 = vadd.f32 %v2933_v47, %v2632_v59  ;;  %v2760_v29 = vpop.f32.mrf.mxu2  ;;  %v2849_v22 = vpop.f32.mrf.mxu3 }
 0x69d   : > { %v2761_v8 = vadd.f32 %v2760_v29, %v2642_v45  ;;  %v2652_v59 = vpop.permute.xlu2 %2651 }
 0x69e   : > { %v6332_v46 = vadd.f32 %v3022_v36, %v2934_v30  ;;  %v6344_v30 = vstv %s3062_s12 }
 0x69f   : > { %v6334_v57 = vadd.f32 %v2849_v22, %v2761_v8 }
 0x6a3   : > { %v2936_v12 = vpop.f32.mrf.mxu0  ;;  %v3025_v54 = vpop.f32.mrf.mxu1 }
 0x6a4   : > { %v2937_v25 = vadd.f32 %v2936_v12, %v2637_v37  ;;  %v2763_v23 = vpop.f32.mrf.mxu2  ;;  %v2852_v26 = vpop.f32.mrf.mxu3 }
 0x6a5   : > { %v2764_v38 = vadd.f32 %v2763_v23, %v2647_v1  ;;  %v3068_v23 = vmul.f32 %v6344_v30, %v6198_v51 }
 0x6a6   : > { %v6336_v34 = vadd.f32 %v3025_v54, %v2937_v25  ;;  %v3064_v54 = vmul.f32 %v6344_v30, %v6176_v53 }
 0x6a7   : > { %v6338_v43 = vadd.f32 %v2852_v26, %v2764_v38  ;;  %v3070_v26 = vmul.f32 %v6344_v30, %v6210_v42  ;;  %v6357_v38 = vld [vmem:[%s4335_s30] sm:$0xff]  ;;  %v6373_v42 = vld [vmem:[%s4335_s30 + $0x30] sm:$0xff] }
 0x6a8   : > { %8141 = vst [vmem:[#allocation19_spill] sm:$0xff] %v6373_v42 }
 0x6ab   : > { %v2938_v44 = vpop.f32.mrf.mxu0  ;;  %v3027_v35 = vpop.f32.mrf.mxu1 }
 0x6ac   : > { %v2939_v61 = vadd.f32 %v2938_v44, %v2642_v45  ;;  %v2765_v19 = vpop.f32.mrf.mxu2  ;;  %v2854_v31 = vpop.f32.mrf.mxu3  ;;  %v3066_v44 = vmul.f32 %v6344_v30, %v6190_v0  ;;  %v3069_v0 = vmul.f32 %v6344_v30, %v6214_v13  ;;  %v6395_v13 = vld [vmem:[%s4335_s30 + $0x10] sm:$0xff] }
 0x6ad   : > { %v2766_v41 = vadd.f32 %v2765_v19, %v2652_v59  ;;  %v6367_v19 = vld [vmem:[%s4335_s30 + $0x20] sm:$0xff]  ;;  %8143 = vst [vmem:[#allocation24_spill] sm:$0xff] %v6395_v13 }
 0x6ae   : > { %v6340_v11 = vadd.f32 %v3027_v35, %v2939_v61  ;;  %v3065_v35 = vmul.f32 %v6344_v30, %v6194_v10  ;;  %8139 = vst [vmem:[#allocation20_spill] sm:$0xff] %v6367_v19  ;;  %v6370_v51 = vadd.f32 %v6367_v19, %v3068_v23  ;;  %v6419_v23 = vld [vmem:[%s4335_s30 + $0x40] sm:$0xff] }
 0x6af   : > { %v6342_v37 = vadd.f32 %v2854_v31, %v2766_v41  ;;  %v6376_v31 = vadd.f32 %v6373_v42, %v3070_v26  ;;  %8148 = vst [vmem:[#allocation5_spill] sm:$0xff] %v6419_v23 }
 0x6b0   : > { %8140 = vst [vmem:[#allocation17_spill] sm:$0xff] %v6370_v51  ;;  %vm3196_vm1 = vcmp.ne.f32.partialorder %v6370_v51, %v6370_v51  ;;  %v6497_v51 = vld [vmem:[%s4335_s30 + $0x70] sm:$0xff] }
 0x6b1   : > { %8142 = vst [vmem:[#allocation23_spill] sm:$0xff] %v6376_v31  ;;  %vm3198_vm2 = vcmp.ne.f32.partialorder %v6376_v31, %v6376_v31  ;;  %v6485_v31 = vld [vmem:[%s4335_s30 + $0x60] sm:$0xff] }
 0x6b2   : > { %8157 = vst [vmem:[#allocation14_spill] sm:$0xff] %v6485_v31 }
 0x6b3   : > { %v2941_v47 = vpop.f32.mrf.mxu0  ;;  %v3030_v36 = vpop.f32.mrf.mxu1  ;;  %8160 = vst [vmem:[#allocation13_spill] sm:$0xff] %v6497_v51 }
 0x6b4   : > { %v2942_v29 = vadd.f32 %v2941_v47, %v2647_v1  ;;  %v2768_v45 = vpop.f32.mrf.mxu2  ;;  %v2857_v22 = vpop.f32.mrf.mxu3  ;;  %v6360_v1 = vadd.f32 %v6357_v38, %v3064_v54 }
 0x6b5   : > { %v2769_v8 = vadd.f32 %v2768_v45, %v2657_v40  ;;  %v3074_v45 = vmul.f32 %v6344_v30, %v6230_v39  ;;  %v6413_v39 = vld [vmem:[%s4335_s30 + $0x28] sm:$0xff] }
 0x6b6   : > { %v6346_v12 = vadd.f32 %v3030_v36, %v2942_v29  ;;  %v3072_v36 = vmul.f32 %v6344_v30, %v6218_v56  ;;  %v3071_v29 = vmul.f32 %v6344_v30, %v6228_v4  ;;  %vm3192_vm0 = vcmp.ne.f32.partialorder %v6360_v1, %v6360_v1  ;;  %8146 = vst [vmem:[#allocation10_spill] sm:$0xff] %v6413_v39 }
 0x6b7   : > { %v6350_v25 = vadd.f32 %v2857_v22, %v2769_v8  ;;  %v6401_v8 = vld [vmem:[%s4335_s30 + $0x8] sm:$0xff]  ;;  %v3067_v4 = vmul.f32 %v6344_v30, %v6208_v33  ;;  %v6416_v54 = vadd.f32 %v6413_v39, %v3069_v0  ;;  %v6431_v33 = vld [vmem:[%s4335_s30 + $0x50] sm:$0xff]  ;;  %v3076_v0 = vmul.f32 %v6344_v30, %v6238_v18 }
 0x6b8   : > { %8145 = vst [vmem:[#allocation9_spill] sm:$0xff] %v6401_v8  ;;  %v6404_v56 = vadd.f32 %v6401_v8, %v3065_v35  ;;  %v6422_v26 = vadd.f32 %v6419_v23, %v3072_v36  ;;  %v3078_v36 = vmul.f32 %v6344_v30, %v6250_v48  ;;  %v7706_v23 = vmov 0.0   ;;  %v6457_v48 = vld [vmem:[%s4335_s30 + $0x18] sm:$0xff] }
 0x6b9   : > { %8147 = vst [vmem:[#allocation7_spill] sm:$0xff] %v6416_v54  ;;  %vm3197_vm5 = vcmp.ne.f32.partialorder %v6416_v54, %v6416_v54  ;;  %v8162_v8 = vmov 0.0  }
 0x6ba   : > { %8149 = vst [vmem:[#allocation11_spill] sm:$0xff] %v6422_v26  ;;  %vm3193_vm4 = vcmp.ne.f32.partialorder %v6404_v56, %v6404_v56  ;;  %vm3200_vm6 = vcmp.ne.f32.partialorder %v6422_v26, %v6422_v26 }
 0x6bb   : > { %v2943_v53 = vpop.f32.mrf.mxu0  ;;  %v3032_v61 = vpop.f32.mrf.mxu1  ;;  %8152 = vst [vmem:[#allocation21_spill] sm:$0xff] %v6431_v33 }
 0x6bc   : > { %v2944_v41 = vadd.f32 %v2943_v53, %v2652_v59  ;;  %v6380_v10 = vpop.f32.mrf.mxu2  ;;  %v6382_v47 = vpop.f32.mrf.mxu3  ;;  %v6398_v59 = vadd.f32 %v6395_v13, %v3066_v44  ;;  %v6425_v44 = vld [vmem:[%s4335_s30 + $0x38] sm:$0xff]  ;;  %v6434_v53 = vadd.f32 %v6431_v33, %v3074_v45  ;;  %8154 = vst [vmem:[#allocation26_spill] sm:$0xff] %v6457_v48  ;;  %v6460_v45 = vadd.f32 %v6457_v48, %v3067_v4  ;;  %v6479_v4 = vld [vmem:[%s4335_s30 + $0x48] sm:$0xff] }
 0x6bd   : > { %8150 = vst [vmem:[#allocation4_spill] sm:$0xff] %v6425_v44  ;;  %v6428_v35 = vadd.f32 %v6425_v44, %v3071_v29  ;;  %v3256_v29 = vsel %vm3192_vm0, 1.0, %v7706_v23  ;;  %v3262_v33 = vsel %vm3198_vm2, 1.0, %v7706_v23  ;;  %v6500_v48 = vadd.f32 %v6497_v51, %v3078_v36 }
 0x6be   : > { %v6390_v22 = vadd.f32 %v3032_v61, %v2944_v41  ;;  %8144 = vst [vmem:[#allocation25_spill] sm:$0xff] %v6398_v59  ;;  %v3073_v61 = vmul.f32 %v6344_v30, %v6234_v21  ;;  %v3075_v41 = vmul.f32 %v6344_v30, %v6248_v14  ;;  %vm3194_vm3 = vcmp.ne.f32.partialorder %v6398_v59, %v6398_v59 }
 0x6bf   : > { %8151 = vst [vmem:[#allocation22_spill] sm:$0xff] %v6428_v35  ;;  %v3260_v21 = vsel %vm3196_vm1, 1.0, %v7706_v23  ;;  %vm3199_vm7 = vcmp.ne.f32.partialorder %v6428_v35, %v6428_v35  ;;  %vm3202_vm8 = vcmp.ne.f32.partialorder %v6434_v53, %v6434_v53  ;;  %vm3195_vm9 = vcmp.ne.f32.partialorder %v6460_v45, %v6460_v45 }
 0x6c0   : > { %8153 = vst [vmem:[#allocation18_spill] sm:$0xff] %v6434_v53  ;;  %v6482_v23 = vadd.f32 %v6479_v4, %v3073_v61  ;;  %v3258_v61 = vsel %vm3194_vm3, 1.0, %v8162_v8  ;;  %v3320_v36 = vmax.f32 %v3256_v29, %v3260_v21  ;;  %vm3206_vm13 = vcmp.ne.f32.partialorder %v6500_v48, %v6500_v48  ;;  %v6545_v29 = vld [vmem:[%s4335_s30 + $0x68] sm:$0xff] }
 0x6c1   : > { %8155 = vst [vmem:[#allocation3_spill] sm:$0xff] %v6460_v45 }
 0x6c2   : > { %8156 = vst [vmem:[#allocation6_spill] sm:$0xff] %v6479_v4  ;;  %vm3201_vm10 = vcmp.ne.f32.partialorder %v6482_v23, %v6482_v23  ;;  %v3082_v4 = vmul.f32 %v6344_v30, %v6270_v58 }
 0x6c3   : > { %v2946_v18 = vpop.f32.mrf.mxu0  ;;  %v3035_v14 = vpop.f32.mrf.mxu1  ;;  %8161 = vst [vmem:[#allocation8_spill] sm:$0xff] %v6500_v48 }
 0x6c4   : > { %v2947_v44 = vadd.f32 %v2946_v18, %v2657_v40  ;;  %v6468_v42 = vpop.f32.mrf.mxu2  ;;  %v6470_v39 = vpop.f32.mrf.mxu3  ;;  %v6488_v40 = vadd.f32 %v6485_v31, %v3076_v0  ;;  %v6491_v18 = vld [vmem:[%s4335_s30 + $0x58] sm:$0xff]  ;;  %v3077_v0 = vmul.f32 %v6344_v30, %v6254_v55  ;;  %v3079_v31 = vmul.f32 %v6344_v30, %v6268_v7  ;;  %8163 = vst [vmem:[#allocation12_spill] sm:$0xff] %v6545_v29 }
 0x6c5   : > { %8159 = vst [vmem:[#allocation15_spill] sm:$0xff] %v6491_v18  ;;  %v6494_v19 = vadd.f32 %v6491_v18, %v3075_v41  ;;  %v3080_v41 = vmul.f32 %v6344_v30, %v6258_v52  ;;  %v3261_v55 = vsel %vm3197_vm5, 1.0, %v8162_v8  ;;  %v3264_v52 = vsel %vm3200_vm6, 1.0, %v8162_v8  ;;  %v6557_v18 = vld [vmem:[%s4335_s30 + $0x78] sm:$0xff] }
 0x6c6   : > { %8158 = vst [vmem:[#allocation16_spill] sm:$0xff] %v6488_v40  ;;  %v6502_v13 = vadd.f32 %v3035_v14, %v2947_v44  ;;  %v3257_v44 = vsel %vm3193_vm4, 1.0, %v8162_v8  ;;  %v3322_v14 = vmax.f32 %v3258_v61, %v3262_v33  ;;  %v3263_v7 = vsel %vm3199_vm7, 1.0, %v8162_v8  ;;  %v6551_v61 = vld [vmem:[%s4335_s30 + $0x80] sm:$0xff] }
 0x6c7   : > { %v3266_v33 = vsel %vm3202_vm8, 1.0, %v8162_v8  ;;  %vm3204_vm11 = vcmp.ne.f32.partialorder %v6488_v40, %v6488_v40  ;;  %vm3203_vm12 = vcmp.ne.f32.partialorder %v6494_v19, %v6494_v19  ;;  %v6548_v21 = vadd.f32 %v6545_v29, %v3077_v0  ;;  %8165 = vst [vmem:[#allocation43_spill] sm:$0xff] %v6551_v61 }
 0x6c8   : > { %v6554_v51 = vadd.f32 %v6551_v61, %v3080_v41  ;;  %8167 = vst [vmem:[#allocation39_spill] sm:$0xff] %v6557_v18  ;;  %v6560_v53 = vadd.f32 %v6557_v18, %v3079_v31  ;;  %v3259_v0 = vsel %vm3195_vm9, 1.0, %v8162_v8  ;;  %v3081_v41 = vmul.f32 %v6344_v30, %v6274_v9 }
 0x6c9   : > { %8164 = vst [vmem:[#allocation29_spill] sm:$0xff] %v6548_v21  ;;  %v3084_v31 = vmul.f32 %v6344_v30, %v6278_v63  ;;  %v3083_v61 = vmul.f32 %v6344_v30, %v6288_v49  ;;  %v3321_v29 = vmax.f32 %v3257_v44, %v3261_v55  ;;  %v3324_v54 = vmax.f32 %v3320_v36, %v3264_v52  ;;  %v6609_v36 = vld [vmem:[%s4335_s30 + $0x90] sm:$0xff]  ;;  %v6615_v55 = vld [vmem:[%s4335_s30 + $0x88] sm:$0xff] }
 0x6ca   : > { %8166 = vst [vmem:[#allocation27_spill] sm:$0xff] %v6554_v51  ;;  %v3323_v45 = vmax.f32 %v3259_v0, %v3263_v7  ;;  %v6582_v59 = vmax.f32 %v3322_v14, %v3266_v33  ;;  %v3265_v9 = vsel %vm3201_vm10, 1.0, %v8162_v8  ;;  %v3268_v63 = vsel %vm3204_vm11, 1.0, %v8162_v8  ;;  %v6621_v7 = vld [vmem:[%s4335_s30 + $0xa0] sm:$0xff]  ;;  %v6627_v0 = vld [vmem:[%s4335_s30 + $0x98] sm:$0xff] }
 0x6cb   : > { %8168 = vst [vmem:[#allocation30_spill] sm:$0xff] %v6560_v53  ;;  %v6564_v26 = vpop.f32.mrf.mxu0  ;;  %v6566_v35 = vpop.f32.mrf.mxu1  ;;  %v3267_v49 = vsel %vm3203_vm12, 1.0, %v8162_v8  ;;  %v6600_v44 = vsel %vm3206_vm13, 1.0, %v8162_v8  ;;  %vm3205_vm14 = vcmp.ne.f32.partialorder %v6548_v21, %v6548_v21  ;;  %vm3208_vm15 = vcmp.ne.f32.partialorder %v6554_v51, %v6554_v51  ;;  %v6689_v51 = vld [vmem:[%s4335_s30 + $0xb8] sm:$0xff] }
 0x6cc   : > { %v6578_v58 = vpop.f32.mrf.mxu2  ;;  %v6580_v18 = vpop.f32.mrf.mxu3  ;;  %vm3207_vm0 = vcmp.ne.f32.partialorder %v6560_v53, %v6560_v53  ;;  %8169 = vst [vmem:[#allocation44_spill] sm:$0xff] %v6609_v36  ;;  %v6612_v14 = vadd.f32 %v6609_v36, %v3082_v4  ;;  %v6618_v52 = vadd.f32 %v6615_v55, %v3081_v41  ;;  %v6624_v33 = vadd.f32 %v6621_v7, %v3084_v31 }
 0x6cd   : > { %8170 = vst [vmem:[#allocation28_spill] sm:$0xff] %v6615_v55  ;;  %v6630_v48 = vadd.f32 %v6627_v0, %v3083_v61  ;;  %v3086_v40 = vmul.f32 %v6344_v30, %v6290_v20  ;;  %v3085_v4 = vmul.f32 %v6344_v30, %v6294_v60  ;;  %v3088_v41 = vmul.f32 %v6344_v30, %v6298_v16 }
 0x6ce   : > { %8171 = vst [vmem:[#allocation40_spill] sm:$0xff] %v6621_v7  ;;  %v3087_v36 = vmul.f32 %v6344_v30, %v6308_v24  ;;  %v3325_v31 = vmax.f32 %v3321_v29, %v3265_v9  ;;  %v3328_v7 = vmax.f32 %v3324_v54, %v3268_v63  ;;  %v3327_v55 = vmax.f32 %v3323_v45, %v3267_v49  ;;  %v6667_v54 = vld [vmem:[%s4335_s30 + $0xb0] sm:$0xff]  ;;  %v6677_v63 = vld [vmem:[%s4335_s30 + $0xa8] sm:$0xff] }
 0x6cf   : > { %8172 = vst [vmem:[#allocation31_spill] sm:$0xff] %v6624_v33  ;;  %v3330_v61 = vmax.f32 %v6582_v59, %v6600_v44  ;;  %v3269_v20 = vsel %vm3205_vm14, 1.0, %v8162_v8  ;;  %v3272_v60 = vsel %vm3208_vm15, 1.0, %v8162_v8  ;;  %v3271_v16 = vsel %vm3207_vm0, 1.0, %v8162_v8  ;;  %v6683_v44 = vld [vmem:[%s4335_s30 + $0xc0] sm:$0xff] }
 0x6d0   : > { %8173 = vst [vmem:[#allocation47_spill] sm:$0xff] %v6627_v0  ;;  %vm3210_vm1 = vcmp.ne.f32.partialorder %v6612_v14, %v6612_v14  ;;  %vm3209_vm2 = vcmp.ne.f32.partialorder %v6618_v52, %v6618_v52  ;;  %vm3212_vm3 = vcmp.ne.f32.partialorder %v6624_v33, %v6624_v33  ;;  %vm3211_vm4 = vcmp.ne.f32.partialorder %v6630_v48, %v6630_v48 }
 0x6d1   : > { %8174 = vst [vmem:[#allocation33_spill] sm:$0xff] %v6630_v48  ;;  %v6670_v45 = vadd.f32 %v6667_v54, %v3086_v40  ;;  %v6680_v49 = vadd.f32 %v6677_v63, %v3085_v4  ;;  %v6686_v0 = vadd.f32 %v6683_v44, %v3088_v41  ;;  %v6692_v53 = vadd.f32 %v6689_v51, %v3087_v36  ;;  %v6751_v48 = vld [vmem:[%s4335_s30 + $0xd8] sm:$0xff] }
 0x6d2   : > { %8175 = vst [vmem:[#allocation51_spill] sm:$0xff] %v6667_v54  ;;  %v3090_v40 = vmul.f32 %v6344_v30, %v6310_v28  ;;  %v3329_v54 = vmax.f32 %v3325_v31, %v3269_v20  ;;  %v3332_v21 = vmax.f32 %v3328_v7, %v3272_v60  ;;  %v3089_v4 = vmul.f32 %v6344_v30, %v6312_v50  ;;  %v6735_v31 = vld [vmem:[%s4335_s30 + $0xc8] sm:$0xff]  ;;  %v6741_v60 = vld [vmem:[%s4335_s30 + $0xe0] sm:$0xff] }
 0x6d3   : > { %v6656_v24 = vpop.f32.mrf.mxu0  ;;  %v6658_v59 = vpop.f32.mrf.mxu1  ;;  %8176 = vst [vmem:[#allocation32_spill] sm:$0xff] %v6677_v63  ;;  %v3092_v63 = vmul.f32 %v6344_v30, %v6314_v5  ;;  %v3331_v41 = vmax.f32 %v3327_v55, %v3271_v16  ;;  %v3274_v36 = vsel %vm3210_vm1, 1.0, %v8162_v8  ;;  %v3091_v28 = vmul.f32 %v6344_v30, %v6316_v17  ;;  %v6729_v17 = vld [vmem:[%s4335_s30 + $0xd0] sm:$0xff] }
 0x6d4   : > { %v6672_v29 = vpop.f32.mrf.mxu2  ;;  %v6674_v9 = vpop.f32.mrf.mxu3  ;;  %8177 = vst [vmem:[#allocation48_spill] sm:$0xff] %v6683_v44  ;;  %v3094_v7 = vmul.f32 %v6344_v30, %v6318_v6  ;;  %v3273_v50 = vsel %vm3209_vm2, 1.0, %v8162_v8  ;;  %v3276_v5 = vsel %vm3212_vm3, 1.0, %v8162_v8  ;;  %v3275_v55 = vsel %vm3211_vm4, 1.0, %v8162_v8 }
 0x6d5   : > { %8178 = vst [vmem:[#allocation34_spill] sm:$0xff] %v6686_v0  ;;  %vm3214_vm5 = vcmp.ne.f32.partialorder %v6670_v45, %v6670_v45  ;;  %vm3213_vm6 = vcmp.ne.f32.partialorder %v6680_v49, %v6680_v49  ;;  %vm3216_vm7 = vcmp.ne.f32.partialorder %v6686_v0, %v6686_v0  ;;  %vm3215_vm8 = vcmp.ne.f32.partialorder %v6692_v53, %v6692_v53 }
 0x6d6   : > { %8179 = vst [vmem:[#allocation52_spill] sm:$0xff] %v6689_v51  ;;  %v6732_v6 = vadd.f32 %v6729_v17, %v3090_v40  ;;  %v6738_v20 = vadd.f32 %v6735_v31, %v3089_v4  ;;  %v6744_v16 = vadd.f32 %v6741_v60, %v3092_v63  ;;  %v3093_v44 = vmul.f32 %v6344_v30, %v6320_v3 }
 0x6d7   : > { %8180 = vst [vmem:[#allocation35_spill] sm:$0xff] %v6729_v17  ;;  %v3096_v51 = vmul.f32 %v6344_v30, %v6322_v2  ;;  %v3334_v33 = vmax.f32 %v3330_v61, %v3274_v36  ;;  %v6754_v40 = vadd.f32 %v6751_v48, %v3091_v28  ;;  %v6757_v17 = vld [vmem:[%s4335_s30 + $0xf0] sm:$0xff]  ;;  %v3333_v3 = vmax.f32 %v3329_v54, %v3273_v50 }
 0x6d8   : > { %8181 = vst [vmem:[#allocation55_spill] sm:$0xff] %v6732_v6  ;;  %v6760_v4 = vadd.f32 %v6757_v17, %v3094_v7  ;;  %v3335_v2 = vmax.f32 %v3331_v41, %v3275_v55  ;;  %v3278_v61 = vsel %vm3214_vm5, 1.0, %v8162_v8  ;;  %v3277_v7 = vsel %vm3213_vm6, 1.0, %v8162_v8  ;;  %v6793_v41 = vld [vmem:[%s4335_s30 + $0xe8] sm:$0xff] }
 0x6d9   : > { %8182 = vst [vmem:[#allocation37_spill] sm:$0xff] %v6735_v31  ;;  %v3336_v31 = vmax.f32 %v3332_v21, %v3276_v5  ;;  %v3280_v21 = vsel %vm3216_vm7, 1.0, %v8162_v8  ;;  %v3279_v54 = vsel %vm3215_vm8, 1.0, %v8162_v8  ;;  %vm3218_vm9 = vcmp.ne.f32.partialorder %v6732_v6, %v6732_v6  ;;  %v6799_v5 = vld [vmem:[%s4335_s30 + $0x100] sm:$0xff]  ;;  %v6855_v6 = vld [vmem:[%s4335_s30 + $0x108] sm:$0xff] }
 0x6da   : > { %8183 = vst [vmem:[#allocation59_spill] sm:$0xff] %v6738_v20  ;;  %vm3217_vm10 = vcmp.ne.f32.partialorder %v6738_v20, %v6738_v20  ;;  %vm3220_vm11 = vcmp.ne.f32.partialorder %v6744_v16, %v6744_v16  ;;  %v6796_v50 = vadd.f32 %v6793_v41, %v3093_v44  ;;  %v6802_v55 = vadd.f32 %v6799_v5, %v3096_v51 }
 0x6db   : > { %8184 = vst [vmem:[#allocation36_spill] sm:$0xff] %v6741_v60  ;;  %v6762_v63 = vpop.f32.mrf.mxu0  ;;  %v6764_v60 = vpop.f32.mrf.mxu1  ;;  %vm3219_vm12 = vcmp.ne.f32.partialorder %v6754_v40, %v6754_v40  ;;  %vm3222_vm13 = vcmp.ne.f32.partialorder %v6760_v4, %v6760_v4  ;;  %v3098_v44 = vmul.f32 %v6344_v30, %v6326_v32  ;;  %v3340_v0 = vmax.f32 %v3336_v31, %v3280_v21  ;;  %v6835_v31 = vld [vmem:[%s4335_s30 + $0xf8] sm:$0xff] }
 0x6dc   : > { %8185 = vst [vmem:[#allocation56_spill] sm:$0xff] %v6744_v16  ;;  %v6770_v36 = vpop.f32.mrf.mxu2  ;;  %v6772_v28 = vpop.f32.mrf.mxu3  ;;  %v3097_v51 = vmul.f32 %v6344_v30, %v6328_v15  ;;  %v3284_v32 = vsel %vm3220_vm11, 1.0, %v8162_v8  ;;  %v6828_v15 = vsel %vm3222_vm13, 1.0, %v8162_v8  ;;  %vm3221_vm14 = vcmp.ne.f32.partialorder %v6796_v50, %v6796_v50 }
 0x6dd   : > { %8186 = vst [vmem:[#allocation38_spill] sm:$0xff] %v6751_v48  ;;  %v3337_v48 = vmax.f32 %v3333_v3, %v3277_v7  ;;  %vm3224_vm15 = vcmp.ne.f32.partialorder %v6802_v55, %v6802_v55  ;;  %v3100_v7 = vmul.f32 %v6344_v30, %v6330_v27  ;;  %v3099_v21 = vmul.f32 %v6344_v30, %v6332_v46  ;;  %v6866_v46 = vpop.permute.xlu0 %2661 }
 0x6de   : > { %8187 = vst [vmem:[#allocation60_spill] sm:$0xff] %v6754_v40  ;;  %v3282_v40 = vsel %vm3218_vm9, 1.0, %v8162_v8  ;;  %v3344_v20 = vmax.f32 %v3340_v0, %v3284_v32  ;;  %v3104_v32 = vmul.f32 %v6344_v30, %v6338_v43 }
 0x6df   : > { %8188 = vst [vmem:[#allocation41_spill] sm:$0xff] %v6757_v17  ;;  %v3095_v17 = vmul.f32 %v6344_v30, %v6324_v62  ;;  %v3281_v62 = vsel %vm3217_vm10, 1.0, %v8162_v8 }
 0x6e0   : > { %8189 = vst [vmem:[#allocation63_spill] sm:$0xff] %v6760_v4 }
 0x6e1   : > { %8190 = vst [vmem:[#allocation45_spill] sm:$0xff] %v6793_v41  ;;  %v3338_v41 = vmax.f32 %v3334_v33, %v3278_v61  ;;  %v3283_v33 = vsel %vm3219_vm12, 1.0, %v8162_v8  ;;  %v6838_v3 = vadd.f32 %v6835_v31, %v3095_v17  ;;  %v6858_v17 = vadd.f32 %v6855_v6, %v3097_v51 }
 0x6e2   : > { %8191 = vst [vmem:[#allocation67_spill] sm:$0xff] %v6799_v5  ;;  %v3339_v5 = vmax.f32 %v3335_v2, %v3279_v54  ;;  %v6841_v2 = vld [vmem:[%s4335_s30 + $0x110] sm:$0xff] }
 0x6e3   : > { %8192 = vst [vmem:[#allocation42_spill] sm:$0xff] %v6802_v55  ;;  %v6844_v61 = vadd.f32 %v6841_v2, %v3098_v44  ;;  %v6850_v54 = vpop.f32.mrf.mxu0  ;;  %v6852_v4 = vpop.f32.mrf.mxu1  ;;  %v3342_v16 = vmax.f32 %v3338_v41, %v3282_v40  ;;  %v3102_v44 = vmul.f32 %v6344_v30, %v6334_v57  ;;  %v3101_v41 = vmul.f32 %v6344_v30, %v6336_v34  ;;  %v6888_v34 = vld [vmem:[%s4335_s30 + $0x120] sm:$0xff]  ;;  %v6972_v55 = vld [vmem:[%s4335_s30 + $0x150] sm:$0xff] }
 0x6e4   : > { %8193 = vst [vmem:[#allocation64_spill] sm:$0xff] %v6835_v31  ;;  %v6864_v27 = vpop.f32.mrf.mxu3  ;;  %v3341_v31 = vmax.f32 %v3337_v48, %v3281_v62  ;;  %v6868_v40 = vmax.f32 %v3339_v5, %v3283_v33  ;;  %v3285_v57 = vsel %vm3221_vm14, 1.0, %v8162_v8  ;;  %v2771_v48 = vadd.f32 %v6380_v10, %v6866_v46  ;;  %v6902_v10 = vld [vmem:[%s4335_s30 + $0x130] sm:$0xff] }
 0x6e5   : > { %8194 = vst [vmem:[#allocation46_spill] sm:$0xff] %v6838_v3  ;;  %v3346_v51 = vmax.f32 %v3342_v16, %v6828_v15  ;;  %vm3223_vm0 = vcmp.ne.f32.partialorder %v6838_v3, %v6838_v3  ;;  %vm3226_vm1 = vcmp.ne.f32.partialorder %v6844_v61, %v6844_v61  ;;  %v6891_v0 = vadd.f32 %v6888_v34, %v3100_v7  ;;  %v6894_v16 = vld [vmem:[%s4335_s30 + $0x118] sm:$0xff]  ;;  %v6911_v15 = vpop.permute.xlu2 %2666 }
 0x6e6   : > { %8195 = vst [vmem:[#allocation68_spill] sm:$0xff] %v6841_v2  ;;  %v6862_v2 = vpop.f32.mrf.mxu2  ;;  %v6897_v5 = vadd.f32 %v6894_v16, %v3099_v21  ;;  %vm3225_vm2 = vcmp.ne.f32.partialorder %v6858_v17, %v6858_v17  ;;  %v6905_v62 = vadd.f32 %v6902_v10, %v3102_v44  ;;  %v3103_v33 = vmul.f32 %v6344_v30, %v6340_v11  ;;  %v6916_v21 = vld [vmem:[%s4335_s30 + $0x128] sm:$0xff] }
 0x6e7   : > { %8196 = vst [vmem:[#allocation49_spill] sm:$0xff] %v6844_v61  ;;  %v3345_v7 = vmax.f32 %v3341_v31, %v3285_v57  ;;  %v3106_v44 = vmul.f32 %v6344_v30, %v6342_v37  ;;  %v3287_v43 = vsel %vm3223_vm0, 1.0, %v8162_v8  ;;  %v3105_v11 = vmul.f32 %v6344_v30, %v6346_v12  ;;  %v6959_v57 = vld [vmem:[%s4335_s30 + $0x138] sm:$0xff] }
 0x6e8   : > { %8197 = vst [vmem:[#allocation71_spill] sm:$0xff] %v6855_v6  ;;  %v3288_v6 = vsel %vm3224_vm15, 1.0, %v8162_v8  ;;  %v3290_v37 = vsel %vm3226_vm1, 1.0, %v8162_v8  ;;  %v3289_v31 = vsel %vm3225_vm2, 1.0, %v8162_v8  ;;  %vm3228_vm3 = vcmp.ne.f32.partialorder %v6891_v0, %v6891_v0 }
 0x6e9   : > { %8198 = vst [vmem:[#allocation53_spill] sm:$0xff] %v6858_v17  ;;  %vm3227_vm4 = vcmp.ne.f32.partialorder %v6897_v5, %v6897_v5  ;;  %vm3230_vm5 = vcmp.ne.f32.partialorder %v6905_v62, %v6905_v62  ;;  %v3347_v17 = vmax.f32 %v6868_v40, %v3287_v43  ;;  %v3349_v3 = vmax.f32 %v3345_v7, %v3289_v31  ;;  %v7007_v7 = vld [vmem:[%s4335_s30 + $0x160] sm:$0xff] }
 0x6ea   : > { %8199 = vst [vmem:[#allocation75_spill] sm:$0xff] %v6888_v34  ;;  %v6913_v34 = vmax.f32 %v3344_v20, %v3288_v6  ;;  %v2860_v6 = vadd.f32 %v6382_v47, %v2771_v48  ;;  %v2774_v20 = vadd.f32 %v6468_v42, %v6911_v15  ;;  %v6953_v47 = vld [vmem:[%s4335_s30 + $0x140] sm:$0xff]  ;;  %v6962_v48 = vadd.f32 %v6959_v57, %v3103_v33 }
 0x6eb   : > { %8200 = vst [vmem:[#allocation50_spill] sm:$0xff] %v6891_v0  ;;  %v6946_v12 = vpop.f32.mrf.mxu0  ;;  %v6948_v42 = vpop.f32.mrf.mxu1  ;;  %v3107_v33 = vmul.f32 %v6344_v30, %v6390_v22  ;;  %v3292_v22 = vsel %vm3228_vm3, 1.0, %v8162_v8  ;;  %v2949_v31 = vadd.f32 %v6564_v26, %v6866_v46 }
 0x6ec   : > { %8201 = vst [vmem:[#allocation72_spill] sm:$0xff] %v6894_v16  ;;  %v6919_v16 = vadd.f32 %v6916_v21, %v3101_v41  ;;  %v6956_v41 = vadd.f32 %v6953_v47, %v3104_v32  ;;  %v6975_v32 = vadd.f32 %v6972_v55, %v3106_v44  ;;  %v3110_v40 = vmul.f32 %v6344_v30, %v2860_v6  ;;  %v7015_v6 = vld [vmem:[%s4335_s30 + $0x158] sm:$0xff] }
 0x6ed   : > { %8202 = vst [vmem:[#allocation54_spill] sm:$0xff] %v6902_v10  ;;  %v6923_v10 = vpop.permute.xlu1 %2671  ;;  %v2863_v43 = vadd.f32 %v6470_v39, %v2774_v20  ;;  %v3294_v44 = vsel %vm3230_vm5, 1.0, %v8162_v8  ;;  %vm3231_vm8 = vcmp.ne.f32.partialorder %v6962_v48, %v6962_v48  ;;  %v7018_v20 = vadd.f32 %v7015_v6, %v3107_v33 }
 0x6ee   : > { %8203 = vst [vmem:[#allocation76_spill] sm:$0xff] %v6905_v62  ;;  %v6966_v61 = vpop.f32.mrf.mxu2  ;;  %vm3229_vm6 = vcmp.ne.f32.partialorder %v6919_v16, %v6919_v16  ;;  %vm3232_vm7 = vcmp.ne.f32.partialorder %v6956_v41, %v6956_v41  ;;  %vm3234_vm9 = vcmp.ne.f32.partialorder %v6975_v32, %v6975_v32  ;;  %v2776_v33 = vadd.f32 %v6578_v58, %v6923_v10 }
 0x6ef   : > { %8204 = vst [vmem:[#allocation57_spill] sm:$0xff] %v6916_v21  ;;  %v3108_v21 = vmul.f32 %v6344_v30, %v6350_v25  ;;  %v3293_v39 = vsel %vm3229_vm6, 1.0, %v8162_v8  ;;  %v3295_v58 = vsel %vm3231_vm8, 1.0, %v8162_v8  ;;  %vm3235_vm12 = vcmp.ne.f32.partialorder %v7018_v20, %v7018_v20 }
 0x6f0   : > { %8205 = vst [vmem:[#allocation79_spill] sm:$0xff] %v6919_v16  ;;  %v6987_v16 = vpop.f32.mrf.mxu3  ;;  %v3353_v26 = vmax.f32 %v3349_v3, %v3293_v39  ;;  %v7068_v39 = vld [vmem:[%s4335_s30 + $0x180] sm:$0xff] }
 0x6f1   : > { %8206 = vst [vmem:[#allocation61_spill] sm:$0xff] %v6953_v47  ;;  %v3350_v47 = vmax.f32 %v3346_v51, %v3290_v37  ;;  %v3291_v51 = vsel %vm3227_vm4, 1.0, %v8162_v8  ;;  %v3109_v37 = vmul.f32 %v6344_v30, %v6502_v13  ;;  %v3352_v13 = vmax.f32 %v6913_v34, %v3292_v22  ;;  %v2682_v34 = vpop.permute.xlu2 %2681  ;;  %v7059_v22 = vld [vmem:[%s4335_s30 + $0x168] sm:$0xff] }
 0x6f2   : > { %8207 = vst [vmem:[#allocation83_spill] sm:$0xff] %v6956_v41 }
 0x6f3   : > { %8208 = vst [vmem:[#allocation58_spill] sm:$0xff] %v6959_v57  ;;  %v6980_v57 = vld [vmem:[%s4335_s30 + $0x148] sm:$0xff]  ;;  %v3354_v62 = vmax.f32 %v3350_v47, %v3294_v44  ;;  %v2961_v46 = vpop.f32.mrf.mxu0  ;;  %v7036_v0 = vpop.f32.mrf.mxu1  ;;  %v3038_v44 = vadd.f32 %v6566_v35, %v2949_v31 }
 0x6f4   : > { %8209 = vst [vmem:[#allocation80_spill] sm:$0xff] %v6972_v55  ;;  %v6983_v25 = vadd.f32 %v6980_v57, %v3105_v11  ;;  %v7010_v11 = vadd.f32 %v7007_v7, %v3108_v21  ;;  %v2677_v55 = vpop.permute.xlu0 %2676  ;;  %v7027_v21 = vld [vmem:[%s4335_s30 + $0x170] sm:$0xff] }
 0x6f5   : > { %8210 = vst [vmem:[#allocation62_spill] sm:$0xff] %v6975_v32  ;;  %v2687_v47 = vpop.permute.xlu1 %2686  ;;  %v2952_v32 = vadd.f32 %v6656_v24, %v6911_v15  ;;  %v2957_v35 = vadd.f32 %v6850_v54, %v2677_v55  ;;  %v2779_v54 = vadd.f32 %v6672_v29, %v2677_v55 }
 0x6f6   : > { %8211 = vst [vmem:[#allocation84_spill] sm:$0xff] %v6980_v57  ;;  %vm3233_vm10 = vcmp.ne.f32.partialorder %v6983_v25, %v6983_v25  ;;  %v3112_v57 = vmul.f32 %v6344_v30, %v2863_v43  ;;  %vm3236_vm11 = vcmp.ne.f32.partialorder %v7010_v11, %v7010_v11  ;;  %v2788_v3 = vpop.f32.mrf.mxu2 }
 0x6f7   : > { %8212 = vst [vmem:[#allocation65_spill] sm:$0xff] %v6983_v25  ;;  %v3297_v43 = vsel %vm3233_vm10, 1.0, %v8162_v8  ;;  %v3300_v41 = vsel %vm3236_vm11, 1.0, %v8162_v8  ;;  %v3041_v15 = vadd.f32 %v6658_v59, %v2952_v32  ;;  %v2962_v59 = vadd.f32 %v2961_v46, %v2687_v47 }
 0x6f8   : > { %8213 = vst [vmem:[#allocation87_spill] sm:$0xff] %v7007_v7  ;;  %v7030_v7 = vadd.f32 %v7027_v21, %v3110_v40  ;;  %v3296_v40 = vsel %vm3232_vm7, 1.0, %v8162_v8 }
 0x6f9   : > { %8214 = vst [vmem:[#allocation69_spill] sm:$0xff] %v7010_v11  ;;  %v2865_v11 = vadd.f32 %v6580_v18, %v2776_v33  ;;  %v3356_v25 = vmax.f32 %v3352_v13, %v3296_v40  ;;  %v3299_v18 = vsel %vm3235_vm12, 1.0, %v8162_v8  ;;  %v2781_v33 = vadd.f32 %v6770_v36, %v2682_v34  ;;  %v7112_v36 = vld [vmem:[%s4335_s30 + $0x178] sm:$0xff] }
 0x6fa   : > { %8215 = vst [vmem:[#allocation91_spill] sm:$0xff] %v7015_v6  ;;  %v3351_v6 = vmax.f32 %v3347_v17, %v3291_v51  ;;  %v3298_v17 = vsel %vm3234_vm9, 1.0, %v8162_v8  ;;  %v7062_v51 = vadd.f32 %v7059_v22, %v3109_v37  ;;  %vm3238_vm13 = vcmp.ne.f32.partialorder %v7030_v7, %v7030_v7 }
 0x6fb   : > { %8216 = vst [vmem:[#allocation66_spill] sm:$0xff] %v7027_v21  ;;  %v7071_v21 = vadd.f32 %v7068_v39, %v3112_v57  ;;  %v2954_v37 = vadd.f32 %v6762_v63, %v6923_v10  ;;  %v2877_v57 = vpop.f32.mrf.mxu3  ;;  %v7089_v24 = vsel %vm3238_vm13, 1.0, %v8162_v8  ;;  %v3111_v63 = vmul.f32 %v6344_v30, %v3038_v44  ;;  %v2963_v40 = vpop.f32.mrf.mxu0 }
 0x6fc   : > { %8217 = vst [vmem:[#allocation88_spill] sm:$0xff] %v7030_v7  ;;  %v3355_v31 = vmax.f32 %v3351_v6, %v3295_v58  ;;  %v7080_v7 = vmax.f32 %v3354_v62, %v3298_v17  ;;  %vm3237_vm14 = vcmp.ne.f32.partialorder %v7062_v51, %v7062_v51  ;;  %v3360_v10 = vmax.f32 %v3356_v25, %v3300_v41  ;;  %v3052_v29 = vpop.f32.mrf.mxu1  ;;  %v2692_v32 = vpop.permute.xlu0 %2691  ;;  %v7120_v17 = vld [vmem:[%s4335_s30 + $0x190] sm:$0xff] }
 0x6fd   : > { %8218 = vst [vmem:[#allocation70_spill] sm:$0xff] %v7059_v22  ;;  %v7082_v22 = vmax.f32 %v3353_v26, %v3297_v43  ;;  %vm3240_vm15 = vcmp.ne.f32.partialorder %v7071_v21, %v7071_v21  ;;  %v3114_v62 = vmul.f32 %v6344_v30, %v2865_v11  ;;  %v3043_v6 = vadd.f32 %v6764_v60, %v2954_v37  ;;  %v2697_v37 = vpop.permute.xlu2 %2696 }
 0x6fe   : > { %v3046_v13 = vadd.f32 %v6852_v4, %v2957_v35  ;;  %v2959_v26 = vadd.f32 %v6946_v12, %v2682_v34  ;;  %v7103_v55 = vmax.f32 %v3355_v31, %v3299_v18  ;;  %v3362_v41 = vmax.f32 %v7080_v7, %v7089_v24  ;;  %v2790_v58 = vpop.f32.mrf.mxu2  ;;  %v7127_v35 = vpop.permute.xlu1 %2701  ;;  %v7266_v24 = vld [vmem:[%s4335_s30 + $0x1f0] sm:$0xff] }
 0x6ff   : > { %v7108_v25 = vsel %vm3237_vm14, 1.0, %v8162_v8  ;;  %v3304_v60 = vsel %vm3240_vm15, 1.0, %v8162_v8  ;;  %v7115_v4 = vadd.f32 %v7112_v36, %v3111_v63  ;;  %v2868_v12 = vadd.f32 %v6674_v9, %v2779_v54  ;;  %8225 = vst [vmem:[#allocation96_spill] sm:$0xff] %v7266_v24 }
 0x700   : > { %v2784_v11 = vadd.f32 %v6862_v2, %v2687_v47  ;;  %v7123_v34 = vadd.f32 %v7120_v17, %v3114_v62  ;;  %v3113_v46 = vmul.f32 %v6344_v30, %v3041_v15  ;;  %v2786_v43 = vadd.f32 %v6966_v61, %v2692_v32 }
 0x701   : > { %v2964_v44 = vadd.f32 %v2963_v40, %v2692_v32  ;;  %v3115_v31 = vmul.f32 %v6344_v30, %v3043_v6  ;;  %v2870_v9 = vadd.f32 %v6772_v28, %v2781_v33  ;;  %v3117_v2 = vmul.f32 %v6344_v30, %v3046_v13  ;;  %v7153_v33 = vld [vmem:[%s4335_s30 + $0x198] sm:$0xff] }
 0x702   : > { %v3048_v47 = vadd.f32 %v6948_v42, %v2959_v26  ;;  %v3361_v18 = vmax.f32 %v7082_v22, %v7108_v25  ;;  %v3051_v63 = vadd.f32 %v7036_v0, %v2962_v59  ;;  %v2789_v61 = vadd.f32 %v2788_v3, %v2697_v37  ;;  %v7146_v42 = vld [vmem:[%s4335_s30 + $0x188] sm:$0xff] }
 0x703   : > { %v2791_v54 = vadd.f32 %v2790_v58, %v7127_v35  ;;  %v7137_v62 = vmax.f32 %v3360_v10, %v3304_v60  ;;  %vm3239_vm0 = vcmp.ne.f32.partialorder %v7115_v4, %v7115_v4  ;;  %v3116_v28 = vmul.f32 %v6344_v30, %v2868_v12  ;;  %v2879_v10 = vpop.f32.mrf.mxu3  ;;  %v7160_v26 = vld [vmem:[%s4335_s30 + $0x1a8] sm:$0xff]  ;;  %v2966_v32 = vpop.f32.mrf.mxu0 }
 0x704   : > { %v2873_v15 = vadd.f32 %v6864_v27, %v2784_v11  ;;  %vm3242_vm1 = vcmp.ne.f32.partialorder %v7123_v34, %v7123_v34  ;;  %v7149_v0 = vadd.f32 %v7146_v42, %v3113_v46  ;;  %v2875_v3 = vadd.f32 %v6987_v16, %v2786_v43  ;;  %v3055_v16 = vpop.f32.mrf.mxu1  ;;  %v7176_v43 = vld [vmem:[%s4335_s30 + $0x1a0] sm:$0xff] }
 0x705   : > { %v3053_v6 = vadd.f32 %v3052_v29, %v2964_v44  ;;  %v7156_v13 = vadd.f32 %v7153_v33, %v3115_v31  ;;  %v3118_v27 = vmul.f32 %v6344_v30, %v2870_v9  ;;  %v7163_v40 = vadd.f32 %v7160_v26, %v3117_v2  ;;  %v7189_v2 = vld [vmem:[%s4335_s30 + $0x1b0] sm:$0xff] }
 0x706   : > { %v3119_v59 = vmul.f32 %v6344_v30, %v3048_v47  ;;  %v3121_v29 = vmul.f32 %v6344_v30, %v3051_v63  ;;  %v2878_v60 = vadd.f32 %v2877_v57, %v2789_v61  ;;  %v2880_v12 = vadd.f32 %v2879_v10, %v2791_v54  ;;  %v7197_v63 = vld [vmem:[%s4335_s30 + $0x1b8] sm:$0xff]  ;;  %v7203_v54 = vld [vmem:[%s4335_s30 + $0x1c8] sm:$0xff] }
 0x707   : > { %v2967_v11 = vadd.f32 %v2966_v32, %v2697_v37  ;;  %v3303_v58 = vsel %vm3239_vm0, 1.0, %v8162_v8  ;;  %v3306_v46 = vsel %vm3242_vm1, 1.0, %v8162_v8  ;;  %v7179_v44 = vadd.f32 %v7176_v43, %v3116_v28 }
 0x708   : > { %v3120_v57 = vmul.f32 %v6344_v30, %v2873_v15  ;;  %vm3241_vm2 = vcmp.ne.f32.partialorder %v7149_v0, %v7149_v0  ;;  %v3122_v37 = vmul.f32 %v6344_v30, %v2875_v3  ;;  %v3123_v31 = vmul.f32 %v6344_v30, %v3053_v6 }
 0x709   : > { %v3056_v9 = vadd.f32 %v3055_v16, %v2967_v11  ;;  %vm3243_vm3 = vcmp.ne.f32.partialorder %v7156_v13, %v7156_v13  ;;  %v7192_v47 = vadd.f32 %v7189_v2, %v3118_v27  ;;  %vm3245_vm4 = vcmp.ne.f32.partialorder %v7163_v40, %v7163_v40  ;;  %v7229_v16 = vld [vmem:[%s4335_s30 + $0x1d0] sm:$0xff]  ;;  %v7241_v11 = vld [vmem:[%s4335_s30 + $0x1e8] sm:$0xff] }
 0x70a   : > { %v7200_v61 = vadd.f32 %v7197_v63, %v3119_v59  ;;  %v7206_v28 = vadd.f32 %v7203_v54, %v3121_v29  ;;  %v3124_v15 = vmul.f32 %v6344_v30, %v2878_v60  ;;  %v3126_v3 = vmul.f32 %v6344_v30, %v2880_v12  ;;  %v7219_v59 = vld [vmem:[%s4335_s30 + $0x1c0] sm:$0xff]  ;;  %v7235_v60 = vld [vmem:[%s4335_s30 + $0x1d8] sm:$0xff]  ;;  %8221 = vst [vmem:[#allocation95_spill] sm:$0xff] %v7241_v11 }
 0x70b   : > { %v3125_v6 = vmul.f32 %v6344_v30, %v3056_v9  ;;  %v3363_v10 = vmax.f32 %v7103_v55, %v3303_v58  ;;  %v3305_v27 = vsel %vm3241_vm2, 1.0, %v8162_v8  ;;  %vm3244_vm5 = vcmp.ne.f32.partialorder %v7179_v44, %v7179_v44  ;;  %8219 = vst [vmem:[#allocation92_spill] sm:$0xff] %v7235_v60  ;;  %v7260_v9 = vld [vmem:[%s4335_s30 + $0x1e0] sm:$0xff] }
 0x70c   : > { %v7222_v32 = vadd.f32 %v7219_v59, %v3120_v57  ;;  %v3307_v55 = vsel %vm3243_vm3, 1.0, %v8162_v8  ;;  %v7232_v29 = vadd.f32 %v7229_v16, %v3122_v37  ;;  %v7238_v12 = vadd.f32 %v7235_v60, %v3123_v31  ;;  %v2968_v31 = vpop.f32.mrf.mxu0  ;;  %8223 = vst [vmem:[#allocation99_spill] sm:$0xff] %v7260_v9 }
 0x70d   : > { %v7244_v58 = vadd.f32 %v7241_v11, %v3125_v6  ;;  %v3366_v57 = vmax.f32 %v3362_v41, %v3306_v46  ;;  %vm3246_vm6 = vcmp.ne.f32.partialorder %v7192_v47, %v7192_v47  ;;  %v3309_v37 = vsel %vm3245_vm4, 1.0, %v8162_v8 }
 0x70e   : > { %8220 = vst [vmem:[#allocation73_spill] sm:$0xff] %v7238_v12  ;;  %vm3247_vm7 = vcmp.ne.f32.partialorder %v7200_v61, %v7200_v61  ;;  %vm3249_vm8 = vcmp.ne.f32.partialorder %v7206_v28, %v7206_v28  ;;  %v7263_v7 = vadd.f32 %v7260_v9, %v3124_v15  ;;  %v7269_v41 = vadd.f32 %v7266_v24, %v3126_v3  ;;  %v3057_v15 = vpop.f32.mrf.mxu1 }
 0x70f   : > { %8222 = vst [vmem:[#allocation77_spill] sm:$0xff] %v7244_v58  ;;  %v2969_v46 = vadd.f32 %v2968_v31, %v7127_v35  ;;  %v3365_v6 = vmax.f32 %v3361_v18, %v3305_v27  ;;  %v3308_v11 = vsel %vm3244_vm5, 1.0, %v8162_v8  ;;  %v3367_v60 = vmax.f32 %v3363_v10, %v3307_v55 }
 0x710   : > { %8224 = vst [vmem:[#allocation74_spill] sm:$0xff] %v7263_v7  ;;  %vm3248_vm9 = vcmp.ne.f32.partialorder %v7222_v32, %v7222_v32  ;;  %vm3250_vm10 = vcmp.ne.f32.partialorder %v7232_v29, %v7232_v29  ;;  %vm3251_vm11 = vcmp.ne.f32.partialorder %v7238_v12, %v7238_v12  ;;  %vm3253_vm12 = vcmp.ne.f32.partialorder %v7244_v58, %v7244_v58  ;;  %v7310_v58 = vld [vmem:[%s4335_s30 + $0x1f8] sm:$0xff] }
 0x711   : > { %8226 = vst [vmem:[#allocation78_spill] sm:$0xff] %v7269_v41  ;;  %v3058_v22 = vadd.f32 %v3057_v15, %v2969_v46  ;;  %v3310_v25 = vsel %vm3246_vm6, 1.0, %v8162_v8  ;;  %v3369_v35 = vmax.f32 %v3365_v6, %v3309_v37  ;;  %v3311_v18 = vsel %vm3247_vm7, 1.0, %v8162_v8 }
 0x712   : > { %v3313_v3 = vsel %vm3249_vm8, 1.0, %v8162_v8  ;;  %v3312_v10 = vsel %vm3248_vm9, 1.0, %v8162_v8  ;;  %vm3252_vm13 = vcmp.ne.f32.partialorder %v7263_v7, %v7263_v7  ;;  %vm3254_vm14 = vcmp.ne.f32.partialorder %v7269_v41, %v7269_v41  ;;  %8227 = vst [vmem:[#allocation100_spill] sm:$0xff] %v7310_v58 }
 0x713   : > { %v3127_v27 = vmul.f32 %v6344_v30, %v3058_v22  ;;  %v3368_v55 = vmax.f32 %v7137_v62, %v3308_v11  ;;  %v3314_v37 = vsel %vm3250_vm10, 1.0, %v8162_v8  ;;  %v3315_v31 = vsel %vm3251_vm11, 1.0, %v8162_v8 }
 0x714   : > { %v3317_v46 = vsel %vm3253_vm12, 1.0, %v8162_v8  ;;  %v3370_v6 = vmax.f32 %v3366_v57, %v3310_v25  ;;  %v3371_v15 = vmax.f32 %v3367_v60, %v3311_v18  ;;  %v3373_v24 = vmax.f32 %v3369_v35, %v3313_v3 }
 0x715   : > { %v7313_v9 = vadd.f32 %v7310_v58, %v3127_v27  ;;  %v3372_v7 = vmax.f32 %v3368_v55, %v3312_v10  ;;  %v3316_v41 = vsel %vm3252_vm13, 1.0, %v8162_v8  ;;  %v3318_v30 = vsel %vm3254_vm14, 1.0, %v8162_v8 }
 0x716   : > { %v3374_v62 = vmax.f32 %v3370_v6, %v3314_v37  ;;  %v3375_v11 = vmax.f32 %v3371_v15, %v3315_v31  ;;  %v3377_v22 = vmax.f32 %v3373_v24, %v3317_v46  ;;  %v8232_v46 = vld [vmem:[#allocation24_spill] sm:$0xff] }
 0x717   : > { %vm3255_vm15 = vcmp.ne.f32.partialorder %v7313_v9, %v7313_v9  ;;  %v3376_v60 = vmax.f32 %v3372_v7, %v3316_v41  ;;  %v8230_v7 = vld [vmem:[#allocation9_spill] sm:$0xff] }
 0x718   : > { %v3319_v57 = vsel %vm3255_vm15, 1.0, %v8162_v8  ;;  %v3378_v25 = vmax.f32 %v3374_v62, %v3318_v30  ;;  %v8231_v41 = vld [vmem:[#allocation25_spill] sm:$0xff]  ;;  %v8233_v30 = vld [vmem:[#allocation3_spill] sm:$0xff]  ;;  %v8234_v62 = vld [vmem:[#allocation26_spill] sm:$0xff] }
 0x719   : > { %v3379_v35 = vmax.f32 %v3375_v11, %v3319_v57  ;;  %v3380_v18 = vmax.f32 %v3376_v60, %v3377_v22  ;;  %v8235_v22 = vld [vmem:[#allocation17_spill] sm:$0xff]  ;;  %v8238_v57 = vld [vmem:[#allocation10_spill] sm:$0xff] }
 0x71b   : > { %v3381_v3 = vmax.f32 %v3378_v25, %v3379_v35  ;;  %v8239_v25 = vld [vmem:[#allocation23_spill] sm:$0xff] }
 0x71c   : > { %v8240_v35 = vld [vmem:[#allocation19_spill] sm:$0xff] }
 0x71d   : > { %v3382_v27 = vmax.f32 %v3380_v18, %v3381_v3  ;;  %v8241_v3 = vld [vmem:[#allocation22_spill] sm:$0xff] }
 0x71f   : > { %3383 = vmax.xlane.f32.xlu0 %v3382_v27  ;;  %v8242_v27 = vld [vmem:[#allocation4_spill] sm:$0xff] }
 0x792   : > { %v3384_v10 = vpop.xlane.xlu0 %3383 }
 0x793   : > { %v3385_v55 = vrot.slane %v3384_v10, 4 }
 0x795   : > { %v3386_v58 = vmax.f32 %v3384_v10, %v3385_v55  ;;  %v8243_v55 = vld [vmem:[#allocation11_spill] sm:$0xff] }
 0x797   : > { %v3387_v12 = vrot.slane %v3386_v58, 2 }
 0x799   : > { %v3388_v37 = vmax.f32 %v3386_v58, %v3387_v12 }
 0x79b   : > { %v3389_v31 = vrot.slane %v3388_v37, 1 }
 0x79d   : > { %v3390_v6 = vmax.f32 %v3388_v37, %v3389_v31  ;;  %v8244_v37 = vld [vmem:[#allocation5_spill] sm:$0xff] }
 0x79f   : > { %3992 = vpush %v3390_v6  ;;  %v8245_v6 = vld [vmem:[#allocation6_spill] sm:$0xff] }
 0x7d0   : > { %s3993_s30 = spop %3992 }
 0x7d1   : > { %p3392_p4 = scmp.gt.f32.partialorder %s3993_s30, 0.0 }
 0x7d3   : > { %s3393_s13 = scalar_select %p3392_p4, 1, 0 }
 0x7d5   : > { %v3394_v8 = vstv %s3393_s13 }
 0x7d6   : > { %vm7327_vm0 = vcmp.eq.s32.totalorder %v3394_v8, 1 }
 0x7d7   : > { %v3396_v58 = vsel %vm7327_vm0, %v6357_v38, %v6360_v1  ;;  %v3397_v24 = vsel %vm7327_vm0, %v8230_v7, %v6404_v56  ;;  %v3398_v15 = vsel %vm7327_vm0, %v8232_v46, %v8231_v41  ;;  %v3399_v11 = vsel %vm7327_vm0, %v8234_v62, %v8233_v30  ;;  %v8236_v38 = vld [vmem:[#allocation20_spill] sm:$0xff]  ;;  %v8237_v56 = vld [vmem:[#allocation7_spill] sm:$0xff]  ;;  %v8247_v7 = vld [vmem:[#allocation21_spill] sm:$0xff] }
 0x7d8   : > { %3460 = vst [vmem:[%s7325_s16] sm:$0xff] %v3396_v58  ;;  %v3400_v1 = vsel %vm7327_vm0, %v8236_v38, %v8235_v22  ;;  %v3401_v60 = vsel %vm7327_vm0, %v8238_v57, %v8237_v56  ;;  %v3402_v18 = vsel %vm7327_vm0, %v8240_v35, %v8239_v25  ;;  %v3403_v10 = vsel %vm7327_vm0, %v8242_v27, %v8241_v3  ;;  %v8246_v58 = vld [vmem:[#allocation18_spill] sm:$0xff]  ;;  %v8248_v41 = vld [vmem:[#allocation15_spill] sm:$0xff]  ;;  %v8251_v62 = vld [vmem:[#allocation29_spill] sm:$0xff] }
 0x7d9   : > { %3461 = vst [vmem:[%s7325_s16 + $0x8] sm:$0xff] %v3397_v24  ;;  %v3404_v31 = vsel %vm7327_vm0, %v8244_v37, %v8243_v55  ;;  %v3405_v8 = vsel %vm7327_vm0, %v8245_v6, %v6482_v23  ;;  %v3406_v24 = vsel %vm7327_vm0, %v8247_v7, %v8246_v58  ;;  %v3407_v46 = vsel %vm7327_vm0, %v8248_v41, %v6494_v19  ;;  %v8250_v30 = vld [vmem:[#allocation14_spill] sm:$0xff]  ;;  %v8253_v38 = vld [vmem:[#allocation8_spill] sm:$0xff]  ;;  %v8256_v57 = vld [vmem:[#allocation39_spill] sm:$0xff] }
 0x7da   : > { %3462 = vst [vmem:[%s7325_s16 + $0x10] sm:$0xff] %v3398_v15  ;;  %v8249_v15 = vld [vmem:[#allocation16_spill] sm:$0xff]  ;;  %v8255_v56 = vld [vmem:[#allocation30_spill] sm:$0xff]  ;;  %v8257_v25 = vld [vmem:[#allocation27_spill] sm:$0xff] }
 0x7db   : > { %3463 = vst [vmem:[%s7325_s16 + $0x18] sm:$0xff] %v3399_v11  ;;  %v3408_v23 = vsel %vm7327_vm0, %v8250_v30, %v8249_v15  ;;  %v8252_v11 = vld [vmem:[#allocation12_spill] sm:$0xff]  ;;  %v8258_v35 = vld [vmem:[#allocation43_spill] sm:$0xff]  ;;  %v8261_v37 = vld [vmem:[#allocation33_spill] sm:$0xff] }
 0x7dc   : > { %3464 = vst [vmem:[%s7325_s16 + $0x20] sm:$0xff] %v3400_v1  ;;  %v3409_v22 = vsel %vm7327_vm0, %v8252_v11, %v8251_v62  ;;  %v8254_v1 = vld [vmem:[#allocation13_spill] sm:$0xff]  ;;  %v8259_v3 = vld [vmem:[#allocation28_spill] sm:$0xff]  ;;  %v8268_v30 = vld [vmem:[#allocation34_spill] sm:$0xff] }
 0x7dd   : > { %3465 = vst [vmem:[%s7325_s16 + $0x28] sm:$0xff] %v3401_v60  ;;  %v3410_v19 = vsel %vm7327_vm0, %v8254_v1, %v8253_v38  ;;  %v3411_v60 = vsel %vm7327_vm0, %v8256_v57, %v8255_v56  ;;  %v3413_v27 = vsel %vm7327_vm0, %v8259_v3, %v6618_v52  ;;  %v8264_v58 = vld [vmem:[#allocation40_spill] sm:$0xff]  ;;  %v8270_v62 = vld [vmem:[#allocation59_spill] sm:$0xff]  ;;  %v8271_v11 = vld [vmem:[#allocation37_spill] sm:$0xff] }
 0x7de   : > { %3466 = vst [vmem:[%s7325_s16 + $0x30] sm:$0xff] %v3402_v18  ;;  %v3412_v18 = vsel %vm7327_vm0, %v8258_v35, %v8257_v25  ;;  %v8265_v7 = vld [vmem:[#allocation32_spill] sm:$0xff]  ;;  %v8273_v38 = vld [vmem:[#allocation35_spill] sm:$0xff]  ;;  %v8278_v35 = vld [vmem:[#allocation45_spill] sm:$0xff] }
 0x7df   : > { %3467 = vst [vmem:[%s7325_s16 + $0x38] sm:$0xff] %v3403_v10  ;;  %v8260_v10 = vld [vmem:[#allocation44_spill] sm:$0xff]  ;;  %v8279_v3 = vld [vmem:[#allocation63_spill] sm:$0xff] }
 0x7e0   : > { %3468 = vst [vmem:[%s7325_s16 + $0x40] sm:$0xff] %v3404_v31  ;;  %v3414_v55 = vsel %vm7327_vm0, %v8260_v10, %v6612_v14  ;;  %v8262_v31 = vld [vmem:[#allocation47_spill] sm:$0xff]  ;;  %v3417_v14 = vsel %vm7327_vm0, %v8265_v7, %v6680_v49  ;;  %v8274_v1 = vld [vmem:[#allocation60_spill] sm:$0xff] }
 0x7e1   : > { %3469 = vst [vmem:[%s7325_s16 + $0x48] sm:$0xff] %v3405_v8  ;;  %v3415_v6 = vsel %vm7327_vm0, %v8262_v31, %v8261_v37  ;;  %v8263_v8 = vld [vmem:[#allocation31_spill] sm:$0xff]  ;;  %v8276_v57 = vld [vmem:[#allocation56_spill] sm:$0xff] }
 0x7e2   : > { %3470 = vst [vmem:[%s7325_s16 + $0x50] sm:$0xff] %v3406_v24  ;;  %v3416_v52 = vsel %vm7327_vm0, %v8264_v58, %v8263_v8  ;;  %v8266_v24 = vld [vmem:[#allocation51_spill] sm:$0xff]  ;;  %v8282_v37 = vld [vmem:[#allocation64_spill] sm:$0xff]  ;;  %v8285_v58 = vld [vmem:[#allocation53_spill] sm:$0xff] }
 0x7e3   : > { %3471 = vst [vmem:[%s7325_s16 + $0x58] sm:$0xff] %v3407_v46  ;;  %v3418_v41 = vsel %vm7327_vm0, %v8266_v24, %v6670_v45  ;;  %v8267_v46 = vld [vmem:[#allocation52_spill] sm:$0xff]  ;;  %v3421_v45 = vsel %vm7327_vm0, %v8271_v11, %v8270_v62  ;;  %v8284_v8 = vld [vmem:[#allocation67_spill] sm:$0xff]  ;;  %v8293_v11 = vld [vmem:[#allocation57_spill] sm:$0xff] }
 0x7e4   : > { %3472 = vst [vmem:[%s7325_s16 + $0x60] sm:$0xff] %v3408_v23  ;;  %v3419_v15 = vsel %vm7327_vm0, %v8267_v46, %v6692_v53  ;;  %v8269_v23 = vld [vmem:[#allocation48_spill] sm:$0xff]  ;;  %v8292_v62 = vld [vmem:[#allocation79_spill] sm:$0xff] }
 0x7e5   : > { %3473 = vst [vmem:[%s7325_s16 + $0x68] sm:$0xff] %v3409_v22  ;;  %v3420_v49 = vsel %vm7327_vm0, %v8269_v23, %v8268_v30  ;;  %v8272_v22 = vld [vmem:[#allocation55_spill] sm:$0xff]  ;;  %v8288_v24 = vld [vmem:[#allocation68_spill] sm:$0xff]  ;;  %v8290_v30 = vld [vmem:[#allocation50_spill] sm:$0xff] }
 0x7e6   : > { %3474 = vst [vmem:[%s7325_s16 + $0x70] sm:$0xff] %v3410_v19  ;;  %v3422_v53 = vsel %vm7327_vm0, %v8273_v38, %v8272_v22  ;;  %v8275_v19 = vld [vmem:[#allocation38_spill] sm:$0xff]  ;;  %v8289_v46 = vld [vmem:[#allocation72_spill] sm:$0xff]  ;;  %v8291_v23 = vld [vmem:[#allocation75_spill] sm:$0xff] }
 0x7e7   : > { %3475 = vst [vmem:[%s7325_s16 + $0x78] sm:$0xff] %v3411_v60  ;;  %v3423_v56 = vsel %vm7327_vm0, %v8275_v19, %v8274_v1  ;;  %v8277_v60 = vld [vmem:[#allocation36_spill] sm:$0xff]  ;;  %v8295_v38 = vld [vmem:[#allocation54_spill] sm:$0xff]  ;;  %v8297_v19 = vld [vmem:[#allocation83_spill] sm:$0xff] }
 0x7e8   : > { %3476 = vst [vmem:[%s7325_s16 + $0x80] sm:$0xff] %v3412_v18  ;;  %v3424_v25 = vsel %vm7327_vm0, %v8277_v60, %v8276_v57  ;;  %v3425_v18 = vsel %vm7327_vm0, %v8278_v35, %v6796_v50  ;;  %v8294_v22 = vld [vmem:[#allocation76_spill] sm:$0xff]  ;;  %v8299_v60 = vld [vmem:[#allocation65_spill] sm:$0xff] }
 0x7e9   : > { %3477 = vst [vmem:[%s7325_s16 + $0x88] sm:$0xff] %v3413_v27  ;;  %v8280_v27 = vld [vmem:[#allocation41_spill] sm:$0xff] }
 0x7ea   : > { %3478 = vst [vmem:[%s7325_s16 + $0x90] sm:$0xff] %v3414_v55  ;;  %v3426_v10 = vsel %vm7327_vm0, %v8280_v27, %v8279_v3  ;;  %v8281_v55 = vld [vmem:[#allocation46_spill] sm:$0xff]  ;;  %v8302_v3 = vld [vmem:[#allocation80_spill] sm:$0xff]  ;;  %v8303_v27 = vld [vmem:[#allocation91_spill] sm:$0xff] }
 0x7eb   : > { %3479 = vst [vmem:[%s7325_s16 + $0x98] sm:$0xff] %v3415_v6  ;;  %v3427_v31 = vsel %vm7327_vm0, %v8282_v37, %v8281_v55  ;;  %v8283_v6 = vld [vmem:[#allocation42_spill] sm:$0xff]  ;;  %v8304_v55 = vld [vmem:[#allocation69_spill] sm:$0xff]  ;;  %v8305_v37 = vld [vmem:[#allocation87_spill] sm:$0xff] }
 0x7ec   : > { %3480 = vst [vmem:[%s7325_s16 + $0xa0] sm:$0xff] %v3416_v52  ;;  %v3428_v50 = vsel %vm7327_vm0, %v8284_v8, %v8283_v6  ;;  %v8286_v52 = vld [vmem:[#allocation71_spill] sm:$0xff]  ;;  %v8306_v6 = vld [vmem:[#allocation70_spill] sm:$0xff] }
 0x7ed   : > { %3481 = vst [vmem:[%s7325_s16 + $0xa8] sm:$0xff] %v3417_v14  ;;  %v3429_v7 = vsel %vm7327_vm0, %v8286_v52, %v8285_v58  ;;  %v8287_v14 = vld [vmem:[#allocation49_spill] sm:$0xff]  ;;  %v3441_v8 = vsel %vm7327_vm0, %v8306_v6, %v7062_v51  ;;  %v8308_v58 = vld [vmem:[#allocation66_spill] sm:$0xff]  ;;  %v3443_v52 = vsel %vm7327_vm0, %v7112_v36, %v7115_v4  ;;  %v3444_v51 = vsel %vm7327_vm0, %v7068_v39, %v7071_v21 }
 0x7ee   : > { %3482 = vst [vmem:[%s7325_s16 + $0xb0] sm:$0xff] %v3418_v41  ;;  %v3430_v41 = vsel %vm7327_vm0, %v8288_v24, %v8287_v14  ;;  %v3446_v36 = vsel %vm7327_vm0, %v7120_v17, %v7123_v34  ;;  %v3447_v21 = vsel %vm7327_vm0, %v7153_v33, %v7156_v13  ;;  %v3448_v39 = vsel %vm7327_vm0, %v7176_v43, %v7179_v44  ;;  %v8309_v13 = vld [vmem:[#allocation73_spill] sm:$0xff]  ;;  %v8311_v43 = vld [vmem:[#allocation74_spill] sm:$0xff]  ;;  %v8312_v44 = vld [vmem:[#allocation99_spill] sm:$0xff] }
 0x7ef   : > { %3483 = vst [vmem:[%s7325_s16 + $0xb8] sm:$0xff] %v3419_v15  ;;  %v3431_v15 = vsel %vm7327_vm0, %v8289_v46, %v6897_v5  ;;  %v3434_v5 = vsel %vm7327_vm0, %v8295_v38, %v8294_v22  ;;  %v3449_v4 = vsel %vm7327_vm0, %v7160_v26, %v7163_v40  ;;  %v3450_v17 = vsel %vm7327_vm0, %v7189_v2, %v7192_v47  ;;  %v8310_v26 = vld [vmem:[#allocation92_spill] sm:$0xff]  ;;  %v8313_v47 = vld [vmem:[#allocation77_spill] sm:$0xff] }
 0x7f0   : > { %3484 = vst [vmem:[%s7325_s16 + $0xc0] sm:$0xff] %v3420_v49  ;;  %v3432_v49 = vsel %vm7327_vm0, %v8291_v23, %v8290_v30  ;;  %v3451_v34 = vsel %vm7327_vm0, %v7197_v63, %v7200_v61  ;;  %v3454_v33 = vsel %vm7327_vm0, %v7229_v16, %v7232_v29  ;;  %v3455_v40 = vsel %vm7327_vm0, %v8310_v26, %v8309_v13  ;;  %v8314_v63 = vld [vmem:[#allocation95_spill] sm:$0xff] }
 0x7f1   : > { %3485 = vst [vmem:[%s7325_s16 + $0xc8] sm:$0xff] %v3421_v45  ;;  %v3433_v45 = vsel %vm7327_vm0, %v8293_v11, %v8292_v62  ;;  %v3456_v2 = vsel %vm7327_vm0, %v8312_v44, %v8311_v43  ;;  %v3457_v61 = vsel %vm7327_vm0, %v8314_v63, %v8313_v47 }
 0x7f2   : > { %3486 = vst [vmem:[%s7325_s16 + $0xd0] sm:$0xff] %v3422_v53  ;;  %v8296_v53 = vld [vmem:[#allocation58_spill] sm:$0xff] }
 0x7f3   : > { %3487 = vst [vmem:[%s7325_s16 + $0xd8] sm:$0xff] %v3423_v56  ;;  %v3435_v1 = vsel %vm7327_vm0, %v8296_v53, %v6962_v48  ;;  %v8298_v56 = vld [vmem:[#allocation61_spill] sm:$0xff] }
 0x7f4   : > { %3488 = vst [vmem:[%s7325_s16 + $0xe0] sm:$0xff] %v3424_v25  ;;  %v3436_v57 = vsel %vm7327_vm0, %v8298_v56, %v8297_v19  ;;  %v8300_v25 = vld [vmem:[#allocation84_spill] sm:$0xff] }
 0x7f5   : > { %3489 = vst [vmem:[%s7325_s16 + $0xe8] sm:$0xff] %v3425_v18  ;;  %v3437_v35 = vsel %vm7327_vm0, %v8300_v25, %v8299_v60  ;;  %v8301_v18 = vld [vmem:[#allocation62_spill] sm:$0xff] }
 0x7f6   : > { %3490 = vst [vmem:[%s7325_s16 + $0xf0] sm:$0xff] %v3426_v10  ;;  %v3438_v48 = vsel %vm7327_vm0, %v8302_v3, %v8301_v18  ;;  %v3439_v10 = vsel %vm7327_vm0, %v8303_v27, %v7018_v20 }
 0x7f7   : > { %3491 = vst [vmem:[%s7325_s16 + $0xf8] sm:$0xff] %v3427_v31  ;;  %v3440_v31 = vsel %vm7327_vm0, %v8305_v37, %v8304_v55 }
 0x7f8   : > { %3492 = vst [vmem:[%s7325_s16 + $0x100] sm:$0xff] %v3428_v50  ;;  %v8307_v50 = vld [vmem:[#allocation88_spill] sm:$0xff] }
 0x7f9   : > { %3493 = vst [vmem:[%s7325_s16 + $0x108] sm:$0xff] %v3429_v7  ;;  %v3442_v20 = vsel %vm7327_vm0, %v8308_v58, %v8307_v50  ;;  %v3445_v7 = vsel %vm7327_vm0, %v7146_v42, %v7149_v0  ;;  %v3452_v42 = vsel %vm7327_vm0, %v7219_v59, %v7222_v32  ;;  %v3453_v0 = vsel %vm7327_vm0, %v7203_v54, %v7206_v28  ;;  %v8315_v54 = vld [vmem:[#allocation78_spill] sm:$0xff]  ;;  %v8316_v28 = vld [vmem:[#allocation96_spill] sm:$0xff] }
 0x7fa   : > { %3494 = vst [vmem:[%s7325_s16 + $0x110] sm:$0xff] %v3430_v41  ;;  %v3458_v59 = vsel %vm7327_vm0, %v8316_v28, %v8315_v54  ;;  %v8317_v32 = vld [vmem:[#allocation100_spill] sm:$0xff] }
 0x7fb   : > { %3495 = vst [vmem:[%s7325_s16 + $0x118] sm:$0xff] %v3431_v15  ;;  %v3459_v16 = vsel %vm7327_vm0, %v8317_v32, %v7313_v9 }
 0x7fc   : > { %3496 = vst [vmem:[%s7325_s16 + $0x120] sm:$0xff] %v3432_v49 }
 0x7fd   : > { %3497 = vst [vmem:[%s7325_s16 + $0x128] sm:$0xff] %v3433_v45 }
 0x7fe   : > { %3498 = vst [vmem:[%s7325_s16 + $0x130] sm:$0xff] %v3434_v5 }
 0x7ff   : > { %3499 = vst [vmem:[%s7325_s16 + $0x138] sm:$0xff] %v3435_v1 }
 0x800   : > { %3500 = vst [vmem:[%s7325_s16 + $0x140] sm:$0xff] %v3436_v57 }
 0x801   : > { %3501 = vst [vmem:[%s7325_s16 + $0x148] sm:$0xff] %v3437_v35 }
 0x802   : > { %3502 = vst [vmem:[%s7325_s16 + $0x150] sm:$0xff] %v3438_v48 }
 0x803   : > { %3503 = vst [vmem:[%s7325_s16 + $0x158] sm:$0xff] %v3439_v10 }
 0x804   : > { %3504 = vst [vmem:[%s7325_s16 + $0x160] sm:$0xff] %v3440_v31 }
 0x805   : > { %3505 = vst [vmem:[%s7325_s16 + $0x168] sm:$0xff] %v3441_v8 }
 0x806   : > { %3506 = vst [vmem:[%s7325_s16 + $0x170] sm:$0xff] %v3442_v20 }
 0x807   : > { %3507 = vst [vmem:[%s7325_s16 + $0x178] sm:$0xff] %v3443_v52 }
 0x808   : > { %3508 = vst [vmem:[%s7325_s16 + $0x180] sm:$0xff] %v3444_v51 }
 0x809   : > { %3509 = vst [vmem:[%s7325_s16 + $0x188] sm:$0xff] %v3445_v7 }
 0x80a   : > { %3510 = vst [vmem:[%s7325_s16 + $0x190] sm:$0xff] %v3446_v36 }
 0x80b   : > { %3511 = vst [vmem:[%s7325_s16 + $0x198] sm:$0xff] %v3447_v21 }
 0x80c   : > { %3512 = vst [vmem:[%s7325_s16 + $0x1a0] sm:$0xff] %v3448_v39 }
 0x80d   : > { %3513 = vst [vmem:[%s7325_s16 + $0x1a8] sm:$0xff] %v3449_v4 }
 0x80e   : > { %3514 = vst [vmem:[%s7325_s16 + $0x1b0] sm:$0xff] %v3450_v17 }
 0x80f   : > { %3515 = vst [vmem:[%s7325_s16 + $0x1b8] sm:$0xff] %v3451_v34 }
 0x810   : > { %3516 = vst [vmem:[%s7325_s16 + $0x1c0] sm:$0xff] %v3452_v42 }
 0x811   : > { %3517 = vst [vmem:[%s7325_s16 + $0x1c8] sm:$0xff] %v3453_v0 }
 0x812   : > { %3518 = vst [vmem:[%s7325_s16 + $0x1d0] sm:$0xff] %v3454_v33 }
 0x813   : > { %3519 = vst [vmem:[%s7325_s16 + $0x1d8] sm:$0xff] %v3455_v40 }
 0x814   : > { %3520 = vst [vmem:[%s7325_s16 + $0x1e0] sm:$0xff] %v3456_v2 }
 0x815   : > { %3521 = vst [vmem:[%s7325_s16 + $0x1e8] sm:$0xff] %v3457_v61 }
 0x816   : > { %3522 = vst [vmem:[%s7325_s16 + $0x1f0] sm:$0xff] %v3458_v59 }
 0x817   : > { %3523 = vst [vmem:[%s7325_s16 + $0x1f8] sm:$0xff] %v3459_v16 }
 0x818 PF: > { %s16_s20 = sadd.s32 1, %s4271_s20  }
 0x819   : > { %p13_p5 = scmp.ge.s32.totalorder %s16_s20, 4  }
 0x81b   :  { %15 = sbr.rel (!%p13_p5) target bundleno = 2 (0x2), region = 70 }

</bundles_post_ra>
